<compile_context>
chip_gen: v5e
topology: v5e:2x2
jax: 0.10.0
libtpu: 0.0.40
codegen_flags: <defaults>
</compile_context>

<pallas_src>
import jax
import jax.numpy as jnp
from jax.experimental import pallas as pl
from jax.experimental.pallas import tpu as pltpu


_EMB_NAMES = [
    "vehicle_id",
    "vehicle_model",
    "vehicle_model_modification",
    "location_reference_point_id",
    "tires_front",
    "tires_rear",
]


# ----------------------------------------------------------------------------
# In-kernel multi-layer LSTM (statically unrolled, gate order i, f, o, g)
# ----------------------------------------------------------------------------
def _lstm_stack(x_flat, layers, h0s, c0s, T, BP, hid):
    """x_flat: (T*BP, I0) time-major flat input (row = t*BP + b).
    layers: list of (w_ih (I_l, 4*hid), w_hh (hid, 4*hid), b (1, 4*hid)) values,
    gate column order (i, f, o, g).  Returns (top_flat (T*BP, hid), finals)."""
    finals = []
    cur = x_flat
    for (w_ih, w_hh, b), h, c in zip(layers, h0s, c0s):
        # Hoisted input-to-hidden for all T steps at once (off the serial chain).
        pre = jnp.dot(cur, w_ih, preferred_element_type=jnp.float32) + b
        outs = []
        for t in range(T):
            g = pre[t * BP:(t + 1) * BP, :] + jnp.dot(
                h, w_hh, preferred_element_type=jnp.float32)
            sig = jax.nn.sigmoid(g[:, :3 * hid])        # i | f | o  (one EUP op)
            g_g = jnp.tanh(g[:, 3 * hid:])              # g          (one EUP op)
            c = sig[:, hid:2 * hid] * c + sig[:, :hid] * g_g
            h = sig[:, 2 * hid:3 * hid] * jnp.tanh(c)
            outs.append(h)
        finals.append((h, c))
        cur = jnp.concatenate(outs, axis=0)             # (T*BP, hid), time-major
    return cur, finals


# ----------------------------------------------------------------------------
# Fused forward kernel (single pallas_call, no grid)
# ----------------------------------------------------------------------------
def _make_kernel(BP, H, NL, T_enc, T_dec):
    H2 = 2 * H

    def kernel(*refs):
        it = iter(refs)
        veh_ref, vfc_w_ref, vfc_b_ref = next(it), next(it), next(it)
        xenc_ref, xdec_ref = next(it), next(it)
        enc_layers = [(next(it)[...], next(it)[...], next(it)[...])
                      for _ in range(NL)]
        dec_layers = [(next(it)[...], next(it)[...], next(it)[...])
                      for _ in range(NL)]
        out_w_ref, out_b_ref = next(it), next(it)
        out_ref = next(it)

        zero = jnp.zeros((BP, H2), jnp.float32)

        # ---- fused (loc ‖ ctl) encoder: one recurrence, state = [h_loc | h_ctl]
        enc_top, enc_fin = _lstm_stack(xenc_ref[...], enc_layers,
                                       [zero] * NL, [zero] * NL, T_enc, BP, H2)

        # encoder_outputs, flattened time-major: rows 0..T*BP-1 = loc stream,
        # rows T*BP..2T*BP-1 = ctl stream (== torch.cat along the time axis).
        enc_all = jnp.concatenate([enc_top[:, :H], enc_top[:, H:H2]], axis=0)

        # ---- vehicle feature FC -------------------------------------------
        vfe = (jnp.dot(veh_ref[...], vfc_w_ref[...],
                       preferred_element_type=jnp.float32) + vfc_b_ref[...])

        # ---- decoder initial state (fused finals are already [h_loc | h_ctl])
        h0s, c0s = [], []
        for l in range(NL):
            h0 = enc_fin[l][0]
            if l == 0:
                h0 = h0 + vfe
            h0s.append(h0)
            c0s.append(enc_fin[l][1])

        # ---- decoder (hidden 2H); final hT/cT intentionally not emitted -----
        dec_top, _ = _lstm_stack(xdec_ref[...], dec_layers, h0s, c0s,
                                 T_dec, BP, H2)
        dec_q = dec_top[:, :H]                          # projection: first H dims

        # ---- Luong attention: all batches at once with a block mask ---------
        Rq, Rk = T_dec * BP, 2 * T_enc * BP
        scores = jax.lax.dot_general(dec_q, enc_all, (((1,), (1,)), ((), ())),
                                     preferred_element_type=jnp.float32)
        same_b = (jax.lax.broadcasted_iota(jnp.int32, (Rq, Rk), 0) % BP ==
                  jax.lax.broadcasted_iota(jnp.int32, (Rq, Rk), 1) % BP)
        scores = jnp.where(same_b, scores, jnp.float32(-1e30))
        m = jnp.max(scores, axis=-1, keepdims=True)
        p = jnp.exp(scores - m)
        attn = p * pl.reciprocal(jnp.sum(p, axis=-1, keepdims=True), approx=False)
        ctx = jnp.dot(attn, enc_all, preferred_element_type=jnp.float32)

        # ---- output projection: fc_out split over [dec_q ; ctx], one store --
        out = (jnp.dot(dec_q, out_w_ref[0:H, :], preferred_element_type=jnp.float32)
               + jnp.dot(ctx, out_w_ref[H:H2, :], preferred_element_type=jnp.float32)
               + out_b_ref[...])
        out_ref[...] = out.astype(out_ref.dtype)

    return kernel


# ----------------------------------------------------------------------------
# Wrapper: embedding gather + weight repacking (glue) + one fused pallas_call
# ----------------------------------------------------------------------------
def _reorder_ifog(w, hid):
    """(.., 4*hid) in PyTorch (i,f,g,o) order -> (i,f,o,g)."""
    return jnp.concatenate([w[..., 0:hid], w[..., hid:2 * hid],
                            w[..., 3 * hid:4 * hid], w[..., 2 * hid:3 * hid]],
                           axis=-1)


def _fuse_gate_blockdiag(w_loc, w_ctl, hid):
    """Per-gate block-diag fusion of two (I, 4*hid) weights (already i,f,o,g)
    -> (I_loc+I_ctl, 8*hid), column order [i_loc|i_ctl|f_loc|f_ctl|o_loc|o_ctl|g_loc|g_ctl]."""
    il, ic = w_loc.shape[0], w_ctl.shape[0]
    zl = jnp.zeros((il, hid), w_loc.dtype)
    zc = jnp.zeros((ic, hid), w_ctl.dtype)
    cols = []
    for k in range(4):
        gl = w_loc[:, k * hid:(k + 1) * hid]
        gc = w_ctl[:, k * hid:(k + 1) * hid]
        cols.append(jnp.concatenate(
            [jnp.concatenate([gl, zc], axis=0),
             jnp.concatenate([zl, gc], axis=0)], axis=1))
    return jnp.concatenate(cols, axis=1)


def _fuse_gate_bias(b_loc, b_ctl, hid):
    parts = []
    for k in range(4):
        parts.append(b_loc[k * hid:(k + 1) * hid])
        parts.append(b_ctl[k * hid:(k + 1) * hid])
    return jnp.concatenate(parts).reshape(1, -1)


def model_forward(params, vehicle_features, input_localization,
                  input_control_sequence, output_control_sequence):
    B = vehicle_features.shape[0]
    NL = len(params["loc_enc"])
    H = params["loc_enc"][0][1].shape[0]                  # w_hh is (H, 4H)
    T_loc = input_localization.shape[1]
    T_ctl = input_control_sequence.shape[1]
    T_dec = output_control_sequence.shape[1]
    n_out = params["fc_out_w"].shape[1]
    # TODO(synk): the fused-encoder path assumes equal encoder lengths; unequal
    # lengths would need two separate (unfused) encoder recurrences.
    assert T_loc == T_ctl, "fused encoder requires T_loc == T_ctl"
    T_enc = T_loc
    BP = ((B + 7) // 8) * 8                               # pad batch to full sublanes

    # Embedding lookups stay outside the kernel (pure gather glue; dropout is
    # identity in eval mode).
    embs = [jnp.take(params["emb"][n], vehicle_features[:, i], axis=0)
            for i, n in enumerate(_EMB_NAMES)]
    veh = jnp.concatenate(embs, axis=1)                   # (B, 6E)

    def pad_b(x):
        return jnp.pad(x, ((0, BP - B),) + ((0, 0),) * (x.ndim - 1))

    def flat_tm(x):                                       # (BP, T, K) -> (T*BP, K)
        return jnp.transpose(x, (1, 0, 2)).reshape(x.shape[1] * BP, x.shape[2])

    veh_p = pad_b(veh)
    x_enc = flat_tm(pad_b(jnp.concatenate(
        [input_localization, input_control_sequence], axis=-1)))     # (T*BP, Kl+Kc)
    x_dec = flat_tm(pad_b(output_control_sequence))                  # (Td*BP, Kc)

    # Weight repacking: gate reorder (i,f,o,g) + per-gate block-diag encoder fusion.
    enc_packed = []
    for (wl_ih, wl_hh, bl), (wc_ih, wc_hh, bc) in zip(params["loc_enc"],
                                                      params["ctl_enc"]):
        wl_ih, wl_hh, bl = (_reorder_ifog(wl_ih, H), _reorder_ifog(wl_hh, H),
                            _reorder_ifog(bl, H))
        wc_ih, wc_hh, bc = (_reorder_ifog(wc_ih, H), _reorder_ifog(wc_hh, H),
                            _reorder_ifog(bc, H))
        enc_packed.append((_fuse_gate_blockdiag(wl_ih, wc_ih, H),
                           _fuse_gate_blockdiag(wl_hh, wc_hh, H),
                           _fuse_gate_bias(bl, bc, H)))
    dec_packed = []
    for w_ih, w_hh, b in params["decoder"]:
        dec_packed.append((_reorder_ifog(w_ih, 2 * H),
                           _reorder_ifog(w_hh, 2 * H),
                           _reorder_ifog(b, 2 * H).reshape(1, -1)))

    inputs = [veh_p,
              params["veh_fc_w"], params["veh_fc_b"].reshape(1, -1),
              x_enc, x_dec]
    for w_ih, w_hh, b in enc_packed + dec_packed:
        inputs += [w_ih, w_hh, b]
    inputs += [params["fc_out_w"], params["fc_out_b"].reshape(1, -1)]

    kernel = _make_kernel(BP=BP, H=H, NL=NL, T_enc=T_enc, T_dec=T_dec)
    vmem = pl.BlockSpec(memory_space=pltpu.MemorySpace.VMEM)

    out_flat = pl.pallas_call(
        kernel,
        out_shape=jax.ShapeDtypeStruct((T_dec * BP, n_out), jnp.float32),
        in_specs=[vmem] * len(inputs),
        out_specs=vmem,
    )(*inputs)

    # time-major (Td*BP, n_out) -> (B, Td, n_out)
    return out_flat.reshape(T_dec, BP, n_out).transpose(1, 0, 2)[:B]


# ----------------------------------------------------------------------------
# Parameter init (deterministic, PyTorch-like uniform ranges, gate order i,f,g,o)
# ----------------------------------------------------------------------------
def _uniform(key, shape, bound):
    return jax.random.uniform(key, shape, jnp.float32, -bound, bound)


def init_lstm(key, input_size, hidden, num_layers):
    """Each layer stored as (w_ih (in, 4H), w_hh (H, 4H), bias (4H,)) with
    PyTorch gate order (i, f, g, o); bias = b_ih + b_hh."""
    layers = []
    bound = hidden ** -0.5
    for l in range(num_layers):
        in_sz = input_size if l == 0 else hidden
        key, k1, k2, k3, k4 = jax.random.split(key, 5)
        w_ih = _uniform(k1, (in_sz, 4 * hidden), bound)
        w_hh = _uniform(k2, (hidden, 4 * hidden), bound)
        bias = (_uniform(k3, (4 * hidden,), bound)
                + _uniform(k4, (4 * hidden,), bound))
        layers.append((w_ih, w_hh, bias))
    return key, layers


if __name__ == "__main__":
    vehicle_feature_sizes = {
        "vehicle_id": 10,
        "vehicle_model": 7,
        "vehicle_model_modification": 5,
        "location_reference_point_id": 9,
        "tires_front": 6,
        "tires_rear": 6,
    }
    E = 8          # embedding_dim
    LOC = 6        # localization_input_size
    CTRL = 4       # control_input_size
    H = 32         # hidden_size
    NL = 2         # num_layers
    B, T_loc, T_ctrl, T_dec = 2, 8, 8, 8

    key = jax.random.PRNGKey(0)

    params = {"emb": {}}
    for name in _EMB_NAMES:
        key, k = jax.random.split(key)
        params["emb"][name] = jax.random.normal(
            k, (vehicle_feature_sizes[name], E), jnp.float32)

    key, k1, k2 = jax.random.split(key, 3)
    bound_fc = (6 * E) ** -0.5
    params["veh_fc_w"] = _uniform(k1, (6 * E, 2 * H), bound_fc)
    params["veh_fc_b"] = _uniform(k2, (2 * H,), bound_fc)

    key, params["loc_enc"] = init_lstm(key, LOC, H, NL)
    key, params["ctl_enc"] = init_lstm(key, CTRL, H, NL)
    key, params["decoder"] = init_lstm(key, CTRL, 2 * H, NL)

    key, k1, k2 = jax.random.split(key, 3)
    bound_out = (2 * H) ** -0.5
    params["fc_out_w"] = _uniform(k1, (2 * H, LOC), bound_out)
    params["fc_out_b"] = _uniform(k2, (LOC,), bound_out)

    # inputs
    key, kv, kl, kc, ko = jax.random.split(key, 5)
    vehicle_features = jnp.stack(
        [jax.random.randint(jax.random.fold_in(kv, i), (B,), 0,
                            vehicle_feature_sizes[n])
         for i, n in enumerate(_EMB_NAMES)], axis=1).astype(jnp.int32)  # (B, 6)
    input_localization = jax.random.normal(kl, (B, T_loc, LOC), jnp.float32)
    input_control_sequence = jax.random.normal(kc, (B, T_ctrl, CTRL), jnp.float32)
    output_control_sequence = jax.random.normal(ko, (B, T_dec, CTRL), jnp.float32)

    fwd = jax.jit(model_forward)
    out = fwd(params, vehicle_features, input_localization,
              input_control_sequence, output_control_sequence)
    out = jax.block_until_ready(out)
    assert out.shape == (B, T_dec, LOC), out.shape
    print("KERNEL_OK")
</pallas_src>

<mosaic_0001>
module attributes {stable_mosaic.version = 11 : i64} {
  func.func @kernel(%arg0: memref<8x48xf32, #tpu.memory_space<vmem>>, %arg1: memref<48x64xf32, #tpu.memory_space<vmem>>, %arg2: memref<1x64xf32, #tpu.memory_space<vmem>>, %arg3: memref<64x10xf32, #tpu.memory_space<vmem>>, %arg4: memref<64x4xf32, #tpu.memory_space<vmem>>, %arg5: memref<10x256xf32, #tpu.memory_space<vmem>>, %arg6: memref<64x256xf32, #tpu.memory_space<vmem>>, %arg7: memref<1x256xf32, #tpu.memory_space<vmem>>, %arg8: memref<64x256xf32, #tpu.memory_space<vmem>>, %arg9: memref<64x256xf32, #tpu.memory_space<vmem>>, %arg10: memref<1x256xf32, #tpu.memory_space<vmem>>, %arg11: memref<4x256xf32, #tpu.memory_space<vmem>>, %arg12: memref<64x256xf32, #tpu.memory_space<vmem>>, %arg13: memref<1x256xf32, #tpu.memory_space<vmem>>, %arg14: memref<64x256xf32, #tpu.memory_space<vmem>>, %arg15: memref<64x256xf32, #tpu.memory_space<vmem>>, %arg16: memref<1x256xf32, #tpu.memory_space<vmem>>, %arg17: memref<64x6xf32, #tpu.memory_space<vmem>>, %arg18: memref<1x6xf32, #tpu.memory_space<vmem>>, %arg19: memref<64x6xf32, #tpu.memory_space<vmem>>) attributes {dimension_semantics = [], scalar_prefetch = 0 : i64, scratch_operands = 0 : i64, tpu.core_type = #tpu.core_type<tc>} {
    %c0 = arith.constant 0 : index
    %c0_0 = arith.constant 0 : index
    %0 = vector.load %arg5[%c0, %c0_0] : memref<10x256xf32, #tpu.memory_space<vmem>>, vector<10x256xf32>
    %c0_1 = arith.constant 0 : index
    %c0_2 = arith.constant 0 : index
    %1 = vector.load %arg6[%c0_1, %c0_2] : memref<64x256xf32, #tpu.memory_space<vmem>>, vector<64x256xf32>
    %c0_3 = arith.constant 0 : index
    %c0_4 = arith.constant 0 : index
    %2 = vector.load %arg7[%c0_3, %c0_4] : memref<1x256xf32, #tpu.memory_space<vmem>>, vector<1x256xf32>
    %c0_5 = arith.constant 0 : index
    %c0_6 = arith.constant 0 : index
    %3 = vector.load %arg8[%c0_5, %c0_6] : memref<64x256xf32, #tpu.memory_space<vmem>>, vector<64x256xf32>
    %c0_7 = arith.constant 0 : index
    %c0_8 = arith.constant 0 : index
    %4 = vector.load %arg9[%c0_7, %c0_8] : memref<64x256xf32, #tpu.memory_space<vmem>>, vector<64x256xf32>
    %c0_9 = arith.constant 0 : index
    %c0_10 = arith.constant 0 : index
    %5 = vector.load %arg10[%c0_9, %c0_10] : memref<1x256xf32, #tpu.memory_space<vmem>>, vector<1x256xf32>
    %c0_11 = arith.constant 0 : index
    %c0_12 = arith.constant 0 : index
    %6 = vector.load %arg11[%c0_11, %c0_12] : memref<4x256xf32, #tpu.memory_space<vmem>>, vector<4x256xf32>
    %c0_13 = arith.constant 0 : index
    %c0_14 = arith.constant 0 : index
    %7 = vector.load %arg12[%c0_13, %c0_14] : memref<64x256xf32, #tpu.memory_space<vmem>>, vector<64x256xf32>
    %c0_15 = arith.constant 0 : index
    %c0_16 = arith.constant 0 : index
    %8 = vector.load %arg13[%c0_15, %c0_16] : memref<1x256xf32, #tpu.memory_space<vmem>>, vector<1x256xf32>
    %c0_17 = arith.constant 0 : index
    %c0_18 = arith.constant 0 : index
    %9 = vector.load %arg14[%c0_17, %c0_18] : memref<64x256xf32, #tpu.memory_space<vmem>>, vector<64x256xf32>
    %c0_19 = arith.constant 0 : index
    %c0_20 = arith.constant 0 : index
    %10 = vector.load %arg15[%c0_19, %c0_20] : memref<64x256xf32, #tpu.memory_space<vmem>>, vector<64x256xf32>
    %c0_21 = arith.constant 0 : index
    %c0_22 = arith.constant 0 : index
    %11 = vector.load %arg16[%c0_21, %c0_22] : memref<1x256xf32, #tpu.memory_space<vmem>>, vector<1x256xf32>
    %cst = arith.constant 0.000000e+00 : f32
    %12 = vector.broadcast %cst : f32 to vector<8x64xf32>
    %c0_23 = arith.constant 0 : index
    %c0_24 = arith.constant 0 : index
    %13 = vector.load %arg3[%c0_23, %c0_24] : memref<64x10xf32, #tpu.memory_space<vmem>>, vector<64x10xf32>
    %cst_25 = arith.constant dense<0.000000e+00> : vector<64x256xf32>
    %14 = tpu.matmul %13, %0, %cst_25 {dimension_numbers = #tpu.dot_dimension_numbers<[1], [0], [0], [1], [0, 0, 1, 1], [], []>} : vector<64x10xf32>, vector<10x256xf32>, vector<64x256xf32> -> vector<64x256xf32>
    %15 = vector.broadcast %2 : vector<1x256xf32> to vector<64x256xf32>
    %16 = arith.addf %14, %15 : vector<64x256xf32>
    %17 = vector.extract_strided_slice %16 {offsets = [0, 0], sizes = [8, 256], strides = [1, 1]} : vector<64x256xf32> to vector<8x256xf32>
    %cst_26 = arith.constant dense<0.000000e+00> : vector<8x256xf32>
    %18 = tpu.matmul %12, %1, %cst_26 {dimension_numbers = #tpu.dot_dimension_numbers<[1], [0], [0], [1], [0, 0, 1, 1], [], []>} : vector<8x64xf32>, vector<64x256xf32>, vector<8x256xf32> -> vector<8x256xf32>
    %19 = arith.addf %17, %18 : vector<8x256xf32>
    %20 = vector.extract_strided_slice %19 {offsets = [0, 0], sizes = [8, 192], strides = [1, 1]} : vector<8x256xf32> to vector<8x192xf32>
    %21 = arith.negf %20 : vector<8x192xf32>
    %22 = math.exp %21 : vector<8x192xf32>
    %cst_27 = arith.constant 1.000000e+00 : f32
    %23 = vector.broadcast %cst_27 : f32 to vector<8x192xf32>
    %24 = arith.addf %23, %22 : vector<8x192xf32>
    %25 = arith.divf %23, %24 : vector<8x192xf32>
    %26 = vector.extract_strided_slice %19 {offsets = [0, 192], sizes = [8, 64], strides = [1, 1]} : vector<8x256xf32> to vector<8x64xf32>
    %27 = math.tanh %26 : vector<8x64xf32>
    %28 = vector.extract_strided_slice %25 {offsets = [0, 64], sizes = [8, 64], strides = [1, 1]} : vector<8x192xf32> to vector<8x64xf32>
    %29 = arith.mulf %28, %12 : vector<8x64xf32>
    %30 = vector.extract_strided_slice %25 {offsets = [0, 0], sizes = [8, 64], strides = [1, 1]} : vector<8x192xf32> to vector<8x64xf32>
    %31 = arith.mulf %30, %27 : vector<8x64xf32>
    %32 = arith.addf %29, %31 : vector<8x64xf32>
    %33 = vector.extract_strided_slice %25 {offsets = [0, 128], sizes = [8, 64], strides = [1, 1]} : vector<8x192xf32> to vector<8x64xf32>
    %34 = math.tanh %32 : vector<8x64xf32>
    %35 = arith.mulf %33, %34 : vector<8x64xf32>
    %36 = vector.extract_strided_slice %16 {offsets = [8, 0], sizes = [8, 256], strides = [1, 1]} : vector<64x256xf32> to vector<8x256xf32>
    %cst_28 = arith.constant dense<0.000000e+00> : vector<8x256xf32>
    %37 = tpu.matmul %35, %1, %cst_28 {dimension_numbers = #tpu.dot_dimension_numbers<[1], [0], [0], [1], [0, 0, 1, 1], [], []>} : vector<8x64xf32>, vector<64x256xf32>, vector<8x256xf32> -> vector<8x256xf32>
    %38 = arith.addf %36, %37 : vector<8x256xf32>
    %39 = vector.extract_strided_slice %38 {offsets = [0, 0], sizes = [8, 192], strides = [1, 1]} : vector<8x256xf32> to vector<8x192xf32>
    %40 = arith.negf %39 : vector<8x192xf32>
    %41 = math.exp %40 : vector<8x192xf32>
    %cst_29 = arith.constant 1.000000e+00 : f32
    %42 = vector.broadcast %cst_29 : f32 to vector<8x192xf32>
    %43 = arith.addf %42, %41 : vector<8x192xf32>
    %44 = arith.divf %42, %43 : vector<8x192xf32>
    %45 = vector.extract_strided_slice %38 {offsets = [0, 192], sizes = [8, 64], strides = [1, 1]} : vector<8x256xf32> to vector<8x64xf32>
    %46 = math.tanh %45 : vector<8x64xf32>
    %47 = vector.extract_strided_slice %44 {offsets = [0, 64], sizes = [8, 64], strides = [1, 1]} : vector<8x192xf32> to vector<8x64xf32>
    %48 = arith.mulf %47, %32 : vector<8x64xf32>
    %49 = vector.extract_strided_slice %44 {offsets = [0, 0], sizes = [8, 64], strides = [1, 1]} : vector<8x192xf32> to vector<8x64xf32>
    %50 = arith.mulf %49, %46 : vector<8x64xf32>
    %51 = arith.addf %48, %50 : vector<8x64xf32>
    %52 = vector.extract_strided_slice %44 {offsets = [0, 128], sizes = [8, 64], strides = [1, 1]} : vector<8x192xf32> to vector<8x64xf32>
    %53 = math.tanh %51 : vector<8x64xf32>
    %54 = arith.mulf %52, %53 : vector<8x64xf32>
    %55 = vector.extract_strided_slice %16 {offsets = [16, 0], sizes = [8, 256], strides = [1, 1]} : vector<64x256xf32> to vector<8x256xf32>
    %cst_30 = arith.constant dense<0.000000e+00> : vector<8x256xf32>
    %56 = tpu.matmul %54, %1, %cst_30 {dimension_numbers = #tpu.dot_dimension_numbers<[1], [0], [0], [1], [0, 0, 1, 1], [], []>} : vector<8x64xf32>, vector<64x256xf32>, vector<8x256xf32> -> vector<8x256xf32>
    %57 = arith.addf %55, %56 : vector<8x256xf32>
    %58 = vector.extract_strided_slice %57 {offsets = [0, 0], sizes = [8, 192], strides = [1, 1]} : vector<8x256xf32> to vector<8x192xf32>
    %59 = arith.negf %58 : vector<8x192xf32>
    %60 = math.exp %59 : vector<8x192xf32>
    %cst_31 = arith.constant 1.000000e+00 : f32
    %61 = vector.broadcast %cst_31 : f32 to vector<8x192xf32>
    %62 = arith.addf %61, %60 : vector<8x192xf32>
    %63 = arith.divf %61, %62 : vector<8x192xf32>
    %64 = vector.extract_strided_slice %57 {offsets = [0, 192], sizes = [8, 64], strides = [1, 1]} : vector<8x256xf32> to vector<8x64xf32>
    %65 = math.tanh %64 : vector<8x64xf32>
    %66 = vector.extract_strided_slice %63 {offsets = [0, 64], sizes = [8, 64], strides = [1, 1]} : vector<8x192xf32> to vector<8x64xf32>
    %67 = arith.mulf %66, %51 : vector<8x64xf32>
    %68 = vector.extract_strided_slice %63 {offsets = [0, 0], sizes = [8, 64], strides = [1, 1]} : vector<8x192xf32> to vector<8x64xf32>
    %69 = arith.mulf %68, %65 : vector<8x64xf32>
    %70 = arith.addf %67, %69 : vector<8x64xf32>
    %71 = vector.extract_strided_slice %63 {offsets = [0, 128], sizes = [8, 64], strides = [1, 1]} : vector<8x192xf32> to vector<8x64xf32>
    %72 = math.tanh %70 : vector<8x64xf32>
    %73 = arith.mulf %71, %72 : vector<8x64xf32>
    %74 = vector.extract_strided_slice %16 {offsets = [24, 0], sizes = [8, 256], strides = [1, 1]} : vector<64x256xf32> to vector<8x256xf32>
    %cst_32 = arith.constant dense<0.000000e+00> : vector<8x256xf32>
    %75 = tpu.matmul %73, %1, %cst_32 {dimension_numbers = #tpu.dot_dimension_numbers<[1], [0], [0], [1], [0, 0, 1, 1], [], []>} : vector<8x64xf32>, vector<64x256xf32>, vector<8x256xf32> -> vector<8x256xf32>
    %76 = arith.addf %74, %75 : vector<8x256xf32>
    %77 = vector.extract_strided_slice %76 {offsets = [0, 0], sizes = [8, 192], strides = [1, 1]} : vector<8x256xf32> to vector<8x192xf32>
    %78 = arith.negf %77 : vector<8x192xf32>
    %79 = math.exp %78 : vector<8x192xf32>
    %cst_33 = arith.constant 1.000000e+00 : f32
    %80 = vector.broadcast %cst_33 : f32 to vector<8x192xf32>
    %81 = arith.addf %80, %79 : vector<8x192xf32>
    %82 = arith.divf %80, %81 : vector<8x192xf32>
    %83 = vector.extract_strided_slice %76 {offsets = [0, 192], sizes = [8, 64], strides = [1, 1]} : vector<8x256xf32> to vector<8x64xf32>
    %84 = math.tanh %83 : vector<8x64xf32>
    %85 = vector.extract_strided_slice %82 {offsets = [0, 64], sizes = [8, 64], strides = [1, 1]} : vector<8x192xf32> to vector<8x64xf32>
    %86 = arith.mulf %85, %70 : vector<8x64xf32>
    %87 = vector.extract_strided_slice %82 {offsets = [0, 0], sizes = [8, 64], strides = [1, 1]} : vector<8x192xf32> to vector<8x64xf32>
    %88 = arith.mulf %87, %84 : vector<8x64xf32>
    %89 = arith.addf %86, %88 : vector<8x64xf32>
    %90 = vector.extract_strided_slice %82 {offsets = [0, 128], sizes = [8, 64], strides = [1, 1]} : vector<8x192xf32> to vector<8x64xf32>
    %91 = math.tanh %89 : vector<8x64xf32>
    %92 = arith.mulf %90, %91 : vector<8x64xf32>
    %93 = vector.extract_strided_slice %16 {offsets = [32, 0], sizes = [8, 256], strides = [1, 1]} : vector<64x256xf32> to vector<8x256xf32>
    %cst_34 = arith.constant dense<0.000000e+00> : vector<8x256xf32>
    %94 = tpu.matmul %92, %1, %cst_34 {dimension_numbers = #tpu.dot_dimension_numbers<[1], [0], [0], [1], [0, 0, 1, 1], [], []>} : vector<8x64xf32>, vector<64x256xf32>, vector<8x256xf32> -> vector<8x256xf32>
    %95 = arith.addf %93, %94 : vector<8x256xf32>
    %96 = vector.extract_strided_slice %95 {offsets = [0, 0], sizes = [8, 192], strides = [1, 1]} : vector<8x256xf32> to vector<8x192xf32>
    %97 = arith.negf %96 : vector<8x192xf32>
    %98 = math.exp %97 : vector<8x192xf32>
    %cst_35 = arith.constant 1.000000e+00 : f32
    %99 = vector.broadcast %cst_35 : f32 to vector<8x192xf32>
    %100 = arith.addf %99, %98 : vector<8x192xf32>
    %101 = arith.divf %99, %100 : vector<8x192xf32>
    %102 = vector.extract_strided_slice %95 {offsets = [0, 192], sizes = [8, 64], strides = [1, 1]} : vector<8x256xf32> to vector<8x64xf32>
    %103 = math.tanh %102 : vector<8x64xf32>
    %104 = vector.extract_strided_slice %101 {offsets = [0, 64], sizes = [8, 64], strides = [1, 1]} : vector<8x192xf32> to vector<8x64xf32>
    %105 = arith.mulf %104, %89 : vector<8x64xf32>
    %106 = vector.extract_strided_slice %101 {offsets = [0, 0], sizes = [8, 64], strides = [1, 1]} : vector<8x192xf32> to vector<8x64xf32>
    %107 = arith.mulf %106, %103 : vector<8x64xf32>
    %108 = arith.addf %105, %107 : vector<8x64xf32>
    %109 = vector.extract_strided_slice %101 {offsets = [0, 128], sizes = [8, 64], strides = [1, 1]} : vector<8x192xf32> to vector<8x64xf32>
    %110 = math.tanh %108 : vector<8x64xf32>
    %111 = arith.mulf %109, %110 : vector<8x64xf32>
    %112 = vector.extract_strided_slice %16 {offsets = [40, 0], sizes = [8, 256], strides = [1, 1]} : vector<64x256xf32> to vector<8x256xf32>
    %cst_36 = arith.constant dense<0.000000e+00> : vector<8x256xf32>
    %113 = tpu.matmul %111, %1, %cst_36 {dimension_numbers = #tpu.dot_dimension_numbers<[1], [0], [0], [1], [0, 0, 1, 1], [], []>} : vector<8x64xf32>, vector<64x256xf32>, vector<8x256xf32> -> vector<8x256xf32>
    %114 = arith.addf %112, %113 : vector<8x256xf32>
    %115 = vector.extract_strided_slice %114 {offsets = [0, 0], sizes = [8, 192], strides = [1, 1]} : vector<8x256xf32> to vector<8x192xf32>
    %116 = arith.negf %115 : vector<8x192xf32>
    %117 = math.exp %116 : vector<8x192xf32>
    %cst_37 = arith.constant 1.000000e+00 : f32
    %118 = vector.broadcast %cst_37 : f32 to vector<8x192xf32>
    %119 = arith.addf %118, %117 : vector<8x192xf32>
    %120 = arith.divf %118, %119 : vector<8x192xf32>
    %121 = vector.extract_strided_slice %114 {offsets = [0, 192], sizes = [8, 64], strides = [1, 1]} : vector<8x256xf32> to vector<8x64xf32>
    %122 = math.tanh %121 : vector<8x64xf32>
    %123 = vector.extract_strided_slice %120 {offsets = [0, 64], sizes = [8, 64], strides = [1, 1]} : vector<8x192xf32> to vector<8x64xf32>
    %124 = arith.mulf %123, %108 : vector<8x64xf32>
    %125 = vector.extract_strided_slice %120 {offsets = [0, 0], sizes = [8, 64], strides = [1, 1]} : vector<8x192xf32> to vector<8x64xf32>
    %126 = arith.mulf %125, %122 : vector<8x64xf32>
    %127 = arith.addf %124, %126 : vector<8x64xf32>
    %128 = vector.extract_strided_slice %120 {offsets = [0, 128], sizes = [8, 64], strides = [1, 1]} : vector<8x192xf32> to vector<8x64xf32>
    %129 = math.tanh %127 : vector<8x64xf32>
    %130 = arith.mulf %128, %129 : vector<8x64xf32>
    %131 = vector.extract_strided_slice %16 {offsets = [48, 0], sizes = [8, 256], strides = [1, 1]} : vector<64x256xf32> to vector<8x256xf32>
    %cst_38 = arith.constant dense<0.000000e+00> : vector<8x256xf32>
    %132 = tpu.matmul %130, %1, %cst_38 {dimension_numbers = #tpu.dot_dimension_numbers<[1], [0], [0], [1], [0, 0, 1, 1], [], []>} : vector<8x64xf32>, vector<64x256xf32>, vector<8x256xf32> -> vector<8x256xf32>
    %133 = arith.addf %131, %132 : vector<8x256xf32>
    %134 = vector.extract_strided_slice %133 {offsets = [0, 0], sizes = [8, 192], strides = [1, 1]} : vector<8x256xf32> to vector<8x192xf32>
    %135 = arith.negf %134 : vector<8x192xf32>
    %136 = math.exp %135 : vector<8x192xf32>
    %cst_39 = arith.constant 1.000000e+00 : f32
    %137 = vector.broadcast %cst_39 : f32 to vector<8x192xf32>
    %138 = arith.addf %137, %136 : vector<8x192xf32>
    %139 = arith.divf %137, %138 : vector<8x192xf32>
    %140 = vector.extract_strided_slice %133 {offsets = [0, 192], sizes = [8, 64], strides = [1, 1]} : vector<8x256xf32> to vector<8x64xf32>
    %141 = math.tanh %140 : vector<8x64xf32>
    %142 = vector.extract_strided_slice %139 {offsets = [0, 64], sizes = [8, 64], strides = [1, 1]} : vector<8x192xf32> to vector<8x64xf32>
    %143 = arith.mulf %142, %127 : vector<8x64xf32>
    %144 = vector.extract_strided_slice %139 {offsets = [0, 0], sizes = [8, 64], strides = [1, 1]} : vector<8x192xf32> to vector<8x64xf32>
    %145 = arith.mulf %144, %141 : vector<8x64xf32>
    %146 = arith.addf %143, %145 : vector<8x64xf32>
    %147 = vector.extract_strided_slice %139 {offsets = [0, 128], sizes = [8, 64], strides = [1, 1]} : vector<8x192xf32> to vector<8x64xf32>
    %148 = math.tanh %146 : vector<8x64xf32>
    %149 = arith.mulf %147, %148 : vector<8x64xf32>
    %150 = vector.extract_strided_slice %16 {offsets = [56, 0], sizes = [8, 256], strides = [1, 1]} : vector<64x256xf32> to vector<8x256xf32>
    %cst_40 = arith.constant dense<0.000000e+00> : vector<8x256xf32>
    %151 = tpu.matmul %149, %1, %cst_40 {dimension_numbers = #tpu.dot_dimension_numbers<[1], [0], [0], [1], [0, 0, 1, 1], [], []>} : vector<8x64xf32>, vector<64x256xf32>, vector<8x256xf32> -> vector<8x256xf32>
    %152 = arith.addf %150, %151 : vector<8x256xf32>
    %153 = vector.extract_strided_slice %152 {offsets = [0, 0], sizes = [8, 192], strides = [1, 1]} : vector<8x256xf32> to vector<8x192xf32>
    %154 = arith.negf %153 : vector<8x192xf32>
    %155 = math.exp %154 : vector<8x192xf32>
    %cst_41 = arith.constant 1.000000e+00 : f32
    %156 = vector.broadcast %cst_41 : f32 to vector<8x192xf32>
    %157 = arith.addf %156, %155 : vector<8x192xf32>
    %158 = arith.divf %156, %157 : vector<8x192xf32>
    %159 = vector.extract_strided_slice %152 {offsets = [0, 192], sizes = [8, 64], strides = [1, 1]} : vector<8x256xf32> to vector<8x64xf32>
    %160 = math.tanh %159 : vector<8x64xf32>
    %161 = vector.extract_strided_slice %158 {offsets = [0, 64], sizes = [8, 64], strides = [1, 1]} : vector<8x192xf32> to vector<8x64xf32>
    %162 = arith.mulf %161, %146 : vector<8x64xf32>
    %163 = vector.extract_strided_slice %158 {offsets = [0, 0], sizes = [8, 64], strides = [1, 1]} : vector<8x192xf32> to vector<8x64xf32>
    %164 = arith.mulf %163, %160 : vector<8x64xf32>
    %165 = arith.addf %162, %164 : vector<8x64xf32>
    %166 = vector.extract_strided_slice %158 {offsets = [0, 128], sizes = [8, 64], strides = [1, 1]} : vector<8x192xf32> to vector<8x64xf32>
    %167 = math.tanh %165 : vector<8x64xf32>
    %168 = arith.mulf %166, %167 : vector<8x64xf32>
    %169 = tpu.concatenate %35, %54, %73, %92, %111, %130, %149, %168 in 0 : vector<8x64xf32>, vector<8x64xf32>, vector<8x64xf32>, vector<8x64xf32>, vector<8x64xf32>, vector<8x64xf32>, vector<8x64xf32>, vector<8x64xf32> -> vector<64x64xf32>
    %cst_42 = arith.constant dense<0.000000e+00> : vector<64x256xf32>
    %170 = tpu.matmul %169, %3, %cst_42 {dimension_numbers = #tpu.dot_dimension_numbers<[1], [0], [0], [1], [0, 0, 1, 1], [], []>} : vector<64x64xf32>, vector<64x256xf32>, vector<64x256xf32> -> vector<64x256xf32>
    %171 = vector.broadcast %5 : vector<1x256xf32> to vector<64x256xf32>
    %172 = arith.addf %170, %171 : vector<64x256xf32>
    %173 = vector.extract_strided_slice %172 {offsets = [0, 0], sizes = [8, 256], strides = [1, 1]} : vector<64x256xf32> to vector<8x256xf32>
    %cst_43 = arith.constant dense<0.000000e+00> : vector<8x256xf32>
    %174 = tpu.matmul %12, %4, %cst_43 {dimension_numbers = #tpu.dot_dimension_numbers<[1], [0], [0], [1], [0, 0, 1, 1], [], []>} : vector<8x64xf32>, vector<64x256xf32>, vector<8x256xf32> -> vector<8x256xf32>
    %175 = arith.addf %173, %174 : vector<8x256xf32>
    %176 = vector.extract_strided_slice %175 {offsets = [0, 0], sizes = [8, 192], strides = [1, 1]} : vector<8x256xf32> to vector<8x192xf32>
    %177 = arith.negf %176 : vector<8x192xf32>
    %178 = math.exp %177 : vector<8x192xf32>
    %cst_44 = arith.constant 1.000000e+00 : f32
    %179 = vector.broadcast %cst_44 : f32 to vector<8x192xf32>
    %180 = arith.addf %179, %178 : vector<8x192xf32>
    %181 = arith.divf %179, %180 : vector<8x192xf32>
    %182 = vector.extract_strided_slice %175 {offsets = [0, 192], sizes = [8, 64], strides = [1, 1]} : vector<8x256xf32> to vector<8x64xf32>
    %183 = math.tanh %182 : vector<8x64xf32>
    %184 = vector.extract_strided_slice %181 {offsets = [0, 64], sizes = [8, 64], strides = [1, 1]} : vector<8x192xf32> to vector<8x64xf32>
    %185 = arith.mulf %184, %12 : vector<8x64xf32>
    %186 = vector.extract_strided_slice %181 {offsets = [0, 0], sizes = [8, 64], strides = [1, 1]} : vector<8x192xf32> to vector<8x64xf32>
    %187 = arith.mulf %186, %183 : vector<8x64xf32>
    %188 = arith.addf %185, %187 : vector<8x64xf32>
    %189 = vector.extract_strided_slice %181 {offsets = [0, 128], sizes = [8, 64], strides = [1, 1]} : vector<8x192xf32> to vector<8x64xf32>
    %190 = math.tanh %188 : vector<8x64xf32>
    %191 = arith.mulf %189, %190 : vector<8x64xf32>
    %192 = vector.extract_strided_slice %172 {offsets = [8, 0], sizes = [8, 256], strides = [1, 1]} : vector<64x256xf32> to vector<8x256xf32>
    %cst_45 = arith.constant dense<0.000000e+00> : vector<8x256xf32>
    %193 = tpu.matmul %191, %4, %cst_45 {dimension_numbers = #tpu.dot_dimension_numbers<[1], [0], [0], [1], [0, 0, 1, 1], [], []>} : vector<8x64xf32>, vector<64x256xf32>, vector<8x256xf32> -> vector<8x256xf32>
    %194 = arith.addf %192, %193 : vector<8x256xf32>
    %195 = vector.extract_strided_slice %194 {offsets = [0, 0], sizes = [8, 192], strides = [1, 1]} : vector<8x256xf32> to vector<8x192xf32>
    %196 = arith.negf %195 : vector<8x192xf32>
    %197 = math.exp %196 : vector<8x192xf32>
    %cst_46 = arith.constant 1.000000e+00 : f32
    %198 = vector.broadcast %cst_46 : f32 to vector<8x192xf32>
    %199 = arith.addf %198, %197 : vector<8x192xf32>
    %200 = arith.divf %198, %199 : vector<8x192xf32>
    %201 = vector.extract_strided_slice %194 {offsets = [0, 192], sizes = [8, 64], strides = [1, 1]} : vector<8x256xf32> to vector<8x64xf32>
    %202 = math.tanh %201 : vector<8x64xf32>
    %203 = vector.extract_strided_slice %200 {offsets = [0, 64], sizes = [8, 64], strides = [1, 1]} : vector<8x192xf32> to vector<8x64xf32>
    %204 = arith.mulf %203, %188 : vector<8x64xf32>
    %205 = vector.extract_strided_slice %200 {offsets = [0, 0], sizes = [8, 64], strides = [1, 1]} : vector<8x192xf32> to vector<8x64xf32>
    %206 = arith.mulf %205, %202 : vector<8x64xf32>
    %207 = arith.addf %204, %206 : vector<8x64xf32>
    %208 = vector.extract_strided_slice %200 {offsets = [0, 128], sizes = [8, 64], strides = [1, 1]} : vector<8x192xf32> to vector<8x64xf32>
    %209 = math.tanh %207 : vector<8x64xf32>
    %210 = arith.mulf %208, %209 : vector<8x64xf32>
    %211 = vector.extract_strided_slice %172 {offsets = [16, 0], sizes = [8, 256], strides = [1, 1]} : vector<64x256xf32> to vector<8x256xf32>
    %cst_47 = arith.constant dense<0.000000e+00> : vector<8x256xf32>
    %212 = tpu.matmul %210, %4, %cst_47 {dimension_numbers = #tpu.dot_dimension_numbers<[1], [0], [0], [1], [0, 0, 1, 1], [], []>} : vector<8x64xf32>, vector<64x256xf32>, vector<8x256xf32> -> vector<8x256xf32>
    %213 = arith.addf %211, %212 : vector<8x256xf32>
    %214 = vector.extract_strided_slice %213 {offsets = [0, 0], sizes = [8, 192], strides = [1, 1]} : vector<8x256xf32> to vector<8x192xf32>
    %215 = arith.negf %214 : vector<8x192xf32>
    %216 = math.exp %215 : vector<8x192xf32>
    %cst_48 = arith.constant 1.000000e+00 : f32
    %217 = vector.broadcast %cst_48 : f32 to vector<8x192xf32>
    %218 = arith.addf %217, %216 : vector<8x192xf32>
    %219 = arith.divf %217, %218 : vector<8x192xf32>
    %220 = vector.extract_strided_slice %213 {offsets = [0, 192], sizes = [8, 64], strides = [1, 1]} : vector<8x256xf32> to vector<8x64xf32>
    %221 = math.tanh %220 : vector<8x64xf32>
    %222 = vector.extract_strided_slice %219 {offsets = [0, 64], sizes = [8, 64], strides = [1, 1]} : vector<8x192xf32> to vector<8x64xf32>
    %223 = arith.mulf %222, %207 : vector<8x64xf32>
    %224 = vector.extract_strided_slice %219 {offsets = [0, 0], sizes = [8, 64], strides = [1, 1]} : vector<8x192xf32> to vector<8x64xf32>
    %225 = arith.mulf %224, %221 : vector<8x64xf32>
    %226 = arith.addf %223, %225 : vector<8x64xf32>
    %227 = vector.extract_strided_slice %219 {offsets = [0, 128], sizes = [8, 64], strides = [1, 1]} : vector<8x192xf32> to vector<8x64xf32>
    %228 = math.tanh %226 : vector<8x64xf32>
    %229 = arith.mulf %227, %228 : vector<8x64xf32>
    %230 = vector.extract_strided_slice %172 {offsets = [24, 0], sizes = [8, 256], strides = [1, 1]} : vector<64x256xf32> to vector<8x256xf32>
    %cst_49 = arith.constant dense<0.000000e+00> : vector<8x256xf32>
    %231 = tpu.matmul %229, %4, %cst_49 {dimension_numbers = #tpu.dot_dimension_numbers<[1], [0], [0], [1], [0, 0, 1, 1], [], []>} : vector<8x64xf32>, vector<64x256xf32>, vector<8x256xf32> -> vector<8x256xf32>
    %232 = arith.addf %230, %231 : vector<8x256xf32>
    %233 = vector.extract_strided_slice %232 {offsets = [0, 0], sizes = [8, 192], strides = [1, 1]} : vector<8x256xf32> to vector<8x192xf32>
    %234 = arith.negf %233 : vector<8x192xf32>
    %235 = math.exp %234 : vector<8x192xf32>
    %cst_50 = arith.constant 1.000000e+00 : f32
    %236 = vector.broadcast %cst_50 : f32 to vector<8x192xf32>
    %237 = arith.addf %236, %235 : vector<8x192xf32>
    %238 = arith.divf %236, %237 : vector<8x192xf32>
    %239 = vector.extract_strided_slice %232 {offsets = [0, 192], sizes = [8, 64], strides = [1, 1]} : vector<8x256xf32> to vector<8x64xf32>
    %240 = math.tanh %239 : vector<8x64xf32>
    %241 = vector.extract_strided_slice %238 {offsets = [0, 64], sizes = [8, 64], strides = [1, 1]} : vector<8x192xf32> to vector<8x64xf32>
    %242 = arith.mulf %241, %226 : vector<8x64xf32>
    %243 = vector.extract_strided_slice %238 {offsets = [0, 0], sizes = [8, 64], strides = [1, 1]} : vector<8x192xf32> to vector<8x64xf32>
    %244 = arith.mulf %243, %240 : vector<8x64xf32>
    %245 = arith.addf %242, %244 : vector<8x64xf32>
    %246 = vector.extract_strided_slice %238 {offsets = [0, 128], sizes = [8, 64], strides = [1, 1]} : vector<8x192xf32> to vector<8x64xf32>
    %247 = math.tanh %245 : vector<8x64xf32>
    %248 = arith.mulf %246, %247 : vector<8x64xf32>
    %249 = vector.extract_strided_slice %172 {offsets = [32, 0], sizes = [8, 256], strides = [1, 1]} : vector<64x256xf32> to vector<8x256xf32>
    %cst_51 = arith.constant dense<0.000000e+00> : vector<8x256xf32>
    %250 = tpu.matmul %248, %4, %cst_51 {dimension_numbers = #tpu.dot_dimension_numbers<[1], [0], [0], [1], [0, 0, 1, 1], [], []>} : vector<8x64xf32>, vector<64x256xf32>, vector<8x256xf32> -> vector<8x256xf32>
    %251 = arith.addf %249, %250 : vector<8x256xf32>
    %252 = vector.extract_strided_slice %251 {offsets = [0, 0], sizes = [8, 192], strides = [1, 1]} : vector<8x256xf32> to vector<8x192xf32>
    %253 = arith.negf %252 : vector<8x192xf32>
    %254 = math.exp %253 : vector<8x192xf32>
    %cst_52 = arith.constant 1.000000e+00 : f32
    %255 = vector.broadcast %cst_52 : f32 to vector<8x192xf32>
    %256 = arith.addf %255, %254 : vector<8x192xf32>
    %257 = arith.divf %255, %256 : vector<8x192xf32>
    %258 = vector.extract_strided_slice %251 {offsets = [0, 192], sizes = [8, 64], strides = [1, 1]} : vector<8x256xf32> to vector<8x64xf32>
    %259 = math.tanh %258 : vector<8x64xf32>
    %260 = vector.extract_strided_slice %257 {offsets = [0, 64], sizes = [8, 64], strides = [1, 1]} : vector<8x192xf32> to vector<8x64xf32>
    %261 = arith.mulf %260, %245 : vector<8x64xf32>
    %262 = vector.extract_strided_slice %257 {offsets = [0, 0], sizes = [8, 64], strides = [1, 1]} : vector<8x192xf32> to vector<8x64xf32>
    %263 = arith.mulf %262, %259 : vector<8x64xf32>
    %264 = arith.addf %261, %263 : vector<8x64xf32>
    %265 = vector.extract_strided_slice %257 {offsets = [0, 128], sizes = [8, 64], strides = [1, 1]} : vector<8x192xf32> to vector<8x64xf32>
    %266 = math.tanh %264 : vector<8x64xf32>
    %267 = arith.mulf %265, %266 : vector<8x64xf32>
    %268 = vector.extract_strided_slice %172 {offsets = [40, 0], sizes = [8, 256], strides = [1, 1]} : vector<64x256xf32> to vector<8x256xf32>
    %cst_53 = arith.constant dense<0.000000e+00> : vector<8x256xf32>
    %269 = tpu.matmul %267, %4, %cst_53 {dimension_numbers = #tpu.dot_dimension_numbers<[1], [0], [0], [1], [0, 0, 1, 1], [], []>} : vector<8x64xf32>, vector<64x256xf32>, vector<8x256xf32> -> vector<8x256xf32>
    %270 = arith.addf %268, %269 : vector<8x256xf32>
    %271 = vector.extract_strided_slice %270 {offsets = [0, 0], sizes = [8, 192], strides = [1, 1]} : vector<8x256xf32> to vector<8x192xf32>
    %272 = arith.negf %271 : vector<8x192xf32>
    %273 = math.exp %272 : vector<8x192xf32>
    %cst_54 = arith.constant 1.000000e+00 : f32
    %274 = vector.broadcast %cst_54 : f32 to vector<8x192xf32>
    %275 = arith.addf %274, %273 : vector<8x192xf32>
    %276 = arith.divf %274, %275 : vector<8x192xf32>
    %277 = vector.extract_strided_slice %270 {offsets = [0, 192], sizes = [8, 64], strides = [1, 1]} : vector<8x256xf32> to vector<8x64xf32>
    %278 = math.tanh %277 : vector<8x64xf32>
    %279 = vector.extract_strided_slice %276 {offsets = [0, 64], sizes = [8, 64], strides = [1, 1]} : vector<8x192xf32> to vector<8x64xf32>
    %280 = arith.mulf %279, %264 : vector<8x64xf32>
    %281 = vector.extract_strided_slice %276 {offsets = [0, 0], sizes = [8, 64], strides = [1, 1]} : vector<8x192xf32> to vector<8x64xf32>
    %282 = arith.mulf %281, %278 : vector<8x64xf32>
    %283 = arith.addf %280, %282 : vector<8x64xf32>
    %284 = vector.extract_strided_slice %276 {offsets = [0, 128], sizes = [8, 64], strides = [1, 1]} : vector<8x192xf32> to vector<8x64xf32>
    %285 = math.tanh %283 : vector<8x64xf32>
    %286 = arith.mulf %284, %285 : vector<8x64xf32>
    %287 = vector.extract_strided_slice %172 {offsets = [48, 0], sizes = [8, 256], strides = [1, 1]} : vector<64x256xf32> to vector<8x256xf32>
    %cst_55 = arith.constant dense<0.000000e+00> : vector<8x256xf32>
    %288 = tpu.matmul %286, %4, %cst_55 {dimension_numbers = #tpu.dot_dimension_numbers<[1], [0], [0], [1], [0, 0, 1, 1], [], []>} : vector<8x64xf32>, vector<64x256xf32>, vector<8x256xf32> -> vector<8x256xf32>
    %289 = arith.addf %287, %288 : vector<8x256xf32>
    %290 = vector.extract_strided_slice %289 {offsets = [0, 0], sizes = [8, 192], strides = [1, 1]} : vector<8x256xf32> to vector<8x192xf32>
    %291 = arith.negf %290 : vector<8x192xf32>
    %292 = math.exp %291 : vector<8x192xf32>
    %cst_56 = arith.constant 1.000000e+00 : f32
    %293 = vector.broadcast %cst_56 : f32 to vector<8x192xf32>
    %294 = arith.addf %293, %292 : vector<8x192xf32>
    %295 = arith.divf %293, %294 : vector<8x192xf32>
    %296 = vector.extract_strided_slice %289 {offsets = [0, 192], sizes = [8, 64], strides = [1, 1]} : vector<8x256xf32> to vector<8x64xf32>
    %297 = math.tanh %296 : vector<8x64xf32>
    %298 = vector.extract_strided_slice %295 {offsets = [0, 64], sizes = [8, 64], strides = [1, 1]} : vector<8x192xf32> to vector<8x64xf32>
    %299 = arith.mulf %298, %283 : vector<8x64xf32>
    %300 = vector.extract_strided_slice %295 {offsets = [0, 0], sizes = [8, 64], strides = [1, 1]} : vector<8x192xf32> to vector<8x64xf32>
    %301 = arith.mulf %300, %297 : vector<8x64xf32>
    %302 = arith.addf %299, %301 : vector<8x64xf32>
    %303 = vector.extract_strided_slice %295 {offsets = [0, 128], sizes = [8, 64], strides = [1, 1]} : vector<8x192xf32> to vector<8x64xf32>
    %304 = math.tanh %302 : vector<8x64xf32>
    %305 = arith.mulf %303, %304 : vector<8x64xf32>
    %306 = vector.extract_strided_slice %172 {offsets = [56, 0], sizes = [8, 256], strides = [1, 1]} : vector<64x256xf32> to vector<8x256xf32>
    %cst_57 = arith.constant dense<0.000000e+00> : vector<8x256xf32>
    %307 = tpu.matmul %305, %4, %cst_57 {dimension_numbers = #tpu.dot_dimension_numbers<[1], [0], [0], [1], [0, 0, 1, 1], [], []>} : vector<8x64xf32>, vector<64x256xf32>, vector<8x256xf32> -> vector<8x256xf32>
    %308 = arith.addf %306, %307 : vector<8x256xf32>
    %309 = vector.extract_strided_slice %308 {offsets = [0, 0], sizes = [8, 192], strides = [1, 1]} : vector<8x256xf32> to vector<8x192xf32>
    %310 = arith.negf %309 : vector<8x192xf32>
    %311 = math.exp %310 : vector<8x192xf32>
    %cst_58 = arith.constant 1.000000e+00 : f32
    %312 = vector.broadcast %cst_58 : f32 to vector<8x192xf32>
    %313 = arith.addf %312, %311 : vector<8x192xf32>
    %314 = arith.divf %312, %313 : vector<8x192xf32>
    %315 = vector.extract_strided_slice %308 {offsets = [0, 192], sizes = [8, 64], strides = [1, 1]} : vector<8x256xf32> to vector<8x64xf32>
    %316 = math.tanh %315 : vector<8x64xf32>
    %317 = vector.extract_strided_slice %314 {offsets = [0, 64], sizes = [8, 64], strides = [1, 1]} : vector<8x192xf32> to vector<8x64xf32>
    %318 = arith.mulf %317, %302 : vector<8x64xf32>
    %319 = vector.extract_strided_slice %314 {offsets = [0, 0], sizes = [8, 64], strides = [1, 1]} : vector<8x192xf32> to vector<8x64xf32>
    %320 = arith.mulf %319, %316 : vector<8x64xf32>
    %321 = arith.addf %318, %320 : vector<8x64xf32>
    %322 = vector.extract_strided_slice %314 {offsets = [0, 128], sizes = [8, 64], strides = [1, 1]} : vector<8x192xf32> to vector<8x64xf32>
    %323 = math.tanh %321 : vector<8x64xf32>
    %324 = arith.mulf %322, %323 : vector<8x64xf32>
    %325 = tpu.concatenate %191, %210, %229, %248, %267, %286, %305, %324 in 0 : vector<8x64xf32>, vector<8x64xf32>, vector<8x64xf32>, vector<8x64xf32>, vector<8x64xf32>, vector<8x64xf32>, vector<8x64xf32>, vector<8x64xf32> -> vector<64x64xf32>
    %326 = vector.extract_strided_slice %325 {offsets = [0, 0], sizes = [64, 32], strides = [1, 1]} : vector<64x64xf32> to vector<64x32xf32>
    %327 = vector.extract_strided_slice %325 {offsets = [0, 32], sizes = [64, 32], strides = [1, 1]} : vector<64x64xf32> to vector<64x32xf32>
    %328 = tpu.concatenate %326, %327 in 0 : vector<64x32xf32>, vector<64x32xf32> -> vector<128x32xf32>
    %c0_59 = arith.constant 0 : index
    %c0_60 = arith.constant 0 : index
    %329 = vector.load %arg0[%c0_59, %c0_60] : memref<8x48xf32, #tpu.memory_space<vmem>>, vector<8x48xf32>
    %c0_61 = arith.constant 0 : index
    %c0_62 = arith.constant 0 : index
    %330 = vector.load %arg1[%c0_61, %c0_62] : memref<48x64xf32, #tpu.memory_space<vmem>>, vector<48x64xf32>
    %cst_63 = arith.constant dense<0.000000e+00> : vector<8x64xf32>
    %331 = tpu.matmul %329, %330, %cst_63 {dimension_numbers = #tpu.dot_dimension_numbers<[1], [0], [0], [1], [0, 0, 1, 1], [], []>} : vector<8x48xf32>, vector<48x64xf32>, vector<8x64xf32> -> vector<8x64xf32>
    %c0_64 = arith.constant 0 : index
    %c0_65 = arith.constant 0 : index
    %332 = vector.load %arg2[%c0_64, %c0_65] : memref<1x64xf32, #tpu.memory_space<vmem>>, vector<1x64xf32>
    %333 = vector.broadcast %332 : vector<1x64xf32> to vector<8x64xf32>
    %334 = arith.addf %331, %333 : vector<8x64xf32>
    %335 = arith.addf %168, %334 : vector<8x64xf32>
    %c0_66 = arith.constant 0 : index
    %c0_67 = arith.constant 0 : index
    %336 = vector.load %arg4[%c0_66, %c0_67] : memref<64x4xf32, #tpu.memory_space<vmem>>, vector<64x4xf32>
    %cst_68 = arith.constant dense<0.000000e+00> : vector<64x256xf32>
    %337 = tpu.matmul %336, %6, %cst_68 {dimension_numbers = #tpu.dot_dimension_numbers<[1], [0], [0], [1], [0, 0, 1, 1], [], []>} : vector<64x4xf32>, vector<4x256xf32>, vector<64x256xf32> -> vector<64x256xf32>
    %338 = vector.broadcast %8 : vector<1x256xf32> to vector<64x256xf32>
    %339 = arith.addf %337, %338 : vector<64x256xf32>
    %340 = vector.extract_strided_slice %339 {offsets = [0, 0], sizes = [8, 256], strides = [1, 1]} : vector<64x256xf32> to vector<8x256xf32>
    %cst_69 = arith.constant dense<0.000000e+00> : vector<8x256xf32>
    %341 = tpu.matmul %335, %7, %cst_69 {dimension_numbers = #tpu.dot_dimension_numbers<[1], [0], [0], [1], [0, 0, 1, 1], [], []>} : vector<8x64xf32>, vector<64x256xf32>, vector<8x256xf32> -> vector<8x256xf32>
    %342 = arith.addf %340, %341 : vector<8x256xf32>
    %343 = vector.extract_strided_slice %342 {offsets = [0, 0], sizes = [8, 192], strides = [1, 1]} : vector<8x256xf32> to vector<8x192xf32>
    %344 = arith.negf %343 : vector<8x192xf32>
    %345 = math.exp %344 : vector<8x192xf32>
    %cst_70 = arith.constant 1.000000e+00 : f32
    %346 = vector.broadcast %cst_70 : f32 to vector<8x192xf32>
    %347 = arith.addf %346, %345 : vector<8x192xf32>
    %348 = arith.divf %346, %347 : vector<8x192xf32>
    %349 = vector.extract_strided_slice %342 {offsets = [0, 192], sizes = [8, 64], strides = [1, 1]} : vector<8x256xf32> to vector<8x64xf32>
    %350 = math.tanh %349 : vector<8x64xf32>
    %351 = vector.extract_strided_slice %348 {offsets = [0, 64], sizes = [8, 64], strides = [1, 1]} : vector<8x192xf32> to vector<8x64xf32>
    %352 = arith.mulf %351, %165 : vector<8x64xf32>
    %353 = vector.extract_strided_slice %348 {offsets = [0, 0], sizes = [8, 64], strides = [1, 1]} : vector<8x192xf32> to vector<8x64xf32>
    %354 = arith.mulf %353, %350 : vector<8x64xf32>
    %355 = arith.addf %352, %354 : vector<8x64xf32>
    %356 = vector.extract_strided_slice %348 {offsets = [0, 128], sizes = [8, 64], strides = [1, 1]} : vector<8x192xf32> to vector<8x64xf32>
    %357 = math.tanh %355 : vector<8x64xf32>
    %358 = arith.mulf %356, %357 : vector<8x64xf32>
    %359 = vector.extract_strided_slice %339 {offsets = [8, 0], sizes = [8, 256], strides = [1, 1]} : vector<64x256xf32> to vector<8x256xf32>
    %cst_71 = arith.constant dense<0.000000e+00> : vector<8x256xf32>
    %360 = tpu.matmul %358, %7, %cst_71 {dimension_numbers = #tpu.dot_dimension_numbers<[1], [0], [0], [1], [0, 0, 1, 1], [], []>} : vector<8x64xf32>, vector<64x256xf32>, vector<8x256xf32> -> vector<8x256xf32>
    %361 = arith.addf %359, %360 : vector<8x256xf32>
    %362 = vector.extract_strided_slice %361 {offsets = [0, 0], sizes = [8, 192], strides = [1, 1]} : vector<8x256xf32> to vector<8x192xf32>
    %363 = arith.negf %362 : vector<8x192xf32>
    %364 = math.exp %363 : vector<8x192xf32>
    %cst_72 = arith.constant 1.000000e+00 : f32
    %365 = vector.broadcast %cst_72 : f32 to vector<8x192xf32>
    %366 = arith.addf %365, %364 : vector<8x192xf32>
    %367 = arith.divf %365, %366 : vector<8x192xf32>
    %368 = vector.extract_strided_slice %361 {offsets = [0, 192], sizes = [8, 64], strides = [1, 1]} : vector<8x256xf32> to vector<8x64xf32>
    %369 = math.tanh %368 : vector<8x64xf32>
    %370 = vector.extract_strided_slice %367 {offsets = [0, 64], sizes = [8, 64], strides = [1, 1]} : vector<8x192xf32> to vector<8x64xf32>
    %371 = arith.mulf %370, %355 : vector<8x64xf32>
    %372 = vector.extract_strided_slice %367 {offsets = [0, 0], sizes = [8, 64], strides = [1, 1]} : vector<8x192xf32> to vector<8x64xf32>
    %373 = arith.mulf %372, %369 : vector<8x64xf32>
    %374 = arith.addf %371, %373 : vector<8x64xf32>
    %375 = vector.extract_strided_slice %367 {offsets = [0, 128], sizes = [8, 64], strides = [1, 1]} : vector<8x192xf32> to vector<8x64xf32>
    %376 = math.tanh %374 : vector<8x64xf32>
    %377 = arith.mulf %375, %376 : vector<8x64xf32>
    %378 = vector.extract_strided_slice %339 {offsets = [16, 0], sizes = [8, 256], strides = [1, 1]} : vector<64x256xf32> to vector<8x256xf32>
    %cst_73 = arith.constant dense<0.000000e+00> : vector<8x256xf32>
    %379 = tpu.matmul %377, %7, %cst_73 {dimension_numbers = #tpu.dot_dimension_numbers<[1], [0], [0], [1], [0, 0, 1, 1], [], []>} : vector<8x64xf32>, vector<64x256xf32>, vector<8x256xf32> -> vector<8x256xf32>
    %380 = arith.addf %378, %379 : vector<8x256xf32>
    %381 = vector.extract_strided_slice %380 {offsets = [0, 0], sizes = [8, 192], strides = [1, 1]} : vector<8x256xf32> to vector<8x192xf32>
    %382 = arith.negf %381 : vector<8x192xf32>
    %383 = math.exp %382 : vector<8x192xf32>
    %cst_74 = arith.constant 1.000000e+00 : f32
    %384 = vector.broadcast %cst_74 : f32 to vector<8x192xf32>
    %385 = arith.addf %384, %383 : vector<8x192xf32>
    %386 = arith.divf %384, %385 : vector<8x192xf32>
    %387 = vector.extract_strided_slice %380 {offsets = [0, 192], sizes = [8, 64], strides = [1, 1]} : vector<8x256xf32> to vector<8x64xf32>
    %388 = math.tanh %387 : vector<8x64xf32>
    %389 = vector.extract_strided_slice %386 {offsets = [0, 64], sizes = [8, 64], strides = [1, 1]} : vector<8x192xf32> to vector<8x64xf32>
    %390 = arith.mulf %389, %374 : vector<8x64xf32>
    %391 = vector.extract_strided_slice %386 {offsets = [0, 0], sizes = [8, 64], strides = [1, 1]} : vector<8x192xf32> to vector<8x64xf32>
    %392 = arith.mulf %391, %388 : vector<8x64xf32>
    %393 = arith.addf %390, %392 : vector<8x64xf32>
    %394 = vector.extract_strided_slice %386 {offsets = [0, 128], sizes = [8, 64], strides = [1, 1]} : vector<8x192xf32> to vector<8x64xf32>
    %395 = math.tanh %393 : vector<8x64xf32>
    %396 = arith.mulf %394, %395 : vector<8x64xf32>
    %397 = vector.extract_strided_slice %339 {offsets = [24, 0], sizes = [8, 256], strides = [1, 1]} : vector<64x256xf32> to vector<8x256xf32>
    %cst_75 = arith.constant dense<0.000000e+00> : vector<8x256xf32>
    %398 = tpu.matmul %396, %7, %cst_75 {dimension_numbers = #tpu.dot_dimension_numbers<[1], [0], [0], [1], [0, 0, 1, 1], [], []>} : vector<8x64xf32>, vector<64x256xf32>, vector<8x256xf32> -> vector<8x256xf32>
    %399 = arith.addf %397, %398 : vector<8x256xf32>
    %400 = vector.extract_strided_slice %399 {offsets = [0, 0], sizes = [8, 192], strides = [1, 1]} : vector<8x256xf32> to vector<8x192xf32>
    %401 = arith.negf %400 : vector<8x192xf32>
    %402 = math.exp %401 : vector<8x192xf32>
    %cst_76 = arith.constant 1.000000e+00 : f32
    %403 = vector.broadcast %cst_76 : f32 to vector<8x192xf32>
    %404 = arith.addf %403, %402 : vector<8x192xf32>
    %405 = arith.divf %403, %404 : vector<8x192xf32>
    %406 = vector.extract_strided_slice %399 {offsets = [0, 192], sizes = [8, 64], strides = [1, 1]} : vector<8x256xf32> to vector<8x64xf32>
    %407 = math.tanh %406 : vector<8x64xf32>
    %408 = vector.extract_strided_slice %405 {offsets = [0, 64], sizes = [8, 64], strides = [1, 1]} : vector<8x192xf32> to vector<8x64xf32>
    %409 = arith.mulf %408, %393 : vector<8x64xf32>
    %410 = vector.extract_strided_slice %405 {offsets = [0, 0], sizes = [8, 64], strides = [1, 1]} : vector<8x192xf32> to vector<8x64xf32>
    %411 = arith.mulf %410, %407 : vector<8x64xf32>
    %412 = arith.addf %409, %411 : vector<8x64xf32>
    %413 = vector.extract_strided_slice %405 {offsets = [0, 128], sizes = [8, 64], strides = [1, 1]} : vector<8x192xf32> to vector<8x64xf32>
    %414 = math.tanh %412 : vector<8x64xf32>
    %415 = arith.mulf %413, %414 : vector<8x64xf32>
    %416 = vector.extract_strided_slice %339 {offsets = [32, 0], sizes = [8, 256], strides = [1, 1]} : vector<64x256xf32> to vector<8x256xf32>
    %cst_77 = arith.constant dense<0.000000e+00> : vector<8x256xf32>
    %417 = tpu.matmul %415, %7, %cst_77 {dimension_numbers = #tpu.dot_dimension_numbers<[1], [0], [0], [1], [0, 0, 1, 1], [], []>} : vector<8x64xf32>, vector<64x256xf32>, vector<8x256xf32> -> vector<8x256xf32>
    %418 = arith.addf %416, %417 : vector<8x256xf32>
    %419 = vector.extract_strided_slice %418 {offsets = [0, 0], sizes = [8, 192], strides = [1, 1]} : vector<8x256xf32> to vector<8x192xf32>
    %420 = arith.negf %419 : vector<8x192xf32>
    %421 = math.exp %420 : vector<8x192xf32>
    %cst_78 = arith.constant 1.000000e+00 : f32
    %422 = vector.broadcast %cst_78 : f32 to vector<8x192xf32>
    %423 = arith.addf %422, %421 : vector<8x192xf32>
    %424 = arith.divf %422, %423 : vector<8x192xf32>
    %425 = vector.extract_strided_slice %418 {offsets = [0, 192], sizes = [8, 64], strides = [1, 1]} : vector<8x256xf32> to vector<8x64xf32>
    %426 = math.tanh %425 : vector<8x64xf32>
    %427 = vector.extract_strided_slice %424 {offsets = [0, 64], sizes = [8, 64], strides = [1, 1]} : vector<8x192xf32> to vector<8x64xf32>
    %428 = arith.mulf %427, %412 : vector<8x64xf32>
    %429 = vector.extract_strided_slice %424 {offsets = [0, 0], sizes = [8, 64], strides = [1, 1]} : vector<8x192xf32> to vector<8x64xf32>
    %430 = arith.mulf %429, %426 : vector<8x64xf32>
    %431 = arith.addf %428, %430 : vector<8x64xf32>
    %432 = vector.extract_strided_slice %424 {offsets = [0, 128], sizes = [8, 64], strides = [1, 1]} : vector<8x192xf32> to vector<8x64xf32>
    %433 = math.tanh %431 : vector<8x64xf32>
    %434 = arith.mulf %432, %433 : vector<8x64xf32>
    %435 = vector.extract_strided_slice %339 {offsets = [40, 0], sizes = [8, 256], strides = [1, 1]} : vector<64x256xf32> to vector<8x256xf32>
    %cst_79 = arith.constant dense<0.000000e+00> : vector<8x256xf32>
    %436 = tpu.matmul %434, %7, %cst_79 {dimension_numbers = #tpu.dot_dimension_numbers<[1], [0], [0], [1], [0, 0, 1, 1], [], []>} : vector<8x64xf32>, vector<64x256xf32>, vector<8x256xf32> -> vector<8x256xf32>
    %437 = arith.addf %435, %436 : vector<8x256xf32>
    %438 = vector.extract_strided_slice %437 {offsets = [0, 0], sizes = [8, 192], strides = [1, 1]} : vector<8x256xf32> to vector<8x192xf32>
    %439 = arith.negf %438 : vector<8x192xf32>
    %440 = math.exp %439 : vector<8x192xf32>
    %cst_80 = arith.constant 1.000000e+00 : f32
    %441 = vector.broadcast %cst_80 : f32 to vector<8x192xf32>
    %442 = arith.addf %441, %440 : vector<8x192xf32>
    %443 = arith.divf %441, %442 : vector<8x192xf32>
    %444 = vector.extract_strided_slice %437 {offsets = [0, 192], sizes = [8, 64], strides = [1, 1]} : vector<8x256xf32> to vector<8x64xf32>
    %445 = math.tanh %444 : vector<8x64xf32>
    %446 = vector.extract_strided_slice %443 {offsets = [0, 64], sizes = [8, 64], strides = [1, 1]} : vector<8x192xf32> to vector<8x64xf32>
    %447 = arith.mulf %446, %431 : vector<8x64xf32>
    %448 = vector.extract_strided_slice %443 {offsets = [0, 0], sizes = [8, 64], strides = [1, 1]} : vector<8x192xf32> to vector<8x64xf32>
    %449 = arith.mulf %448, %445 : vector<8x64xf32>
    %450 = arith.addf %447, %449 : vector<8x64xf32>
    %451 = vector.extract_strided_slice %443 {offsets = [0, 128], sizes = [8, 64], strides = [1, 1]} : vector<8x192xf32> to vector<8x64xf32>
    %452 = math.tanh %450 : vector<8x64xf32>
    %453 = arith.mulf %451, %452 : vector<8x64xf32>
    %454 = vector.extract_strided_slice %339 {offsets = [48, 0], sizes = [8, 256], strides = [1, 1]} : vector<64x256xf32> to vector<8x256xf32>
    %cst_81 = arith.constant dense<0.000000e+00> : vector<8x256xf32>
    %455 = tpu.matmul %453, %7, %cst_81 {dimension_numbers = #tpu.dot_dimension_numbers<[1], [0], [0], [1], [0, 0, 1, 1], [], []>} : vector<8x64xf32>, vector<64x256xf32>, vector<8x256xf32> -> vector<8x256xf32>
    %456 = arith.addf %454, %455 : vector<8x256xf32>
    %457 = vector.extract_strided_slice %456 {offsets = [0, 0], sizes = [8, 192], strides = [1, 1]} : vector<8x256xf32> to vector<8x192xf32>
    %458 = arith.negf %457 : vector<8x192xf32>
    %459 = math.exp %458 : vector<8x192xf32>
    %cst_82 = arith.constant 1.000000e+00 : f32
    %460 = vector.broadcast %cst_82 : f32 to vector<8x192xf32>
    %461 = arith.addf %460, %459 : vector<8x192xf32>
    %462 = arith.divf %460, %461 : vector<8x192xf32>
    %463 = vector.extract_strided_slice %456 {offsets = [0, 192], sizes = [8, 64], strides = [1, 1]} : vector<8x256xf32> to vector<8x64xf32>
    %464 = math.tanh %463 : vector<8x64xf32>
    %465 = vector.extract_strided_slice %462 {offsets = [0, 64], sizes = [8, 64], strides = [1, 1]} : vector<8x192xf32> to vector<8x64xf32>
    %466 = arith.mulf %465, %450 : vector<8x64xf32>
    %467 = vector.extract_strided_slice %462 {offsets = [0, 0], sizes = [8, 64], strides = [1, 1]} : vector<8x192xf32> to vector<8x64xf32>
    %468 = arith.mulf %467, %464 : vector<8x64xf32>
    %469 = arith.addf %466, %468 : vector<8x64xf32>
    %470 = vector.extract_strided_slice %462 {offsets = [0, 128], sizes = [8, 64], strides = [1, 1]} : vector<8x192xf32> to vector<8x64xf32>
    %471 = math.tanh %469 : vector<8x64xf32>
    %472 = arith.mulf %470, %471 : vector<8x64xf32>
    %473 = vector.extract_strided_slice %339 {offsets = [56, 0], sizes = [8, 256], strides = [1, 1]} : vector<64x256xf32> to vector<8x256xf32>
    %cst_83 = arith.constant dense<0.000000e+00> : vector<8x256xf32>
    %474 = tpu.matmul %472, %7, %cst_83 {dimension_numbers = #tpu.dot_dimension_numbers<[1], [0], [0], [1], [0, 0, 1, 1], [], []>} : vector<8x64xf32>, vector<64x256xf32>, vector<8x256xf32> -> vector<8x256xf32>
    %475 = arith.addf %473, %474 : vector<8x256xf32>
    %476 = vector.extract_strided_slice %475 {offsets = [0, 0], sizes = [8, 192], strides = [1, 1]} : vector<8x256xf32> to vector<8x192xf32>
    %477 = arith.negf %476 : vector<8x192xf32>
    %478 = math.exp %477 : vector<8x192xf32>
    %cst_84 = arith.constant 1.000000e+00 : f32
    %479 = vector.broadcast %cst_84 : f32 to vector<8x192xf32>
    %480 = arith.addf %479, %478 : vector<8x192xf32>
    %481 = arith.divf %479, %480 : vector<8x192xf32>
    %482 = vector.extract_strided_slice %475 {offsets = [0, 192], sizes = [8, 64], strides = [1, 1]} : vector<8x256xf32> to vector<8x64xf32>
    %483 = math.tanh %482 : vector<8x64xf32>
    %484 = vector.extract_strided_slice %481 {offsets = [0, 64], sizes = [8, 64], strides = [1, 1]} : vector<8x192xf32> to vector<8x64xf32>
    %485 = arith.mulf %484, %469 : vector<8x64xf32>
    %486 = vector.extract_strided_slice %481 {offsets = [0, 0], sizes = [8, 64], strides = [1, 1]} : vector<8x192xf32> to vector<8x64xf32>
    %487 = arith.mulf %486, %483 : vector<8x64xf32>
    %488 = arith.addf %485, %487 : vector<8x64xf32>
    %489 = vector.extract_strided_slice %481 {offsets = [0, 128], sizes = [8, 64], strides = [1, 1]} : vector<8x192xf32> to vector<8x64xf32>
    %490 = math.tanh %488 : vector<8x64xf32>
    %491 = arith.mulf %489, %490 : vector<8x64xf32>
    %492 = tpu.concatenate %358, %377, %396, %415, %434, %453, %472, %491 in 0 : vector<8x64xf32>, vector<8x64xf32>, vector<8x64xf32>, vector<8x64xf32>, vector<8x64xf32>, vector<8x64xf32>, vector<8x64xf32>, vector<8x64xf32> -> vector<64x64xf32>
    %cst_85 = arith.constant dense<0.000000e+00> : vector<64x256xf32>
    %493 = tpu.matmul %492, %9, %cst_85 {dimension_numbers = #tpu.dot_dimension_numbers<[1], [0], [0], [1], [0, 0, 1, 1], [], []>} : vector<64x64xf32>, vector<64x256xf32>, vector<64x256xf32> -> vector<64x256xf32>
    %494 = vector.broadcast %11 : vector<1x256xf32> to vector<64x256xf32>
    %495 = arith.addf %493, %494 : vector<64x256xf32>
    %496 = vector.extract_strided_slice %495 {offsets = [0, 0], sizes = [8, 256], strides = [1, 1]} : vector<64x256xf32> to vector<8x256xf32>
    %cst_86 = arith.constant dense<0.000000e+00> : vector<8x256xf32>
    %497 = tpu.matmul %324, %10, %cst_86 {dimension_numbers = #tpu.dot_dimension_numbers<[1], [0], [0], [1], [0, 0, 1, 1], [], []>} : vector<8x64xf32>, vector<64x256xf32>, vector<8x256xf32> -> vector<8x256xf32>
    %498 = arith.addf %496, %497 : vector<8x256xf32>
    %499 = vector.extract_strided_slice %498 {offsets = [0, 0], sizes = [8, 192], strides = [1, 1]} : vector<8x256xf32> to vector<8x192xf32>
    %500 = arith.negf %499 : vector<8x192xf32>
    %501 = math.exp %500 : vector<8x192xf32>
    %cst_87 = arith.constant 1.000000e+00 : f32
    %502 = vector.broadcast %cst_87 : f32 to vector<8x192xf32>
    %503 = arith.addf %502, %501 : vector<8x192xf32>
    %504 = arith.divf %502, %503 : vector<8x192xf32>
    %505 = vector.extract_strided_slice %498 {offsets = [0, 192], sizes = [8, 64], strides = [1, 1]} : vector<8x256xf32> to vector<8x64xf32>
    %506 = math.tanh %505 : vector<8x64xf32>
    %507 = vector.extract_strided_slice %504 {offsets = [0, 64], sizes = [8, 64], strides = [1, 1]} : vector<8x192xf32> to vector<8x64xf32>
    %508 = arith.mulf %507, %321 : vector<8x64xf32>
    %509 = vector.extract_strided_slice %504 {offsets = [0, 0], sizes = [8, 64], strides = [1, 1]} : vector<8x192xf32> to vector<8x64xf32>
    %510 = arith.mulf %509, %506 : vector<8x64xf32>
    %511 = arith.addf %508, %510 : vector<8x64xf32>
    %512 = vector.extract_strided_slice %504 {offsets = [0, 128], sizes = [8, 64], strides = [1, 1]} : vector<8x192xf32> to vector<8x64xf32>
    %513 = math.tanh %511 : vector<8x64xf32>
    %514 = arith.mulf %512, %513 : vector<8x64xf32>
    %515 = vector.extract_strided_slice %495 {offsets = [8, 0], sizes = [8, 256], strides = [1, 1]} : vector<64x256xf32> to vector<8x256xf32>
    %cst_88 = arith.constant dense<0.000000e+00> : vector<8x256xf32>
    %516 = tpu.matmul %514, %10, %cst_88 {dimension_numbers = #tpu.dot_dimension_numbers<[1], [0], [0], [1], [0, 0, 1, 1], [], []>} : vector<8x64xf32>, vector<64x256xf32>, vector<8x256xf32> -> vector<8x256xf32>
    %517 = arith.addf %515, %516 : vector<8x256xf32>
    %518 = vector.extract_strided_slice %517 {offsets = [0, 0], sizes = [8, 192], strides = [1, 1]} : vector<8x256xf32> to vector<8x192xf32>
    %519 = arith.negf %518 : vector<8x192xf32>
    %520 = math.exp %519 : vector<8x192xf32>
    %cst_89 = arith.constant 1.000000e+00 : f32
    %521 = vector.broadcast %cst_89 : f32 to vector<8x192xf32>
    %522 = arith.addf %521, %520 : vector<8x192xf32>
    %523 = arith.divf %521, %522 : vector<8x192xf32>
    %524 = vector.extract_strided_slice %517 {offsets = [0, 192], sizes = [8, 64], strides = [1, 1]} : vector<8x256xf32> to vector<8x64xf32>
    %525 = math.tanh %524 : vector<8x64xf32>
    %526 = vector.extract_strided_slice %523 {offsets = [0, 64], sizes = [8, 64], strides = [1, 1]} : vector<8x192xf32> to vector<8x64xf32>
    %527 = arith.mulf %526, %511 : vector<8x64xf32>
    %528 = vector.extract_strided_slice %523 {offsets = [0, 0], sizes = [8, 64], strides = [1, 1]} : vector<8x192xf32> to vector<8x64xf32>
    %529 = arith.mulf %528, %525 : vector<8x64xf32>
    %530 = arith.addf %527, %529 : vector<8x64xf32>
    %531 = vector.extract_strided_slice %523 {offsets = [0, 128], sizes = [8, 64], strides = [1, 1]} : vector<8x192xf32> to vector<8x64xf32>
    %532 = math.tanh %530 : vector<8x64xf32>
    %533 = arith.mulf %531, %532 : vector<8x64xf32>
    %534 = vector.extract_strided_slice %495 {offsets = [16, 0], sizes = [8, 256], strides = [1, 1]} : vector<64x256xf32> to vector<8x256xf32>
    %cst_90 = arith.constant dense<0.000000e+00> : vector<8x256xf32>
    %535 = tpu.matmul %533, %10, %cst_90 {dimension_numbers = #tpu.dot_dimension_numbers<[1], [0], [0], [1], [0, 0, 1, 1], [], []>} : vector<8x64xf32>, vector<64x256xf32>, vector<8x256xf32> -> vector<8x256xf32>
    %536 = arith.addf %534, %535 : vector<8x256xf32>
    %537 = vector.extract_strided_slice %536 {offsets = [0, 0], sizes = [8, 192], strides = [1, 1]} : vector<8x256xf32> to vector<8x192xf32>
    %538 = arith.negf %537 : vector<8x192xf32>
    %539 = math.exp %538 : vector<8x192xf32>
    %cst_91 = arith.constant 1.000000e+00 : f32
    %540 = vector.broadcast %cst_91 : f32 to vector<8x192xf32>
    %541 = arith.addf %540, %539 : vector<8x192xf32>
    %542 = arith.divf %540, %541 : vector<8x192xf32>
    %543 = vector.extract_strided_slice %536 {offsets = [0, 192], sizes = [8, 64], strides = [1, 1]} : vector<8x256xf32> to vector<8x64xf32>
    %544 = math.tanh %543 : vector<8x64xf32>
    %545 = vector.extract_strided_slice %542 {offsets = [0, 64], sizes = [8, 64], strides = [1, 1]} : vector<8x192xf32> to vector<8x64xf32>
    %546 = arith.mulf %545, %530 : vector<8x64xf32>
    %547 = vector.extract_strided_slice %542 {offsets = [0, 0], sizes = [8, 64], strides = [1, 1]} : vector<8x192xf32> to vector<8x64xf32>
    %548 = arith.mulf %547, %544 : vector<8x64xf32>
    %549 = arith.addf %546, %548 : vector<8x64xf32>
    %550 = vector.extract_strided_slice %542 {offsets = [0, 128], sizes = [8, 64], strides = [1, 1]} : vector<8x192xf32> to vector<8x64xf32>
    %551 = math.tanh %549 : vector<8x64xf32>
    %552 = arith.mulf %550, %551 : vector<8x64xf32>
    %553 = vector.extract_strided_slice %495 {offsets = [24, 0], sizes = [8, 256], strides = [1, 1]} : vector<64x256xf32> to vector<8x256xf32>
    %cst_92 = arith.constant dense<0.000000e+00> : vector<8x256xf32>
    %554 = tpu.matmul %552, %10, %cst_92 {dimension_numbers = #tpu.dot_dimension_numbers<[1], [0], [0], [1], [0, 0, 1, 1], [], []>} : vector<8x64xf32>, vector<64x256xf32>, vector<8x256xf32> -> vector<8x256xf32>
    %555 = arith.addf %553, %554 : vector<8x256xf32>
    %556 = vector.extract_strided_slice %555 {offsets = [0, 0], sizes = [8, 192], strides = [1, 1]} : vector<8x256xf32> to vector<8x192xf32>
    %557 = arith.negf %556 : vector<8x192xf32>
    %558 = math.exp %557 : vector<8x192xf32>
    %cst_93 = arith.constant 1.000000e+00 : f32
    %559 = vector.broadcast %cst_93 : f32 to vector<8x192xf32>
    %560 = arith.addf %559, %558 : vector<8x192xf32>
    %561 = arith.divf %559, %560 : vector<8x192xf32>
    %562 = vector.extract_strided_slice %555 {offsets = [0, 192], sizes = [8, 64], strides = [1, 1]} : vector<8x256xf32> to vector<8x64xf32>
    %563 = math.tanh %562 : vector<8x64xf32>
    %564 = vector.extract_strided_slice %561 {offsets = [0, 64], sizes = [8, 64], strides = [1, 1]} : vector<8x192xf32> to vector<8x64xf32>
    %565 = arith.mulf %564, %549 : vector<8x64xf32>
    %566 = vector.extract_strided_slice %561 {offsets = [0, 0], sizes = [8, 64], strides = [1, 1]} : vector<8x192xf32> to vector<8x64xf32>
    %567 = arith.mulf %566, %563 : vector<8x64xf32>
    %568 = arith.addf %565, %567 : vector<8x64xf32>
    %569 = vector.extract_strided_slice %561 {offsets = [0, 128], sizes = [8, 64], strides = [1, 1]} : vector<8x192xf32> to vector<8x64xf32>
    %570 = math.tanh %568 : vector<8x64xf32>
    %571 = arith.mulf %569, %570 : vector<8x64xf32>
    %572 = vector.extract_strided_slice %495 {offsets = [32, 0], sizes = [8, 256], strides = [1, 1]} : vector<64x256xf32> to vector<8x256xf32>
    %cst_94 = arith.constant dense<0.000000e+00> : vector<8x256xf32>
    %573 = tpu.matmul %571, %10, %cst_94 {dimension_numbers = #tpu.dot_dimension_numbers<[1], [0], [0], [1], [0, 0, 1, 1], [], []>} : vector<8x64xf32>, vector<64x256xf32>, vector<8x256xf32> -> vector<8x256xf32>
    %574 = arith.addf %572, %573 : vector<8x256xf32>
    %575 = vector.extract_strided_slice %574 {offsets = [0, 0], sizes = [8, 192], strides = [1, 1]} : vector<8x256xf32> to vector<8x192xf32>
    %576 = arith.negf %575 : vector<8x192xf32>
    %577 = math.exp %576 : vector<8x192xf32>
    %cst_95 = arith.constant 1.000000e+00 : f32
    %578 = vector.broadcast %cst_95 : f32 to vector<8x192xf32>
    %579 = arith.addf %578, %577 : vector<8x192xf32>
    %580 = arith.divf %578, %579 : vector<8x192xf32>
    %581 = vector.extract_strided_slice %574 {offsets = [0, 192], sizes = [8, 64], strides = [1, 1]} : vector<8x256xf32> to vector<8x64xf32>
    %582 = math.tanh %581 : vector<8x64xf32>
    %583 = vector.extract_strided_slice %580 {offsets = [0, 64], sizes = [8, 64], strides = [1, 1]} : vector<8x192xf32> to vector<8x64xf32>
    %584 = arith.mulf %583, %568 : vector<8x64xf32>
    %585 = vector.extract_strided_slice %580 {offsets = [0, 0], sizes = [8, 64], strides = [1, 1]} : vector<8x192xf32> to vector<8x64xf32>
    %586 = arith.mulf %585, %582 : vector<8x64xf32>
    %587 = arith.addf %584, %586 : vector<8x64xf32>
    %588 = vector.extract_strided_slice %580 {offsets = [0, 128], sizes = [8, 64], strides = [1, 1]} : vector<8x192xf32> to vector<8x64xf32>
    %589 = math.tanh %587 : vector<8x64xf32>
    %590 = arith.mulf %588, %589 : vector<8x64xf32>
    %591 = vector.extract_strided_slice %495 {offsets = [40, 0], sizes = [8, 256], strides = [1, 1]} : vector<64x256xf32> to vector<8x256xf32>
    %cst_96 = arith.constant dense<0.000000e+00> : vector<8x256xf32>
    %592 = tpu.matmul %590, %10, %cst_96 {dimension_numbers = #tpu.dot_dimension_numbers<[1], [0], [0], [1], [0, 0, 1, 1], [], []>} : vector<8x64xf32>, vector<64x256xf32>, vector<8x256xf32> -> vector<8x256xf32>
    %593 = arith.addf %591, %592 : vector<8x256xf32>
    %594 = vector.extract_strided_slice %593 {offsets = [0, 0], sizes = [8, 192], strides = [1, 1]} : vector<8x256xf32> to vector<8x192xf32>
    %595 = arith.negf %594 : vector<8x192xf32>
    %596 = math.exp %595 : vector<8x192xf32>
    %cst_97 = arith.constant 1.000000e+00 : f32
    %597 = vector.broadcast %cst_97 : f32 to vector<8x192xf32>
    %598 = arith.addf %597, %596 : vector<8x192xf32>
    %599 = arith.divf %597, %598 : vector<8x192xf32>
    %600 = vector.extract_strided_slice %593 {offsets = [0, 192], sizes = [8, 64], strides = [1, 1]} : vector<8x256xf32> to vector<8x64xf32>
    %601 = math.tanh %600 : vector<8x64xf32>
    %602 = vector.extract_strided_slice %599 {offsets = [0, 64], sizes = [8, 64], strides = [1, 1]} : vector<8x192xf32> to vector<8x64xf32>
    %603 = arith.mulf %602, %587 : vector<8x64xf32>
    %604 = vector.extract_strided_slice %599 {offsets = [0, 0], sizes = [8, 64], strides = [1, 1]} : vector<8x192xf32> to vector<8x64xf32>
    %605 = arith.mulf %604, %601 : vector<8x64xf32>
    %606 = arith.addf %603, %605 : vector<8x64xf32>
    %607 = vector.extract_strided_slice %599 {offsets = [0, 128], sizes = [8, 64], strides = [1, 1]} : vector<8x192xf32> to vector<8x64xf32>
    %608 = math.tanh %606 : vector<8x64xf32>
    %609 = arith.mulf %607, %608 : vector<8x64xf32>
    %610 = vector.extract_strided_slice %495 {offsets = [48, 0], sizes = [8, 256], strides = [1, 1]} : vector<64x256xf32> to vector<8x256xf32>
    %cst_98 = arith.constant dense<0.000000e+00> : vector<8x256xf32>
    %611 = tpu.matmul %609, %10, %cst_98 {dimension_numbers = #tpu.dot_dimension_numbers<[1], [0], [0], [1], [0, 0, 1, 1], [], []>} : vector<8x64xf32>, vector<64x256xf32>, vector<8x256xf32> -> vector<8x256xf32>
    %612 = arith.addf %610, %611 : vector<8x256xf32>
    %613 = vector.extract_strided_slice %612 {offsets = [0, 0], sizes = [8, 192], strides = [1, 1]} : vector<8x256xf32> to vector<8x192xf32>
    %614 = arith.negf %613 : vector<8x192xf32>
    %615 = math.exp %614 : vector<8x192xf32>
    %cst_99 = arith.constant 1.000000e+00 : f32
    %616 = vector.broadcast %cst_99 : f32 to vector<8x192xf32>
    %617 = arith.addf %616, %615 : vector<8x192xf32>
    %618 = arith.divf %616, %617 : vector<8x192xf32>
    %619 = vector.extract_strided_slice %612 {offsets = [0, 192], sizes = [8, 64], strides = [1, 1]} : vector<8x256xf32> to vector<8x64xf32>
    %620 = math.tanh %619 : vector<8x64xf32>
    %621 = vector.extract_strided_slice %618 {offsets = [0, 64], sizes = [8, 64], strides = [1, 1]} : vector<8x192xf32> to vector<8x64xf32>
    %622 = arith.mulf %621, %606 : vector<8x64xf32>
    %623 = vector.extract_strided_slice %618 {offsets = [0, 0], sizes = [8, 64], strides = [1, 1]} : vector<8x192xf32> to vector<8x64xf32>
    %624 = arith.mulf %623, %620 : vector<8x64xf32>
    %625 = arith.addf %622, %624 : vector<8x64xf32>
    %626 = vector.extract_strided_slice %618 {offsets = [0, 128], sizes = [8, 64], strides = [1, 1]} : vector<8x192xf32> to vector<8x64xf32>
    %627 = math.tanh %625 : vector<8x64xf32>
    %628 = arith.mulf %626, %627 : vector<8x64xf32>
    %629 = vector.extract_strided_slice %495 {offsets = [56, 0], sizes = [8, 256], strides = [1, 1]} : vector<64x256xf32> to vector<8x256xf32>
    %cst_100 = arith.constant dense<0.000000e+00> : vector<8x256xf32>
    %630 = tpu.matmul %628, %10, %cst_100 {dimension_numbers = #tpu.dot_dimension_numbers<[1], [0], [0], [1], [0, 0, 1, 1], [], []>} : vector<8x64xf32>, vector<64x256xf32>, vector<8x256xf32> -> vector<8x256xf32>
    %631 = arith.addf %629, %630 : vector<8x256xf32>
    %632 = vector.extract_strided_slice %631 {offsets = [0, 0], sizes = [8, 192], strides = [1, 1]} : vector<8x256xf32> to vector<8x192xf32>
    %633 = arith.negf %632 : vector<8x192xf32>
    %634 = math.exp %633 : vector<8x192xf32>
    %cst_101 = arith.constant 1.000000e+00 : f32
    %635 = vector.broadcast %cst_101 : f32 to vector<8x192xf32>
    %636 = arith.addf %635, %634 : vector<8x192xf32>
    %637 = arith.divf %635, %636 : vector<8x192xf32>
    %638 = vector.extract_strided_slice %631 {offsets = [0, 192], sizes = [8, 64], strides = [1, 1]} : vector<8x256xf32> to vector<8x64xf32>
    %639 = math.tanh %638 : vector<8x64xf32>
    %640 = vector.extract_strided_slice %637 {offsets = [0, 64], sizes = [8, 64], strides = [1, 1]} : vector<8x192xf32> to vector<8x64xf32>
    %641 = arith.mulf %640, %625 : vector<8x64xf32>
    %642 = vector.extract_strided_slice %637 {offsets = [0, 0], sizes = [8, 64], strides = [1, 1]} : vector<8x192xf32> to vector<8x64xf32>
    %643 = arith.mulf %642, %639 : vector<8x64xf32>
    %644 = arith.addf %641, %643 : vector<8x64xf32>
    %645 = vector.extract_strided_slice %637 {offsets = [0, 128], sizes = [8, 64], strides = [1, 1]} : vector<8x192xf32> to vector<8x64xf32>
    %646 = math.tanh %644 : vector<8x64xf32>
    %647 = arith.mulf %645, %646 : vector<8x64xf32>
    %648 = tpu.concatenate %514, %533, %552, %571, %590, %609, %628, %647 in 0 : vector<8x64xf32>, vector<8x64xf32>, vector<8x64xf32>, vector<8x64xf32>, vector<8x64xf32>, vector<8x64xf32>, vector<8x64xf32>, vector<8x64xf32> -> vector<64x64xf32>
    %649 = vector.extract_strided_slice %648 {offsets = [0, 0], sizes = [64, 32], strides = [1, 1]} : vector<64x64xf32> to vector<64x32xf32>
    %cst_102 = arith.constant dense<0.000000e+00> : vector<64x128xf32>
    %650 = tpu.matmul %649, %328, %cst_102 {dimension_numbers = #tpu.dot_dimension_numbers<[1], [1], [0], [0], [0, 0, 1, 0], [], []>} : vector<64x32xf32>, vector<128x32xf32>, vector<64x128xf32> -> vector<64x128xf32>
    %651 = tpu.iota {dimensions = array<i32: 0>} : vector<64x128xi32>
    %c8_i32 = arith.constant 8 : i32
    %c0_i32 = arith.constant 0 : i32
    %652 = arith.cmpi eq, %c8_i32, %c0_i32 : i32
    %c1_i32 = arith.constant 1 : i32
    %653 = arith.select %652, %c1_i32, %c8_i32 : i32
    %654 = vector.broadcast %653 : i32 to vector<64x128xi32>
    %655 = arith.remsi %651, %654 : vector<64x128xi32>
    %c0_i32_103 = arith.constant 0 : i32
    %656 = vector.broadcast %c0_i32_103 : i32 to vector<64x128xi32>
    %657 = arith.cmpi ne, %655, %656 : vector<64x128xi32>
    %c0_i32_104 = arith.constant 0 : i32
    %658 = vector.broadcast %c0_i32_104 : i32 to vector<64x128xi32>
    %659 = arith.cmpi slt, %655, %658 : vector<64x128xi32>
    %c0_i32_105 = arith.constant 0 : i32
    %660 = arith.cmpi slt, %653, %c0_i32_105 : i32
    %661 = vector.broadcast %660 : i1 to vector<64x128xi1>
    %662 = vector.broadcast %661 : vector<64x128xi1> to vector<64x128xi1>
    %663 = arith.xori %659, %662 : vector<64x128xi1>
    %664 = arith.andi %663, %657 : vector<64x128xi1>
    %665 = vector.broadcast %653 : i32 to vector<64x128xi32>
    %666 = arith.addi %655, %665 : vector<64x128xi32>
    %667 = arith.select %664, %666, %655 : vector<64x128xi1>, vector<64x128xi32>
    %668 = tpu.iota {dimensions = array<i32: 1>} : vector<64x128xi32>
    %c8_i32_106 = arith.constant 8 : i32
    %c0_i32_107 = arith.constant 0 : i32
    %669 = arith.cmpi eq, %c8_i32_106, %c0_i32_107 : i32
    %c1_i32_108 = arith.constant 1 : i32
    %670 = arith.select %669, %c1_i32_108, %c8_i32_106 : i32
    %671 = vector.broadcast %670 : i32 to vector<64x128xi32>
    %672 = arith.remsi %668, %671 : vector<64x128xi32>
    %c0_i32_109 = arith.constant 0 : i32
    %673 = vector.broadcast %c0_i32_109 : i32 to vector<64x128xi32>
    %674 = arith.cmpi ne, %672, %673 : vector<64x128xi32>
    %c0_i32_110 = arith.constant 0 : i32
    %675 = vector.broadcast %c0_i32_110 : i32 to vector<64x128xi32>
    %676 = arith.cmpi slt, %672, %675 : vector<64x128xi32>
    %c0_i32_111 = arith.constant 0 : i32
    %677 = arith.cmpi slt, %670, %c0_i32_111 : i32
    %678 = vector.broadcast %677 : i1 to vector<64x128xi1>
    %679 = vector.broadcast %678 : vector<64x128xi1> to vector<64x128xi1>
    %680 = arith.xori %676, %679 : vector<64x128xi1>
    %681 = arith.andi %680, %674 : vector<64x128xi1>
    %682 = vector.broadcast %670 : i32 to vector<64x128xi32>
    %683 = arith.addi %672, %682 : vector<64x128xi32>
    %684 = arith.select %681, %683, %672 : vector<64x128xi1>, vector<64x128xi32>
    %685 = arith.cmpi eq, %667, %684 : vector<64x128xi32>
    %cst_112 = arith.constant -1.000000e+30 : f32
    %686 = vector.broadcast %cst_112 : f32 to vector<64x128xf32>
    %687 = arith.select %685, %650, %686 : vector<64x128xi1>, vector<64x128xf32>
    %cst_113 = arith.constant dense<0xFF800000> : vector<64xf32>
    %688 = vector.multi_reduction <maximumf>, %687, %cst_113 [1] : vector<64x128xf32> to vector<64xf32>
    %689 = vector.shape_cast %688 : vector<64xf32> to vector<64x1xf32>
    %690 = vector.broadcast %689 : vector<64x1xf32> to vector<64x128xf32>
    %691 = arith.subf %687, %690 : vector<64x128xf32>
    %692 = math.exp %691 : vector<64x128xf32>
    %cst_114 = arith.constant dense<0.000000e+00> : vector<64xf32>
    %693 = vector.multi_reduction <add>, %692, %cst_114 [1] : vector<64x128xf32> to vector<64xf32>
    %694 = vector.shape_cast %693 : vector<64xf32> to vector<64x1xf32>
    %695 = tpu.reciprocal %694 : vector<64x1xf32> -> vector<64x1xf32>
    %696 = vector.broadcast %695 : vector<64x1xf32> to vector<64x128xf32>
    %697 = arith.mulf %692, %696 : vector<64x128xf32>
    %cst_115 = arith.constant dense<0.000000e+00> : vector<64x32xf32>
    %698 = tpu.matmul %697, %328, %cst_115 {dimension_numbers = #tpu.dot_dimension_numbers<[1], [0], [0], [1], [0, 0, 1, 1], [], []>} : vector<64x128xf32>, vector<128x32xf32>, vector<64x32xf32> -> vector<64x32xf32>
    %c0_116 = arith.constant 0 : index
    %c0_117 = arith.constant 0 : index
    %699 = vector.load %arg17[%c0_116, %c0_117] : memref<64x6xf32, #tpu.memory_space<vmem>>, vector<32x6xf32>
    %cst_118 = arith.constant dense<0.000000e+00> : vector<64x6xf32>
    %700 = tpu.matmul %649, %699, %cst_118 {dimension_numbers = #tpu.dot_dimension_numbers<[1], [0], [0], [1], [0, 0, 1, 1], [], []>} : vector<64x32xf32>, vector<32x6xf32>, vector<64x6xf32> -> vector<64x6xf32>
    %c32 = arith.constant 32 : index
    %c0_119 = arith.constant 0 : index
    %701 = vector.load %arg17[%c32, %c0_119] : memref<64x6xf32, #tpu.memory_space<vmem>>, vector<32x6xf32>
    %cst_120 = arith.constant dense<0.000000e+00> : vector<64x6xf32>
    %702 = tpu.matmul %698, %701, %cst_120 {dimension_numbers = #tpu.dot_dimension_numbers<[1], [0], [0], [1], [0, 0, 1, 1], [], []>} : vector<64x32xf32>, vector<32x6xf32>, vector<64x6xf32> -> vector<64x6xf32>
    %703 = arith.addf %700, %702 : vector<64x6xf32>
    %c0_121 = arith.constant 0 : index
    %c0_122 = arith.constant 0 : index
    %704 = vector.load %arg18[%c0_121, %c0_122] : memref<1x6xf32, #tpu.memory_space<vmem>>, vector<1x6xf32>
    %705 = vector.broadcast %704 : vector<1x6xf32> to vector<64x6xf32>
    %706 = arith.addf %703, %705 : vector<64x6xf32>
    %c0_123 = arith.constant 0 : index
    %c0_124 = arith.constant 0 : index
    %707 = vector.load %arg19[%c0_123, %c0_124] : memref<64x6xf32, #tpu.memory_space<vmem>>, vector<64x6xf32>
    tpu.vector_store %arg19[%c0_123, %c0_124], %706 {strides = array<i32>} : memref<64x6xf32, #tpu.memory_space<vmem>>, vector<64x6xf32>,
    return
  }
}

</mosaic_0001>

<bundles_post_ra>
// kernel: model_forward.1
= control target key start
LH: loop header
LB: loop body
LE: loop exit
PB: predicated region body
PF: predicated region fallthrough
CT: control target
= control target key end

     0   :  { %vm205_vm0 = vcmask 1041408   ;;  %vm180_vm1 = vcmask 80896   ;;  %v5137_v21 = vmov 0.0   ;;  %s5138_s23 = smov 64   ;;  %vm294_vm10 = vcmask 523264   ;;  %s7157_s6 = inlined_call_operand.vmem [shape: f32[64,256], index: 6, kind: input, shape index: {}]   ;;  %s7158_s5 = inlined_call_operand.vmem [shape: f32[10,256], index: 5, kind: input, shape index: {}]   ;;  %s7159_s3 = inlined_call_operand.vmem [shape: f32[64,10], index: 3, kind: input, shape index: {}]   ;;  %s7160_s7 = inlined_call_operand.vmem [shape: f32[1,256], index: 7, kind: input, shape index: {}]   ;;  %s7161_s8 = inlined_call_operand.vmem [shape: f32[64,256], index: 8, kind: input, shape index: {}]   ;;  %s7162_s9 = inlined_call_operand.vmem [shape: f32[64,256], index: 9, kind: input, shape index: {}]   ;;  %s7163_s10 = inlined_call_operand.vmem [shape: f32[1,256], index: 10, kind: input, shape index: {}]   ;;  %s7164_s1 = inlined_call_operand.vmem [shape: f32[48,64], index: 1, kind: input, shape index: {}]   ;;  %s7165_s0 = inlined_call_operand.vmem [shape: f32[8,48], index: 0, kind: input, shape index: {}]   ;;  %s7166_s2 = inlined_call_operand.vmem [shape: f32[1,64], index: 2, kind: input, shape index: {}]   ;;  %s7167_s12 = inlined_call_operand.vmem [shape: f32[64,256], index: 12, kind: input, shape index: {}]   ;;  %s7168_s11 = inlined_call_operand.vmem [shape: f32[4,256], index: 11, kind: input, shape index: {}]   ;;  %s7169_s4 = inlined_call_operand.vmem [shape: f32[64,4], index: 4, kind: input, shape index: {}]   ;;  %s7170_s13 = inlined_call_operand.vmem [shape: f32[1,256], index: 13, kind: input, shape index: {}]   ;;  %s7171_s14 = inlined_call_operand.vmem [shape: f32[64,256], index: 14, kind: input, shape index: {}]   ;;  %s7172_s15 = inlined_call_operand.vmem [shape: f32[64,256], index: 15, kind: input, shape index: {}]   ;;  %s7173_s16 = inlined_call_operand.vmem [shape: f32[1,256], index: 16, kind: input, shape index: {}]   ;;  %s7174_s17 = inlined_call_operand.vmem [shape: f32[64,6], index: 17, kind: input, shape index: {}]   ;;  %s7175_s18 = inlined_call_operand.vmem [shape: f32[1,6], index: 18, kind: input, shape index: {}]   ;;  %s7176_s19 = inlined_call_operand.vmem [shape: f32[64,6], index: 19, kind: output, shape index: {}]  }
   0x1   :  { %7180 = sst [smem:[#allocation2_spill]] %s7157_s6 }
   0x2   :  { %7181 = sst [smem:[#allocation3_spill]] %s7158_s5 }
   0x3   :  { %7182 = sst [smem:[#allocation4_spill]] %s7159_s3 }
   0x4   :  { %7183 = sst [smem:[#allocation5_spill]] %s7160_s7 }
   0x5   :  { %s7184_s20 = sld [smem:[#allocation2_spill]] }
   0x6   :  { %s7185_s25 = sld [smem:[#allocation3_spill]] }
   0x7   :  { %s7186_s29 = sld [smem:[#allocation4_spill]] }
   0xb   :  { %v5243_v0 = vld [vmem:[%s7184_s20 + $0x78] sm:$0xff]  ;;  %v5248_v1 = vld [vmem:[%s7184_s20 + $0x68] sm:$0xff]  ;;  %v5270_v6 = vld [vmem:[%s7184_s20 + $0x70] sm:$0xff] }
   0xc   :  { %326 = vmatpush.msra.mxu3 %v5243_v0  ;;  %v5254_v2 = vld [vmem:[%s7184_s20 + $0x58] sm:$0xff]  ;;  %v63_v4 = vld [vmem:[%s7185_s25 + $0x8] sm:$0xff]  ;;  %306 = vmatpush.msra.mxu2 %v5270_v6  ;;  %v5281_v8 = vld [vmem:[%s7184_s20 + $0x60] sm:$0xff] }
   0xd   :  { %v65_v3 = vld [vmem:[%s7185_s25 + $0x18] sm:$0x3]  ;;  %v167_v5 = vld [vmem:[%s7186_s29] sm:$0xff]  ;;  %v5275_v7 = vld [vmem:[%s7184_s20 + $0x48] sm:$0xff] }
   0xe   :  { %327 = vmatpush.msra.mxu3 %v5248_v1  ;;  %4484 = vmatpush.msk.msra.mxu1 %vm205_vm0, %v65_v3  ;;  %v5287_v9 = vld [vmem:[%s7184_s20 + $0x50] sm:$0xff]  ;;  %v5292_v10 = vld [vmem:[%s7184_s20 + $0x38] sm:$0xff]  ;;  %v62_v12 = vld [vmem:[%s7185_s25] sm:$0xff] }
   0xf   :  { %307 = vmatpush.msra.mxu2 %v5281_v8  ;;  %v64_v11 = vld [vmem:[%s7185_s25 + $0x10] sm:$0x3]  ;;  %v5306_v13 = vld [vmem:[%s7184_s20 + $0x40] sm:$0xff]  ;;  %v5312_v14 = vld [vmem:[%s7184_s20 + $0x28] sm:$0xff]  ;;  %s7187_s25 = sld [smem:[#allocation5_spill]] }
  0x10   :  { %328 = vmatpush.msra.mxu3 %v5254_v2  ;;  %268 = vmatpush.msra.mxu1 %v63_v4  ;;  %v5320_v15 = vld [vmem:[%s7184_s20 + $0x30] sm:$0xff]  ;;  %v5325_v16 = vld [vmem:[%s7184_s20 + $0x18] sm:$0xff]  ;;  %v5333_v17 = vld [vmem:[%s7184_s20 + $0x20] sm:$0xff] }
  0x11   :  { %4485 = vmatmul.msk.f32.vlgmr.msra.gmra.mxu1 %vm180_vm1, %v167_v5  ;;  %4475 = vmatpush.msk.msra.mxu0 %vm205_vm0, %v64_v11  ;;  %v5339_v18 = vld [vmem:[%s7184_s20 + $0x8] sm:$0xff]  ;;  %v5347_v19 = vld [vmem:[%s7184_s20 + $0x10] sm:$0xff]  ;;  %v5356_v20 = vld [vmem:[%s7184_s20] sm:$0xff] }
  0x12   :  { %329 = vmatpush.msra.mxu3 %v5275_v7  ;;  %308 = vmatpush.msra.mxu2 %v5287_v9  ;;  %v168_v56 = vld [vmem:[%s7186_s29 + $0x8] sm:$0xff] }
  0x13   :  { %932 = vmatpush.msrb.mxu1 %v5243_v0  ;;  %227 = vmatpush.msra.mxu0 %v62_v12 }
  0x14   :  { %330 = vmatpush.msra.mxu3 %v5292_v10  ;;  %309 = vmatpush.msra.mxu2 %v5306_v13 }
  0x15   :  { %4476 = vmatmul.msk.f32.vlgmr.msra.gmra.mxu0 %vm180_vm1, %v167_v5  ;;  %933 = vmatpush.msrb.mxu1 %v5248_v1  ;;  %v82_v22 = vld [vmem:[%s7187_s25] sm:$0x3] }
  0x16   :  { %331 = vmatpush.msra.mxu3 %v5312_v14  ;;  %710 = vmatpush.msrb.mxu0 %v5270_v6  ;;  %v5416_v23 = vperm.slane %v82_v22, 1  ;;  %v5420_v29 = vperm.slane %v82_v22, 0 }
  0x17   :  { %310 = vmatpush.msra.mxu2 %v5320_v15  ;;  %934 = vmatpush.msrb.mxu1 %v5254_v2 }
  0x18   :  { %332 = vmatpush.msra.mxu3 %v5325_v16  ;;  %711 = vmatpush.msrb.mxu0 %v5281_v8 }
  0x19   :  { %311 = vmatpush.msra.mxu2 %v5333_v17  ;;  %935 = vmatpush.msrb.mxu1 %v5275_v7 }
  0x1a   :  { %333 = vmatpush.msra.mxu3 %v5339_v18  ;;  %712 = vmatpush.msrb.mxu0 %v5287_v9 }
  0x1b   :  { %334 = vmatmul.f32.vlgmr.msra.gmra.mxu3 %v5137_v21  ;;  %312 = vmatpush.msra.mxu2 %v5347_v19 }
  0x1c   :  { %427 = vmatpush.msrb.mxu3 %v5243_v0  ;;  %713 = vmatpush.msrb.mxu0 %v5306_v13 }
  0x1d   :  { %313 = vmatpush.msra.mxu2 %v5356_v20  ;;  %936 = vmatpush.msrb.mxu1 %v5292_v10 }
  0x1e   :  { %314 = vmatmul.f32.vlgmr.msra.gmra.mxu2 %v5137_v21  ;;  %428 = vmatpush.msrb.mxu3 %v5248_v1 }
  0x1f   :  { %407 = vmatpush.msrb.mxu2 %v5270_v6  ;;  %714 = vmatpush.msrb.mxu0 %v5320_v15 }
  0x20   :  { %429 = vmatpush.msrb.mxu3 %v5254_v2  ;;  %937 = vmatpush.msrb.mxu1 %v5312_v14 }
  0x21   :  { %408 = vmatpush.msrb.mxu2 %v5281_v8  ;;  %715 = vmatpush.msrb.mxu0 %v5333_v17 }
  0x22   :  { %430 = vmatpush.msrb.mxu3 %v5275_v7  ;;  %938 = vmatpush.msrb.mxu1 %v5325_v16 }
  0x23   :  { %409 = vmatpush.msrb.mxu2 %v5287_v9  ;;  %716 = vmatpush.msrb.mxu0 %v5347_v19 }
  0x24   :  { %431 = vmatpush.msrb.mxu3 %v5292_v10  ;;  %939 = vmatpush.msrb.mxu1 %v5339_v18 }
  0x25   :  { %410 = vmatpush.msrb.mxu2 %v5306_v13  ;;  %717 = vmatpush.msrb.mxu0 %v5356_v20 }
  0x26   :  { %432 = vmatpush.msrb.mxu3 %v5312_v14  ;;  %4477 = vmatmul.msk.f32.gmra.mxu0 %vm180_vm1, %v168_v56 }
  0x27   :  { %912 = vmatpush.msra.mxu0 %v5270_v6  ;;  %411 = vmatpush.msrb.mxu2 %v5320_v15 }
  0x28   :  { %433 = vmatpush.msrb.mxu3 %v5325_v16  ;;  %4486 = vmatmul.msk.f32.gmra.mxu1 %vm180_vm1, %v168_v56  ;;  %v169_v56 = vld [vmem:[%s7186_s29 + $0x10] sm:$0xff] }
  0x29   :  { %913 = vmatpush.msra.mxu0 %v5281_v8  ;;  %412 = vmatpush.msrb.mxu2 %v5333_v17 }
  0x2a   :  { %434 = vmatpush.msrb.mxu3 %v5339_v18 }
  0x2b   :  { %914 = vmatpush.msra.mxu0 %v5287_v9  ;;  %413 = vmatpush.msrb.mxu2 %v5347_v19 }
  0x2c   :  { %528 = vmatpush.msra.mxu3 %v5243_v0 }
  0x2d   :  { %915 = vmatpush.msra.mxu0 %v5306_v13  ;;  %414 = vmatpush.msrb.mxu2 %v5356_v20 }
  0x2e   :  { %529 = vmatpush.msra.mxu3 %v5248_v1  ;;  %4478 = vmatmul.msk.f32.gmra.mxu0 %vm180_vm1, %v169_v56 }
  0x2f   :  { %508 = vmatpush.msra.mxu2 %v5270_v6  ;;  %916 = vmatpush.msra.mxu0 %v5320_v15 }
  0x30   :  { %530 = vmatpush.msra.mxu3 %v5254_v2  ;;  %4487 = vmatmul.msk.f32.gmra.mxu1 %vm180_vm1, %v169_v56 }
  0x31   :  { %509 = vmatpush.msra.mxu2 %v5281_v8  ;;  %917 = vmatpush.msra.mxu0 %v5333_v17 }
  0x32   :  { %531 = vmatpush.msra.mxu3 %v5275_v7 }
  0x33   :  { %510 = vmatpush.msra.mxu2 %v5287_v9  ;;  %918 = vmatpush.msra.mxu0 %v5347_v19 }
  0x34   :  { %532 = vmatpush.msra.mxu3 %v5292_v10 }
  0x35   :  { %511 = vmatpush.msra.mxu2 %v5306_v13  ;;  %919 = vmatpush.msra.mxu0 %v5356_v20 }
  0x36   :  { %533 = vmatpush.msra.mxu3 %v5312_v14 }
  0x37   :  { %512 = vmatpush.msra.mxu2 %v5320_v15 }
  0x38   :  { %534 = vmatpush.msra.mxu3 %v5325_v16 }
  0x39   :  { %513 = vmatpush.msra.mxu2 %v5333_v17 }
  0x3a   :  { %535 = vmatpush.msra.mxu3 %v5339_v18 }
  0x3b   :  { %514 = vmatpush.msra.mxu2 %v5347_v19 }
  0x3d   :  { %515 = vmatpush.msra.mxu2 %v5356_v20 }
  0x8e   :  { %v270_v24 = vpop.f32.mrf.mxu1 }
  0x8f   :  { %v271_v25 = vadd.f32 %v270_v24, %v5416_v23 }
  0x92   :  { %v229_v30 = vpop.f32.mrf.mxu0 }
  0x93   :  { %v230_v31 = vadd.f32 %v229_v30, %v5420_v29 }
  0x9e   :  { %v335_v26 = vpop.f32.mrf.mxu3 }
  0x9f   :  { %v339_v27 = vadd.f32 %v335_v26, %v271_v25 }
  0xa1   :  { %4721 = vtanh.f32 %v339_v27  ;;  %v315_v32 = vpop.f32.mrf.mxu2  ;;  %v4494_v53 = vmul.f32 -1.442695, %v339_v27 }
  0xa2   :  { %v338_v33 = vadd.f32 %v315_v32, %v230_v31 }
  0xa4   :  { %v4493_v34 = vmul.f32 -1.442695, %v338_v33 }
  0xa5   :  { %v273_v22 = vpop.f32.mrf.mxu1 }
  0xa6   :  { %4723 = vpow2.f32 %v4493_v34  ;;  %v274_v24 = vadd.f32 %v273_v22, %v5416_v23 }
  0xa7   :  { %v4722_v28 = vpop.eup %4721 }
  0xa8   :  { %381 = vrot.lane.b32.xlu0 %v4722_v28, %s5138_s23  ;;  %v232_v28 = vpop.f32.mrf.mxu0 }
  0xa9   :  { %v233_v30 = vadd.f32 %v232_v28, %v5420_v29 }
  0xac   :  { %v4724_v35 = vpop.eup %4723 }
  0xad   :  { %v346_v36 = vadd.f32 1.0, %v4724_v35  ;;  %v276_v22 = vpop.f32.mrf.mxu1 }
  0xaf   :  { %4725 = vrcp.f32 %v346_v36  ;;  %vm353_vm2 = vweird.f32 %v346_v36  ;;  %v359_v41 = vand.u32 2147483648, %v346_v36  ;;  %v357_v43 = vand.u32 2147483647, %v346_v36 }
  0xb0   :  { %v235_v28 = vpop.f32.mrf.mxu0 }
  0xb1   :  { %v360_v44 = vor.u32 1.1754944e-38, %v359_v41  ;;  %vm358_vm5 = vcmp.eq.f32.partialorder %v357_v43, 8.507059e+37 }
  0xb5   :  { %v4726_v37 = vpop.eup %4725 }
  0xb6   :  { %v349_v38 = vmul.f32 %v4726_v37, %v346_v36  ;;  %vm354_vm3 = vweird.f32 %v4726_v37 }
  0xb7   :  { %vm355_vm4 = vmor %vm353_vm2, %vm354_vm3 }
  0xb8   :  { %v350_v39 = vsub.f32 1.0, %v349_v38 }
  0xba   :  { %v351_v40 = vmul.f32 %v4726_v37, %v350_v39 }
  0xbc   :  { %v352_v42 = vadd.f32 %v4726_v37, %v351_v40 }
  0xbe   :  { %v356_v45 = vsel %vm355_vm4, %v4726_v37, %v352_v42 }
  0xbf   :  { %v361_v47 = vsel %vm358_vm5, %v360_v44, %v356_v45 }
  0xc0   :  { %v379_v49 = vmul.f32 0.0, %v361_v47 }
 0x11a   :  { %v382_v46 = vpop.permute.xlu0 %381 }
 0x11b   :  { %v384_v48 = vmul.f32 %v382_v46, %v361_v47 }
 0x11d   :  { %386 = vrot.lane.b32.xlu0 %v384_v48, %s5138_s23 }
 0x18f   :  { %v387_v50 = vpop.permute.xlu0 %386 }
 0x190   :  { %v5424_v51 = vadd.f32 %v387_v50, %v379_v49 }
 0x192   :  { %4727 = vtanh.f32 %v5424_v51 }
 0x193   :  { %4729 = vpow2.f32 %v4494_v53 }
 0x198   :  { %v4728_v52 = vpop.eup %4727 }
 0x199   :  { %392 = vrot.lane.b32.xlu1 %v4728_v52, %s5138_s23  ;;  %v4730_v54 = vpop.eup %4729 }
 0x19a   :  { %v347_v55 = vadd.f32 1.0, %v4730_v54 }
 0x19c   :  { %4731 = vrcp.f32 %v347_v55  ;;  %v374_v62 = vand.u32 2147483648, %v347_v55  ;;  %vm368_vm7 = vweird.f32 %v347_v55  ;;  %v372_v63 = vand.u32 2147483647, %v347_v55 }
 0x19e   :  { %v375_v4 = vor.u32 1.1754944e-38, %v374_v62  ;;  %vm373_vm9 = vcmp.eq.f32.partialorder %v372_v63, 8.507059e+37 }
 0x1a2   :  { %v4732_v57 = vpop.eup %4731 }
 0x1a3   :  { %v364_v58 = vmul.f32 %v4732_v57, %v347_v55  ;;  %vm369_vm6 = vweird.f32 %v4732_v57 }
 0x1a4   :  { %vm370_vm8 = vmor %vm368_vm7, %vm369_vm6 }
 0x1a5   :  { %v365_v59 = vsub.f32 1.0, %v364_v58 }
 0x1a7   :  { %v366_v60 = vmul.f32 %v4732_v57, %v365_v59 }
 0x1a9   :  { %v367_v61 = vadd.f32 %v4732_v57, %v366_v60 }
 0x1ab   :  { %v371_v3 = vsel %vm370_vm8, %v4732_v57, %v367_v61 }
 0x1ac   :  { %v376_v5 = vsel %vm373_vm9, %v375_v4, %v371_v3 }
 0x20b   :  { %v393_v11 = vpop.permute.xlu1 %392 }
 0x20c   :  { %v5433_v12 = vmul.f32 %v393_v11, %v376_v5 }
 0x20e   :  { %4495 = vmatmul.msk.f32.vlgmr.msrb.gmra.mxu2 %vm294_vm10, %v5433_v12  ;;  %4496 = vmatmul.msk.f32.vlgmr.msrb.gmra.mxu3 %vm294_vm10, %v5433_v12 }
 0x20f   :  { %609 = vmatpush.msrb.mxu2 %v5270_v6  ;;  %629 = vmatpush.msrb.mxu3 %v5243_v0 }
 0x211   :  { %610 = vmatpush.msrb.mxu2 %v5281_v8  ;;  %630 = vmatpush.msrb.mxu3 %v5248_v1 }
 0x213   :  { %611 = vmatpush.msrb.mxu2 %v5287_v9  ;;  %631 = vmatpush.msrb.mxu3 %v5254_v2 }
 0x215   :  { %612 = vmatpush.msrb.mxu2 %v5306_v13  ;;  %632 = vmatpush.msrb.mxu3 %v5275_v7 }
 0x217   :  { %613 = vmatpush.msrb.mxu2 %v5320_v15  ;;  %633 = vmatpush.msrb.mxu3 %v5292_v10 }
 0x219   :  { %614 = vmatpush.msrb.mxu2 %v5333_v17  ;;  %634 = vmatpush.msrb.mxu3 %v5312_v14 }
 0x21b   :  { %615 = vmatpush.msrb.mxu2 %v5347_v19  ;;  %635 = vmatpush.msrb.mxu3 %v5325_v16 }
 0x21d   :  { %616 = vmatpush.msrb.mxu2 %v5356_v20  ;;  %636 = vmatpush.msrb.mxu3 %v5339_v18 }
 0x291   :  { %v436_v25 = vpop.f32.mrf.mxu3  ;;  %v416_v31 = vpop.f32.mrf.mxu2 }
 0x292   :  { %v440_v26 = vadd.f32 %v436_v25, %v274_v24  ;;  %v439_v32 = vadd.f32 %v416_v31, %v233_v30  ;;  %v277_v24 = vadd.f32 %v276_v22, %v5416_v23  ;;  %v236_v30 = vadd.f32 %v235_v28, %v5420_v29 }
 0x294   :  { %4733 = vtanh.f32 %v440_v26  ;;  %v4497_v33 = vmul.f32 -1.442695, %v439_v32  ;;  %v4498_v53 = vmul.f32 -1.442695, %v440_v26 }
 0x296   :  { %4735 = vpow2.f32 %v4497_v33 }
 0x29a   :  { %v4734_v27 = vpop.eup %4733 }
 0x29b   :  { %482 = vrot.lane.b32.xlu1 %v4734_v27, %s5138_s23 }
 0x29c   :  { %v4736_v34 = vpop.eup %4735 }
 0x29d   :  { %v447_v35 = vadd.f32 1.0, %v4736_v34 }
 0x29f   :  { %4737 = vrcp.f32 %v447_v35  ;;  %v460_v41 = vand.u32 2147483648, %v447_v35  ;;  %vm454_vm12 = vweird.f32 %v447_v35  ;;  %v458_v42 = vand.u32 2147483647, %v447_v35 }
 0x2a1   :  { %v461_v44 = vor.u32 1.1754944e-38, %v460_v41  ;;  %vm459_vm14 = vcmp.eq.f32.partialorder %v458_v42, 8.507059e+37 }
 0x2a5   :  { %v4738_v36 = vpop.eup %4737 }
 0x2a6   :  { %v450_v37 = vmul.f32 %v4738_v36, %v447_v35  ;;  %vm455_vm11 = vweird.f32 %v4738_v36 }
 0x2a7   :  { %vm456_vm13 = vmor %vm454_vm12, %vm455_vm11 }
 0x2a8   :  { %v451_v38 = vsub.f32 1.0, %v450_v37 }
 0x2aa   :  { %v452_v39 = vmul.f32 %v4738_v36, %v451_v38 }
 0x2ac   :  { %v453_v40 = vadd.f32 %v4738_v36, %v452_v39 }
 0x2ae   :  { %v457_v43 = vsel %vm456_vm13, %v4738_v36, %v453_v40 }
 0x2af   :  { %v462_v46 = vsel %vm459_vm14, %v461_v44, %v457_v43 }
 0x2b0   :  { %v480_v48 = vmul.f32 %v462_v46, %v5424_v51 }
 0x30d   :  { %v483_v45 = vpop.permute.xlu1 %482 }
 0x30e   :  { %v485_v47 = vmul.f32 %v483_v45, %v462_v46 }
 0x310   :  { %487 = vrot.lane.b32.xlu2 %v485_v47, %s5138_s23 }
 0x36a   :  { %v488_v49 = vpop.permute.xlu2 %487 }
 0x36b   :  { %v5460_v50 = vadd.f32 %v488_v49, %v480_v48 }
 0x36d   :  { %4739 = vtanh.f32 %v5460_v50 }
 0x36e   :  { %4741 = vpow2.f32 %v4498_v53 }
 0x373   :  { %v4740_v52 = vpop.eup %4739 }
 0x374   :  { %493 = vrot.lane.b32.xlu2 %v4740_v52, %s5138_s23  ;;  %v4742_v54 = vpop.eup %4741 }
 0x375   :  { %v448_v55 = vadd.f32 1.0, %v4742_v54 }
 0x377   :  { %4743 = vrcp.f32 %v448_v55  ;;  %v475_v61 = vand.u32 2147483648, %v448_v55  ;;  %vm469_vm0 = vweird.f32 %v448_v55  ;;  %v473_v62 = vand.u32 2147483647, %v448_v55 }
 0x379   :  { %v476_v3 = vor.u32 1.1754944e-38, %v475_v61  ;;  %vm474_vm3 = vcmp.eq.f32.partialorder %v473_v62, 8.507059e+37 }
 0x37d   :  { %v4744_v51 = vpop.eup %4743 }
 0x37e   :  { %v465_v57 = vmul.f32 %v4744_v51, %v448_v55  ;;  %vm470_vm15 = vweird.f32 %v4744_v51 }
 0x37f   :  { %vm471_vm2 = vmor %vm469_vm0, %vm470_vm15 }
 0x380   :  { %v466_v58 = vsub.f32 1.0, %v465_v57 }
 0x382   :  { %v467_v59 = vmul.f32 %v4744_v51, %v466_v58 }
 0x384   :  { %v468_v60 = vadd.f32 %v4744_v51, %v467_v59 }
 0x386   :  { %v472_v63 = vsel %vm471_vm2, %v4744_v51, %v468_v60  ;;  %v170_v51 = vld [vmem:[%s7186_s29 + $0x18] sm:$0xff] }
 0x387   :  { %v477_v4 = vsel %vm474_vm3, %v476_v3, %v472_v63  ;;  %4479 = vmatmul.msk.f32.gmra.mxu0 %vm180_vm1, %v170_v51  ;;  %4488 = vmatmul.msk.f32.gmra.mxu1 %vm180_vm1, %v170_v51 }
 0x3ce   :  { %v494_v5 = vpop.permute.xlu2 %493 }
 0x3cf   :  { %v5469_v11 = vmul.f32 %v494_v5, %v477_v4 }
 0x3d1   :  { %4499 = vmatmul.msk.f32.vlgmr.msra.gmra.mxu2 %vm294_vm10, %v5469_v11  ;;  %4500 = vmatmul.msk.f32.vlgmr.msra.gmra.mxu3 %vm294_vm10, %v5469_v11 }
 0x3d2   :  { %730 = vmatpush.msra.mxu2 %v5243_v0  ;;  %831 = vmatpush.msra.mxu3 %v5243_v0 }
 0x3d4   :  { %731 = vmatpush.msra.mxu2 %v5248_v1  ;;  %832 = vmatpush.msra.mxu3 %v5248_v1 }
 0x3d6   :  { %732 = vmatpush.msra.mxu2 %v5254_v2  ;;  %833 = vmatpush.msra.mxu3 %v5254_v2 }
 0x3d8   :  { %733 = vmatpush.msra.mxu2 %v5275_v7  ;;  %834 = vmatpush.msra.mxu3 %v5275_v7 }
 0x3da   :  { %734 = vmatpush.msra.mxu2 %v5292_v10  ;;  %835 = vmatpush.msra.mxu3 %v5292_v10 }
 0x3dc   :  { %735 = vmatpush.msra.mxu2 %v5312_v14  ;;  %836 = vmatpush.msra.mxu3 %v5312_v14 }
 0x3de   :  { %736 = vmatpush.msra.mxu2 %v5325_v16  ;;  %837 = vmatpush.msra.mxu3 %v5325_v16 }
 0x3e0   :  { %737 = vmatpush.msra.mxu2 %v5339_v18  ;;  %838 = vmatpush.msra.mxu3 %v5339_v18 }
 0x454   :  { %v537_v25 = vpop.f32.mrf.mxu3  ;;  %v517_v31 = vpop.f32.mrf.mxu2 }
 0x455   :  { %v541_v26 = vadd.f32 %v537_v25, %v277_v24  ;;  %v540_v32 = vadd.f32 %v517_v31, %v236_v30 }
 0x457   :  { %4745 = vtanh.f32 %v541_v26  ;;  %v4501_v33 = vmul.f32 -1.442695, %v540_v32  ;;  %v4502_v54 = vmul.f32 -1.442695, %v541_v26 }
 0x459   :  { %4747 = vpow2.f32 %v4501_v33 }
 0x45d   :  { %v4746_v27 = vpop.eup %4745 }
 0x45e   :  { %583 = vrot.lane.b32.xlu0 %v4746_v27, %s5138_s23 }
 0x45f   :  { %v4748_v34 = vpop.eup %4747 }
 0x460   :  { %v548_v35 = vadd.f32 1.0, %v4748_v34 }
 0x462   :  { %4749 = vrcp.f32 %v548_v35  ;;  %v561_v41 = vand.u32 2147483648, %v548_v35  ;;  %vm555_vm5 = vweird.f32 %v548_v35  ;;  %v559_v42 = vand.u32 2147483647, %v548_v35 }
 0x464   :  { %v562_v44 = vor.u32 1.1754944e-38, %v561_v41  ;;  %vm560_vm7 = vcmp.eq.f32.partialorder %v559_v42, 8.507059e+37  ;;  %v171_v41 = vld [vmem:[%s7186_s29 + $0x20] sm:$0xff]  ;;  %v172_v42 = vld [vmem:[%s7186_s29 + $0x28] sm:$0xff] }
 0x465   :  { %4480 = vmatmul.msk.f32.gmra.mxu0 %vm180_vm1, %v171_v41  ;;  %4489 = vmatmul.msk.f32.gmra.mxu1 %vm180_vm1, %v171_v41 }
 0x468   :  { %v4750_v36 = vpop.eup %4749 }
 0x469   :  { %v551_v37 = vmul.f32 %v4750_v36, %v548_v35  ;;  %vm556_vm4 = vweird.f32 %v4750_v36 }
 0x46a   :  { %vm557_vm6 = vmor %vm555_vm5, %vm556_vm4 }
 0x46b   :  { %v552_v38 = vsub.f32 1.0, %v551_v37 }
 0x46d   :  { %v553_v39 = vmul.f32 %v4750_v36, %v552_v38  ;;  %4481 = vmatmul.msk.f32.gmra.mxu0 %vm180_vm1, %v172_v42  ;;  %4490 = vmatmul.msk.f32.gmra.mxu1 %vm180_vm1, %v172_v42 }
 0x46f   :  { %v554_v40 = vadd.f32 %v4750_v36, %v553_v39 }
 0x471   :  { %v558_v43 = vsel %vm557_vm6, %v4750_v36, %v554_v40 }
 0x472   :  { %v563_v46 = vsel %vm560_vm7, %v562_v44, %v558_v43  ;;  %v173_v43 = vld [vmem:[%s7186_s29 + $0x30] sm:$0xff] }
 0x473   :  { %v581_v48 = vmul.f32 %v563_v46, %v5460_v50 }
 0x475   :  { %4482 = vmatmul.msk.f32.gmra.mxu0 %vm180_vm1, %v173_v43  ;;  %4491 = vmatmul.msk.f32.gmra.mxu1 %vm180_vm1, %v173_v43 }
 0x4d0   :  { %v584_v45 = vpop.permute.xlu0 %583 }
 0x4d1   :  { %v586_v47 = vmul.f32 %v584_v45, %v563_v46  ;;  %v174_v46 = vld [vmem:[%s7186_s29 + $0x38] sm:$0xff] }
 0x4d2   :  { %4483 = vmatmul.msk.f32.gmra.mxu0 %vm180_vm1, %v174_v46  ;;  %4492 = vmatmul.msk.f32.gmra.mxu1 %vm180_vm1, %v174_v46 }
 0x4d3   :  { %588 = vrot.lane.b32.xlu1 %v586_v47, %s5138_s23 }
 0x545   :  { %v589_v49 = vpop.permute.xlu1 %588 }
 0x546   :  { %v5496_v52 = vadd.f32 %v589_v49, %v581_v48 }
 0x548   :  { %4751 = vtanh.f32 %v5496_v52 }
 0x549   :  { %4753 = vpow2.f32 %v4502_v54 }
 0x54e   :  { %v4752_v53 = vpop.eup %4751 }
 0x54f   :  { %594 = vrot.lane.b32.xlu2 %v4752_v53, %s5138_s23  ;;  %v4754_v55 = vpop.eup %4753 }
 0x550   :  { %v549_v56 = vadd.f32 1.0, %v4754_v55 }
 0x552   :  { %4755 = vrcp.f32 %v549_v56  ;;  %v576_v61 = vand.u32 2147483648, %v549_v56  ;;  %vm570_vm9 = vweird.f32 %v549_v56  ;;  %v574_v62 = vand.u32 2147483647, %v549_v56 }
 0x554   :  { %v577_v3 = vor.u32 1.1754944e-38, %v576_v61  ;;  %vm575_vm12 = vcmp.eq.f32.partialorder %v574_v62, 8.507059e+37 }
 0x558   :  { %v4756_v50 = vpop.eup %4755 }
 0x559   :  { %v566_v57 = vmul.f32 %v4756_v50, %v549_v56  ;;  %vm571_vm8 = vweird.f32 %v4756_v50 }
 0x55a   :  { %vm572_vm11 = vmor %vm570_vm9, %vm571_vm8 }
 0x55b   :  { %v567_v58 = vsub.f32 1.0, %v566_v57 }
 0x55d   :  { %v568_v59 = vmul.f32 %v4756_v50, %v567_v58 }
 0x55f   :  { %v569_v60 = vadd.f32 %v4756_v50, %v568_v59 }
 0x561   :  { %v573_v63 = vsel %vm572_vm11, %v4756_v50, %v569_v60 }
 0x562   :  { %v578_v4 = vsel %vm575_vm12, %v577_v3, %v573_v63 }
 0x5a9   :  { %v595_v5 = vpop.permute.xlu2 %594 }
 0x5aa   :  { %v5505_v22 = vmul.f32 %v595_v5, %v578_v4 }
 0x5ac   :  { %4503 = vmatmul.msk.f32.vlgmr.msrb.gmra.mxu2 %vm294_vm10, %v5505_v22  ;;  %4504 = vmatmul.msk.f32.vlgmr.msrb.gmra.mxu3 %vm294_vm10, %v5505_v22 }
 0x5ad   :  { %811 = vmatpush.msrb.mxu2 %v5270_v6  ;;  %1033 = vmatpush.msrb.mxu3 %v5243_v0  ;;  %v279_v0 = vpop.f32.mrf.mxu1 }
 0x5af   :  { %812 = vmatpush.msrb.mxu2 %v5281_v8  ;;  %1034 = vmatpush.msrb.mxu3 %v5248_v1  ;;  %v280_v1 = vadd.f32 %v279_v0, %v5416_v23 }
 0x5b1   :  { %813 = vmatpush.msrb.mxu2 %v5287_v9  ;;  %1035 = vmatpush.msrb.mxu3 %v5254_v2 }
 0x5b3   :  { %814 = vmatpush.msrb.mxu2 %v5306_v13  ;;  %1036 = vmatpush.msrb.mxu3 %v5275_v7 }
 0x5b5   :  { %815 = vmatpush.msrb.mxu2 %v5320_v15  ;;  %1037 = vmatpush.msrb.mxu3 %v5292_v10  ;;  %v238_v10 = vpop.f32.mrf.mxu0  ;;  %v282_v3 = vpop.f32.mrf.mxu1 }
 0x5b6   :  { %v283_v4 = vadd.f32 %v282_v3, %v5416_v23 }
 0x5b7   :  { %816 = vmatpush.msrb.mxu2 %v5333_v17  ;;  %1038 = vmatpush.msrb.mxu3 %v5312_v14  ;;  %v239_v14 = vadd.f32 %v238_v10, %v5420_v29 }
 0x5b9   :  { %817 = vmatpush.msrb.mxu2 %v5347_v19  ;;  %1039 = vmatpush.msrb.mxu3 %v5325_v16 }
 0x5bb   :  { %818 = vmatpush.msrb.mxu2 %v5356_v20  ;;  %1040 = vmatpush.msrb.mxu3 %v5339_v18 }
 0x62f   :  { %v638_v2 = vpop.f32.mrf.mxu3  ;;  %v618_v25 = vpop.f32.mrf.mxu2 }
 0x630   :  { %v642_v7 = vadd.f32 %v638_v2, %v280_v1  ;;  %v641_v26 = vadd.f32 %v618_v25, %v239_v14 }
 0x632   :  { %4757 = vtanh.f32 %v642_v7  ;;  %v4505_v27 = vmul.f32 -1.442695, %v641_v26  ;;  %v4506_v49 = vmul.f32 -1.442695, %v642_v7 }
 0x634   :  { %4759 = vpow2.f32 %v4505_v27 }
 0x638   :  { %v4758_v24 = vpop.eup %4757 }
 0x639   :  { %684 = vrot.lane.b32.xlu0 %v4758_v24, %s5138_s23 }
 0x63a   :  { %v4760_v16 = vpop.eup %4759 }
 0x63b   :  { %v649_v28 = vadd.f32 1.0, %v4760_v16 }
 0x63d   :  { %4761 = vrcp.f32 %v649_v28  ;;  %v662_v34 = vand.u32 2147483648, %v649_v28  ;;  %vm656_vm14 = vweird.f32 %v649_v28  ;;  %v660_v35 = vand.u32 2147483647, %v649_v28 }
 0x63f   :  { %v663_v37 = vor.u32 1.1754944e-38, %v662_v34  ;;  %vm661_vm0 = vcmp.eq.f32.partialorder %v660_v35, 8.507059e+37 }
 0x643   :  { %v4762_v18 = vpop.eup %4761 }
 0x644   :  { %v652_v30 = vmul.f32 %v4762_v18, %v649_v28  ;;  %vm657_vm13 = vweird.f32 %v4762_v18 }
 0x645   :  { %vm658_vm15 = vmor %vm656_vm14, %vm657_vm13 }
 0x646   :  { %v653_v31 = vsub.f32 1.0, %v652_v30 }
 0x648   :  { %v654_v32 = vmul.f32 %v4762_v18, %v653_v31 }
 0x64a   :  { %v655_v33 = vadd.f32 %v4762_v18, %v654_v32 }
 0x64c   :  { %v659_v36 = vsel %vm658_vm15, %v4762_v18, %v655_v33 }
 0x64d   :  { %v664_v39 = vsel %vm661_vm0, %v663_v37, %v659_v36 }
 0x64e   :  { %v682_v44 = vmul.f32 %v664_v39, %v5496_v52 }
 0x6ab   :  { %v685_v38 = vpop.permute.xlu0 %684 }
 0x6ac   :  { %v687_v40 = vmul.f32 %v685_v38, %v664_v39 }
 0x6ae   :  { %689 = vrot.lane.b32.xlu1 %v687_v40, %s5138_s23 }
 0x720   :  { %v690_v45 = vpop.permute.xlu1 %689 }
 0x721   :  { %v5550_v47 = vadd.f32 %v690_v45, %v682_v44 }
 0x723   :  { %4763 = vtanh.f32 %v5550_v47 }
 0x724   :  { %4765 = vpow2.f32 %v4506_v49 }
 0x729   :  { %v4764_v48 = vpop.eup %4763 }
 0x72a   :  { %695 = vrot.lane.b32.xlu2 %v4764_v48, %s5138_s23  ;;  %v4766_v53 = vpop.eup %4765 }
 0x72b   :  { %v650_v52 = vadd.f32 1.0, %v4766_v53 }
 0x72d   :  { %4767 = vrcp.f32 %v650_v52  ;;  %v677_v57 = vand.u32 2147483648, %v650_v52  ;;  %vm671_vm3 = vweird.f32 %v650_v52  ;;  %v675_v58 = vand.u32 2147483647, %v650_v52 }
 0x72f   :  { %v678_v60 = vor.u32 1.1754944e-38, %v677_v57  ;;  %vm676_vm1 = vcmp.eq.f32.partialorder %v675_v58, 8.507059e+37 }
 0x733   :  { %v4768_v54 = vpop.eup %4767 }
 0x734   :  { %v667_v55 = vmul.f32 %v4768_v54, %v650_v52  ;;  %vm672_vm2 = vweird.f32 %v4768_v54 }
 0x735   :  { %vm673_vm4 = vmor %vm671_vm3, %vm672_vm2 }
 0x736   :  { %v668_v56 = vsub.f32 1.0, %v667_v55 }
 0x738   :  { %v669_v51 = vmul.f32 %v4768_v54, %v668_v56 }
 0x73a   :  { %v670_v50 = vadd.f32 %v4768_v54, %v669_v51 }
 0x73c   :  { %v674_v59 = vsel %vm673_vm4, %v4768_v54, %v670_v50  ;;  %v285_v54 = vpop.f32.mrf.mxu1 }
 0x73d   :  { %v679_v61 = vsel %vm676_vm1, %v678_v60, %v674_v59  ;;  %v286_v55 = vadd.f32 %v285_v54, %v5416_v23 }
 0x784   :  { %v696_v62 = vpop.permute.xlu2 %695 }
 0x785   :  { %v5556_v63 = vmul.f32 %v696_v62, %v679_v61 }
 0x787   :  { %4507 = vmatmul.msk.f32.vlgmr.msrb.gmra.mxu0 %vm294_vm10, %v5556_v63  ;;  %4508 = vmatmul.msk.f32.vlgmr.msra.gmra.mxu2 %vm294_vm10, %v5556_v63 }
 0x788   :  { %1013 = vmatpush.msra.mxu2 %v5270_v6 }
 0x78a   :  { %1014 = vmatpush.msra.mxu2 %v5281_v8  ;;  %v241_v8 = vpop.f32.mrf.mxu0 }
 0x78c   :  { %1015 = vmatpush.msra.mxu2 %v5287_v9 }
 0x78e   :  { %1016 = vmatpush.msra.mxu2 %v5306_v13 }
 0x790   :  { %1017 = vmatpush.msra.mxu2 %v5320_v15 }
 0x792   :  { %1018 = vmatpush.msra.mxu2 %v5333_v17  ;;  %v5572_v9 = vpop.f32.mrf.mxu0  ;;  %v242_v17 = vadd.f32 %v241_v8, %v5420_v29 }
 0x793   :  { %v245_v58 = vadd.f32 %v5572_v9, %v5420_v29 }
 0x794   :  { %1019 = vmatpush.msra.mxu2 %v5347_v19 }
 0x796   :  { %1020 = vmatpush.msra.mxu2 %v5356_v20 }
 0x79a   :  { %v5574_v13 = vpop.f32.mrf.mxu0 }
 0x7a2   :  { %v5576_v15 = vpop.f32.mrf.mxu0 }
 0x804   :  { %v719_v19 = vpop.f32.mrf.mxu0 }
 0x805   :  { %v742_v20 = vadd.f32 %v719_v19, %v242_v17 }
 0x807   :  { %v4509_v1 = vmul.f32 -1.442695, %v742_v20 }
 0x80a   :  { %v739_v5 = vpop.f32.mrf.mxu2 }
 0x80b   :  { %v743_v0 = vadd.f32 %v739_v5, %v283_v4 }
 0x80d   :  { %4769 = vtanh.f32 %v743_v0  ;;  %v4510_v37 = vmul.f32 -1.442695, %v743_v0 }
 0x80e   :  { %4771 = vpow2.f32 %v4509_v1 }
 0x813   :  { %v4770_v6 = vpop.eup %4769 }
 0x814   :  { %785 = vrot.lane.b32.xlu0 %v4770_v6, %s5138_s23  ;;  %v4772_v2 = vpop.eup %4771 }
 0x815   :  { %v750_v7 = vadd.f32 1.0, %v4772_v2 }
 0x817   :  { %4773 = vrcp.f32 %v750_v7  ;;  %v763_v27 = vand.u32 2147483648, %v750_v7  ;;  %vm757_vm6 = vweird.f32 %v750_v7  ;;  %v761_v16 = vand.u32 2147483647, %v750_v7 }
 0x819   :  { %v764_v18 = vor.u32 1.1754944e-38, %v763_v27  ;;  %vm762_vm8 = vcmp.eq.f32.partialorder %v761_v16, 8.507059e+37 }
 0x81d   :  { %v4774_v24 = vpop.eup %4773 }
 0x81e   :  { %v753_v10 = vmul.f32 %v4774_v24, %v750_v7  ;;  %vm758_vm5 = vweird.f32 %v4774_v24  ;;  %v97_v7 = vld [vmem:[%s7161_s8 + $0x70] sm:$0xff] }
 0x81f   :  { %vm759_vm7 = vmor %vm757_vm6, %vm758_vm5  ;;  %1119 = vmatpush.msrb.mxu0 %v97_v7  ;;  %v5688_v7 = vld [vmem:[%s7162_s9 + $0x78] sm:$0xff] }
 0x820   :  { %v754_v14 = vsub.f32 1.0, %v753_v10  ;;  %v95_v10 = vld [vmem:[%s7161_s8 + $0x60] sm:$0xff] }
 0x821   :  { %1120 = vmatpush.msrb.mxu0 %v95_v10  ;;  %v5700_v10 = vld [vmem:[%s7162_s9 + $0x68] sm:$0xff] }
 0x822   :  { %v755_v25 = vmul.f32 %v4774_v24, %v754_v14  ;;  %v96_v14 = vld [vmem:[%s7161_s8 + $0x68] sm:$0xff] }
 0x824   :  { %v756_v26 = vadd.f32 %v4774_v24, %v755_v25  ;;  %v93_v25 = vld [vmem:[%s7161_s8 + $0x50] sm:$0xff] }
 0x825   :  { %1121 = vmatpush.msrb.mxu0 %v93_v25  ;;  %v5710_v25 = vld [vmem:[%s7162_s9 + $0x58] sm:$0xff] }
 0x826   :  { %v760_v28 = vsel %vm759_vm7, %v4774_v24, %v756_v26  ;;  %v98_v24 = vld [vmem:[%s7161_s8 + $0x78] sm:$0xff] }
 0x827   :  { %v765_v31 = vsel %vm762_vm8, %v764_v18, %v760_v28  ;;  %1160 = vmatpush.msra.mxu1 %v98_v24  ;;  %v94_v26 = vld [vmem:[%s7161_s8 + $0x58] sm:$0xff]  ;;  %v5693_v24 = vld [vmem:[%s7162_s9 + $0x60] sm:$0xff] }
 0x828   :  { %v783_v33 = vmul.f32 %v765_v31, %v5550_v47 }
 0x829   :  { %1161 = vmatpush.msra.mxu1 %v96_v14  ;;  %v5705_v14 = vld [vmem:[%s7162_s9 + $0x50] sm:$0xff] }
 0x82b   :  { %1162 = vmatpush.msra.mxu1 %v94_v26 }
 0x886   :  { %v786_v30 = vpop.permute.xlu0 %785 }
 0x887   :  { %v788_v32 = vmul.f32 %v786_v30, %v765_v31 }
 0x889   :  { %790 = vrot.lane.b32.xlu1 %v788_v32, %s5138_s23 }
 0x8fb   :  { %v791_v34 = vpop.permute.xlu1 %790 }
 0x8fc   :  { %v5581_v35 = vadd.f32 %v791_v34, %v783_v33  ;;  %v91_v33 = vld [vmem:[%s7161_s8 + $0x40] sm:$0xff]  ;;  %v92_v34 = vld [vmem:[%s7161_s8 + $0x48] sm:$0xff] }
 0x8fd   :  { %1122 = vmatpush.msrb.mxu0 %v91_v33  ;;  %1163 = vmatpush.msra.mxu1 %v92_v34  ;;  %v5730_v33 = vld [vmem:[%s7162_s9 + $0x40] sm:$0xff]  ;;  %v5744_v34 = vld [vmem:[%s7162_s9 + $0x30] sm:$0xff] }
 0x8fe   :  { %4775 = vtanh.f32 %v5581_v35 }
 0x8ff   :  { %4777 = vpow2.f32 %v4510_v37  ;;  %v87_v37 = vld [vmem:[%s7161_s8 + $0x20] sm:$0xff] }
 0x904   :  { %v4776_v36 = vpop.eup %4775 }
 0x905   :  { %796 = vrot.lane.b32.xlu2 %v4776_v36, %s5138_s23  ;;  %v4778_v38 = vpop.eup %4777  ;;  %v90_v36 = vld [vmem:[%s7161_s8 + $0x38] sm:$0xff] }
 0x906   :  { %v751_v39 = vadd.f32 1.0, %v4778_v38  ;;  %1164 = vmatpush.msra.mxu1 %v90_v36  ;;  %v88_v38 = vld [vmem:[%s7161_s8 + $0x28] sm:$0xff]  ;;  %v5754_v36 = vld [vmem:[%s7162_s9 + $0x20] sm:$0xff] }
 0x908   :  { %4779 = vrcp.f32 %v751_v39  ;;  %v778_v45 = vand.u32 2147483648, %v751_v39  ;;  %vm772_vm11 = vweird.f32 %v751_v39  ;;  %v776_v46 = vand.u32 2147483647, %v751_v39  ;;  %1165 = vmatpush.msra.mxu1 %v88_v38  ;;  %v5766_v38 = vld [vmem:[%s7162_s9 + $0x10] sm:$0xff] }
 0x90a   :  { %v779_v48 = vor.u32 1.1754944e-38, %v778_v45  ;;  %vm777_vm13 = vcmp.eq.f32.partialorder %v776_v46, 8.507059e+37 }
 0x90e   :  { %v4780_v40 = vpop.eup %4779 }
 0x90f   :  { %v768_v41 = vmul.f32 %v4780_v40, %v751_v39  ;;  %vm773_vm9 = vweird.f32 %v4780_v40  ;;  %v85_v39 = vld [vmem:[%s7161_s8 + $0x10] sm:$0xff] }
 0x910   :  { %vm774_vm12 = vmor %vm772_vm11, %vm773_vm9 }
 0x911   :  { %v769_v42 = vsub.f32 1.0, %v768_v41  ;;  %v83_v41 = vld [vmem:[%s7161_s8] sm:$0xff] }
 0x913   :  { %v770_v43 = vmul.f32 %v4780_v40, %v769_v42  ;;  %v84_v42 = vld [vmem:[%s7161_s8 + $0x8] sm:$0xff] }
 0x915   :  { %v771_v44 = vadd.f32 %v4780_v40, %v770_v43 }
 0x917   :  { %v775_v47 = vsel %vm774_vm12, %v4780_v40, %v771_v44  ;;  %v86_v40 = vld [vmem:[%s7161_s8 + $0x18] sm:$0xff] }
 0x918   :  { %v780_v49 = vsel %vm777_vm13, %v779_v48, %v775_v47  ;;  %1166 = vmatpush.msra.mxu1 %v86_v40  ;;  %v5780_v40 = vld [vmem:[%s7162_s9] sm:$0xff] }
 0x91a   :  { %1167 = vmatpush.msra.mxu1 %v84_v42 }
 0x95f   :  { %v797_v53 = vpop.permute.xlu2 %796 }
 0x960   :  { %v5585_v52 = vmul.f32 %v797_v53, %v780_v49 }
 0x962   :  { %4511 = vmatmul.msk.f32.vlgmr.msrb.gmra.mxu2 %vm294_vm10, %v5585_v52  ;;  %4512 = vmatmul.msk.f32.vlgmr.msra.gmra.mxu3 %vm294_vm10, %v5585_v52 }
 0x963   :  { %1221 = vmatpush.msra.mxu3 %v5688_v7 }
 0x965   :  { %1222 = vmatpush.msra.mxu3 %v5700_v10 }
 0x967   :  { %1223 = vmatpush.msra.mxu3 %v5710_v25 }
 0x9e5   :  { %v840_v56 = vpop.f32.mrf.mxu3  ;;  %v820_v57 = vpop.f32.mrf.mxu2 }
 0x9e6   :  { %v844_v51 = vadd.f32 %v840_v56, %v286_v55  ;;  %v843_v59 = vadd.f32 %v820_v57, %v245_v58 }
 0x9e8   :  { %4781 = vtanh.f32 %v844_v51  ;;  %v4513_v60 = vmul.f32 -1.442695, %v843_v59  ;;  %v4514_v30 = vmul.f32 -1.442695, %v844_v51  ;;  %v248_v59 = vadd.f32 %v5574_v13, %v5420_v29 }
 0x9ea   :  { %4783 = vpow2.f32 %v4513_v60 }
 0x9ee   :  { %v4782_v50 = vpop.eup %4781 }
 0x9ef   :  { %886 = vrot.lane.b32.xlu0 %v4782_v50, %s5138_s23 }
 0x9f0   :  { %v4784_v61 = vpop.eup %4783 }
 0x9f1   :  { %v851_v62 = vadd.f32 1.0, %v4784_v61 }
 0x9f3   :  { %4785 = vrcp.f32 %v851_v62  ;;  %v864_v8 = vand.u32 2147483648, %v851_v62  ;;  %vm858_vm15 = vweird.f32 %v851_v62  ;;  %v862_v17 = vand.u32 2147483647, %v851_v62 }
 0x9f5   :  { %v865_v20 = vor.u32 1.1754944e-38, %v864_v8  ;;  %vm863_vm2 = vcmp.eq.f32.partialorder %v862_v17, 8.507059e+37 }
 0x9f9   :  { %v4786_v3 = vpop.eup %4785 }
 0x9fa   :  { %v854_v4 = vmul.f32 %v4786_v3, %v851_v62  ;;  %vm859_vm14 = vweird.f32 %v4786_v3 }
 0x9fb   :  { %vm860_vm0 = vmor %vm858_vm15, %vm859_vm14 }
 0x9fc   :  { %v855_v5 = vsub.f32 1.0, %v854_v4 }
 0x9fe   :  { %v856_v0 = vmul.f32 %v4786_v3, %v855_v5 }
 0xa00   :  { %v857_v6 = vadd.f32 %v4786_v3, %v856_v0 }
 0xa02   :  { %v861_v19 = vsel %vm860_vm0, %v4786_v3, %v857_v6 }
 0xa03   :  { %v866_v1 = vsel %vm863_vm2, %v865_v20, %v861_v19 }
 0xa04   :  { %v884_v27 = vmul.f32 %v866_v1, %v5581_v35  ;;  %v89_v35 = vld [vmem:[%s7161_s8 + $0x30] sm:$0xff] }
 0xa05   :  { %1123 = vmatpush.msrb.mxu0 %v89_v35  ;;  %v5749_v35 = vld [vmem:[%s7162_s9 + $0x38] sm:$0xff] }
 0xa07   :  { %1124 = vmatpush.msrb.mxu0 %v87_v37  ;;  %v5761_v37 = vld [vmem:[%s7162_s9 + $0x28] sm:$0xff] }
 0xa09   :  { %1125 = vmatpush.msrb.mxu0 %v85_v39  ;;  %v5771_v39 = vld [vmem:[%s7162_s9 + $0x18] sm:$0xff] }
 0xa0b   :  { %1126 = vmatpush.msrb.mxu0 %v83_v41  ;;  %v5785_v41 = vld [vmem:[%s7162_s9 + $0x8] sm:$0xff] }
 0xa61   :  { %v887_v9 = vpop.permute.xlu0 %886 }
 0xa62   :  { %v889_v2 = vmul.f32 %v887_v9, %v866_v1 }
 0xa64   :  { %891 = vrot.lane.b32.xlu1 %v889_v2, %s5138_s23  ;;  %v5683_v2 = vld [vmem:[%s7162_s9 + $0x70] sm:$0xff] }
 0xa65   :  { %1201 = vmatpush.msrb.mxu2 %v5683_v2 }
 0xa67   :  { %1202 = vmatpush.msrb.mxu2 %v5693_v24 }
 0xa69   :  { %1203 = vmatpush.msrb.mxu2 %v5705_v14 }
 0xa6b   :  { %1204 = vmatpush.msrb.mxu2 %v5730_v33 }
 0xa6d   :  { %1205 = vmatpush.msrb.mxu2 %v5744_v34 }
 0xa6f   :  { %1206 = vmatpush.msrb.mxu2 %v5754_v36 }
 0xa71   :  { %1207 = vmatpush.msrb.mxu2 %v5766_v38 }
 0xa73   :  { %1208 = vmatpush.msrb.mxu2 %v5780_v40 }
 0xad6   :  { %v892_v16 = vpop.permute.xlu1 %891 }
 0xad7   :  { %v5615_v28 = vadd.f32 %v892_v16, %v884_v27 }
 0xad9   :  { %4787 = vtanh.f32 %v5615_v28 }
 0xada   :  { %4789 = vpow2.f32 %v4514_v30 }
 0xadf   :  { %v4788_v18 = vpop.eup %4787 }
 0xae0   :  { %897 = vrot.lane.b32.xlu2 %v4788_v18, %s5138_s23  ;;  %v4790_v31 = vpop.eup %4789 }
 0xae1   :  { %v852_v32 = vadd.f32 1.0, %v4790_v31 }
 0xae3   :  { %4791 = vrcp.f32 %v852_v32  ;;  %v879_v48 = vand.u32 2147483648, %v852_v32  ;;  %vm873_vm4 = vweird.f32 %v852_v32  ;;  %v877_v49 = vand.u32 2147483647, %v852_v32 }
 0xae5   :  { %v880_v54 = vor.u32 1.1754944e-38, %v879_v48  ;;  %vm878_vm5 = vcmp.eq.f32.partialorder %v877_v49, 8.507059e+37 }
 0xae9   :  { %v4792_v43 = vpop.eup %4791 }
 0xaea   :  { %v869_v44 = vmul.f32 %v4792_v43, %v852_v32  ;;  %vm874_vm3 = vweird.f32 %v4792_v43 }
 0xaeb   :  { %vm875_vm1 = vmor %vm873_vm4, %vm874_vm3 }
 0xaec   :  { %v870_v45 = vsub.f32 1.0, %v869_v44 }
 0xaee   :  { %v871_v46 = vmul.f32 %v4792_v43, %v870_v45 }
 0xaf0   :  { %v872_v47 = vadd.f32 %v4792_v43, %v871_v46 }
 0xaf2   :  { %v876_v53 = vsel %vm875_vm1, %v4792_v43, %v872_v47 }
 0xaf3   :  { %v881_v55 = vsel %vm878_vm5, %v880_v54, %v876_v53 }
 0xb3a   :  { %v898_v56 = vpop.permute.xlu2 %897 }
 0xb3b   :  { %v900_v51 = vmul.f32 %v898_v56, %v881_v55 }
 0xb3d   :  { %4515 = vmatmul.msk.f32.vlgmr.msra.gmra.mxu0 %vm294_vm10, %v900_v51  ;;  %4516 = vmatmul.msk.f32.vlgmr.msrb.gmra.mxu1 %vm294_vm10, %v900_v51 }
 0xb3e   :  { %1625 = vmatpush.msrb.mxu1 %v5688_v7  ;;  %1605 = vmatpush.msra.mxu0 %v5683_v2 }
 0xb40   :  { %1626 = vmatpush.msrb.mxu1 %v5700_v10  ;;  %1606 = vmatpush.msra.mxu0 %v5693_v24 }
 0xb42   :  { %1627 = vmatpush.msrb.mxu1 %v5710_v25  ;;  %1607 = vmatpush.msra.mxu0 %v5705_v14 }
 0xb44   :  { %1608 = vmatpush.msra.mxu0 %v5730_v33 }
 0xb45   :  { %4523 = vmatmul.msk.f32.vlgmr.msrb.gmra.mxu0 %vm294_vm10, %v5433_v12  ;;  %4531 = vmatmul.msk.f32.vlgmr.msra.gmra.mxu1 %vm294_vm10, %v5433_v12  ;;  %v288_v12 = vpop.f32.mrf.mxu1 }
 0xb46   :  { %1609 = vmatpush.msra.mxu0 %v5744_v34 }
 0xb48   :  { %1610 = vmatpush.msra.mxu0 %v5754_v36 }
 0xb4a   :  { %1611 = vmatpush.msra.mxu0 %v5766_v38 }
 0xb4c   :  { %1612 = vmatpush.msra.mxu0 %v5780_v40 }
 0xb4d   :  { %4524 = vmatmul.msk.f32.gmra.mxu0 %vm294_vm10, %v5469_v11  ;;  %4532 = vmatmul.msk.f32.gmra.mxu1 %vm294_vm10, %v5469_v11  ;;  %v5673_v11 = vpop.f32.mrf.mxu1 }
 0xb4e   :  { %1807 = vmatpush.msrb.mxu0 %v5683_v2 }
 0xb50   :  { %1808 = vmatpush.msrb.mxu0 %v5693_v24 }
 0xb52   :  { %1809 = vmatpush.msrb.mxu0 %v5705_v14 }
 0xb54   :  { %1810 = vmatpush.msrb.mxu0 %v5730_v33 }
 0xb55   :  { %4525 = vmatmul.msk.f32.gmra.mxu0 %vm294_vm10, %v5505_v22  ;;  %4533 = vmatmul.msk.f32.gmra.mxu1 %vm294_vm10, %v5505_v22  ;;  %v289_v22 = vadd.f32 %v288_v12, %v5416_v23 }
 0xb56   :  { %1811 = vmatpush.msrb.mxu0 %v5744_v34 }
 0xb58   :  { %1812 = vmatpush.msrb.mxu0 %v5754_v36 }
 0xb5a   :  { %1813 = vmatpush.msrb.mxu0 %v5766_v38 }
 0xb5c   :  { %1814 = vmatpush.msrb.mxu0 %v5780_v40 }
 0xb5d   :  { %4526 = vmatmul.msk.f32.gmra.mxu0 %vm294_vm10, %v5556_v63  ;;  %4534 = vmatmul.msk.f32.gmra.mxu1 %vm294_vm10, %v5556_v63 }
 0xb65   :  { %4527 = vmatmul.msk.f32.gmra.mxu0 %vm294_vm10, %v5585_v52  ;;  %4535 = vmatmul.msk.f32.gmra.mxu1 %vm294_vm10, %v5585_v52 }
 0xb6d   :  { %4528 = vmatmul.msk.f32.gmra.mxu0 %vm294_vm10, %v900_v51  ;;  %4536 = vmatmul.msk.f32.gmra.mxu1 %vm294_vm10, %v900_v51 }
 0xbba   :  { %v941_v50 = vpop.f32.mrf.mxu1  ;;  %v921_v63 = vpop.f32.mrf.mxu0 }
 0xbbb   :  { %v945_v57 = vadd.f32 %v941_v50, %v289_v22  ;;  %v944_v52 = vadd.f32 %v921_v63, %v248_v59 }
 0xbbd   :  { %4793 = vtanh.f32 %v945_v57  ;;  %v4517_v60 = vmul.f32 -1.442695, %v944_v52  ;;  %v4518_v30 = vmul.f32 -1.442695, %v945_v57 }
 0xbbf   :  { %4795 = vpow2.f32 %v4517_v60 }
 0xbc2   :  { %v1169_v22 = vpop.f32.mrf.mxu1  ;;  %v1128_v60 = vpop.f32.mrf.mxu0 }
 0xbc3   :  { %v4794_v58 = vpop.eup %4793 }
 0xbc4   :  { %987 = vrot.lane.b32.xlu0 %v4794_v58, %s5138_s23 }
 0xbc5   :  { %v4796_v61 = vpop.eup %4795 }
 0xbc6   :  { %v952_v62 = vadd.f32 1.0, %v4796_v61 }
 0xbc8   :  { %4797 = vrcp.f32 %v952_v62  ;;  %v965_v8 = vand.u32 2147483648, %v952_v62  ;;  %vm959_vm7 = vweird.f32 %v952_v62  ;;  %v963_v17 = vand.u32 2147483647, %v952_v62 }
 0xbca   :  { %v966_v20 = vor.u32 1.1754944e-38, %v965_v8  ;;  %vm964_vm9 = vcmp.eq.f32.partialorder %v963_v17, 8.507059e+37 }
 0xbce   :  { %v4798_v3 = vpop.eup %4797 }
 0xbcf   :  { %v955_v4 = vmul.f32 %v4798_v3, %v952_v62  ;;  %vm960_vm6 = vweird.f32 %v4798_v3 }
 0xbd0   :  { %vm961_vm8 = vmor %vm959_vm7, %vm960_vm6 }
 0xbd1   :  { %v956_v5 = vsub.f32 1.0, %v955_v4 }
 0xbd3   :  { %v957_v0 = vmul.f32 %v4798_v3, %v956_v5 }
 0xbd5   :  { %v958_v6 = vadd.f32 %v4798_v3, %v957_v0 }
 0xbd7   :  { %v962_v19 = vsel %vm961_vm8, %v4798_v3, %v958_v6 }
 0xbd8   :  { %v967_v9 = vsel %vm964_vm9, %v966_v20, %v962_v19 }
 0xbd9   :  { %v985_v26 = vmul.f32 %v967_v9, %v5615_v28  ;;  %v5735_v28 = vld [vmem:[%s7162_s9 + $0x48] sm:$0xff] }
 0xbda   :  { %1224 = vmatpush.msra.mxu3 %v5735_v28  ;;  %1628 = vmatpush.msrb.mxu1 %v5735_v28 }
 0xbdc   :  { %1225 = vmatpush.msra.mxu3 %v5749_v35  ;;  %1629 = vmatpush.msrb.mxu1 %v5749_v35 }
 0xbde   :  { %1226 = vmatpush.msra.mxu3 %v5761_v37  ;;  %1630 = vmatpush.msrb.mxu1 %v5761_v37 }
 0xbe0   :  { %1227 = vmatpush.msra.mxu3 %v5771_v39  ;;  %1631 = vmatpush.msrb.mxu1 %v5771_v39 }
 0xbe2   :  { %1228 = vmatpush.msra.mxu3 %v5785_v41  ;;  %1632 = vmatpush.msrb.mxu1 %v5785_v41 }
 0xbe4   :  { %1827 = vmatpush.msra.mxu1 %v5688_v7 }
 0xbe6   :  { %1828 = vmatpush.msra.mxu1 %v5700_v10 }
 0xbe8   :  { %1829 = vmatpush.msra.mxu1 %v5710_v25 }
 0xbea   :  { %1830 = vmatpush.msra.mxu1 %v5735_v28 }
 0xbec   :  { %1831 = vmatpush.msra.mxu1 %v5749_v35 }
 0xbee   :  { %1832 = vmatpush.msra.mxu1 %v5761_v37 }
 0xbf0   :  { %1833 = vmatpush.msra.mxu1 %v5771_v39 }
 0xbf2   :  { %1834 = vmatpush.msra.mxu1 %v5785_v41 }
 0xc36   :  { %v988_v13 = vpop.permute.xlu0 %987 }
 0xc37   :  { %v990_v1 = vmul.f32 %v988_v13, %v967_v9 }
 0xc39   :  { %992 = vrot.lane.b32.xlu1 %v990_v1, %s5138_s23 }
 0xcab   :  { %v993_v27 = vpop.permute.xlu1 %992 }
 0xcac   :  { %v5723_v16 = vadd.f32 %v993_v27, %v985_v26 }
 0xcae   :  { %4799 = vtanh.f32 %v5723_v16 }
 0xcaf   :  { %4801 = vpow2.f32 %v4518_v30 }
 0xcb4   :  { %v4800_v18 = vpop.eup %4799 }
 0xcb5   :  { %998 = vrot.lane.b32.xlu2 %v4800_v18, %s5138_s23  ;;  %v4802_v31 = vpop.eup %4801 }
 0xcb6   :  { %v953_v32 = vadd.f32 1.0, %v4802_v31 }
 0xcb8   :  { %4803 = vrcp.f32 %v953_v32  ;;  %v980_v47 = vand.u32 2147483648, %v953_v32  ;;  %vm974_vm12 = vweird.f32 %v953_v32  ;;  %v978_v48 = vand.u32 2147483647, %v953_v32 }
 0xcba   :  { %v981_v53 = vor.u32 1.1754944e-38, %v980_v47  ;;  %vm979_vm14 = vcmp.eq.f32.partialorder %v978_v48, 8.507059e+37 }
 0xcbe   :  { %v4804_v42 = vpop.eup %4803 }
 0xcbf   :  { %v970_v43 = vmul.f32 %v4804_v42, %v953_v32  ;;  %vm975_vm11 = vweird.f32 %v4804_v42 }
 0xcc0   :  { %vm976_vm13 = vmor %vm974_vm12, %vm975_vm11 }
 0xcc1   :  { %v971_v44 = vsub.f32 1.0, %v970_v43 }
 0xcc3   :  { %v972_v45 = vmul.f32 %v4804_v42, %v971_v44 }
 0xcc5   :  { %v973_v46 = vadd.f32 %v4804_v42, %v972_v45 }
 0xcc7   :  { %v977_v49 = vsel %vm976_vm13, %v4804_v42, %v973_v46 }
 0xcc8   :  { %v982_v54 = vsel %vm979_vm14, %v981_v53, %v977_v49 }
 0xd0f   :  { %v999_v55 = vpop.permute.xlu2 %998 }
 0xd10   :  { %v1001_v56 = vmul.f32 %v999_v55, %v982_v54 }
 0xd12   :  { %4519 = vmatmul.msk.f32.vlgmr.msra.gmra.mxu2 %vm294_vm10, %v1001_v56  ;;  %4520 = vmatmul.msk.f32.vlgmr.msrb.gmra.mxu3 %vm294_vm10, %v1001_v56 }
 0xd13   :  { %4529 = vmatmul.msk.f32.gmra.mxu0 %vm294_vm10, %v1001_v56  ;;  %4537 = vmatmul.msk.f32.gmra.mxu1 %vm294_vm10, %v1001_v56 }
 0xd14   :  { %1302 = vmatpush.msra.mxu2 %v5683_v2  ;;  %1322 = vmatpush.msrb.mxu3 %v5688_v7 }
 0xd16   :  { %1303 = vmatpush.msra.mxu2 %v5693_v24  ;;  %1323 = vmatpush.msrb.mxu3 %v5700_v10 }
 0xd18   :  { %1304 = vmatpush.msra.mxu2 %v5705_v14  ;;  %1324 = vmatpush.msrb.mxu3 %v5710_v25 }
 0xd1a   :  { %1209 = vmatmul.f32.vlgmr.msrb.gmra.mxu2 %v5137_v21  ;;  %1229 = vmatmul.f32.vlgmr.msra.gmra.mxu3 %v5137_v21  ;;  %v115_v21 = vld [vmem:[%s7163_s10] sm:$0x3] }
 0xd1b   :  { %1305 = vmatpush.msra.mxu2 %v5730_v33  ;;  %1325 = vmatpush.msrb.mxu3 %v5735_v28  ;;  %v5856_v12 = vperm.slane %v115_v21, 1  ;;  %v5862_v52 = vperm.slane %v115_v21, 0 }
 0xd1d   :  { %1306 = vmatpush.msra.mxu2 %v5744_v34  ;;  %1326 = vmatpush.msrb.mxu3 %v5749_v35  ;;  %v1170_v50 = vadd.f32 %v1169_v22, %v5856_v12  ;;  %v1129_v62 = vadd.f32 %v1128_v60, %v5862_v52 }
 0xd1f   :  { %1307 = vmatpush.msra.mxu2 %v5754_v36  ;;  %1327 = vmatpush.msrb.mxu3 %v5761_v37 }
 0xd21   :  { %1308 = vmatpush.msra.mxu2 %v5766_v38  ;;  %1328 = vmatpush.msrb.mxu3 %v5771_v39 }
 0xd23   :  { %1309 = vmatpush.msra.mxu2 %v5780_v40  ;;  %1329 = vmatpush.msrb.mxu3 %v5785_v41 }
 0xd25   :  { %1403 = vmatpush.msrb.mxu2 %v5683_v2  ;;  %1423 = vmatpush.msra.mxu3 %v5688_v7 }
 0xd27   :  { %1404 = vmatpush.msrb.mxu2 %v5693_v24  ;;  %1424 = vmatpush.msra.mxu3 %v5700_v10 }
 0xd29   :  { %1405 = vmatpush.msrb.mxu2 %v5705_v14  ;;  %1425 = vmatpush.msra.mxu3 %v5710_v25 }
 0xd2b   :  { %1406 = vmatpush.msrb.mxu2 %v5730_v33  ;;  %1426 = vmatpush.msra.mxu3 %v5735_v28 }
 0xd2d   :  { %1407 = vmatpush.msrb.mxu2 %v5744_v34  ;;  %1427 = vmatpush.msra.mxu3 %v5749_v35 }
 0xd2f   :  { %1408 = vmatpush.msrb.mxu2 %v5754_v36  ;;  %1428 = vmatpush.msra.mxu3 %v5761_v37 }
 0xd31   :  { %1409 = vmatpush.msrb.mxu2 %v5766_v38  ;;  %1429 = vmatpush.msra.mxu3 %v5771_v39 }
 0xd33   :  { %1410 = vmatpush.msrb.mxu2 %v5780_v40  ;;  %1430 = vmatpush.msra.mxu3 %v5785_v41 }
 0xd95   :  { %v5854_v51 = vpop.f32.mrf.mxu3  ;;  %v5860_v59 = vpop.f32.mrf.mxu2 }
 0xd9d   :  { %v1230_v57 = vpop.f32.mrf.mxu3  ;;  %v1210_v61 = vpop.f32.mrf.mxu2 }
 0xd9e   :  { %v1234_v58 = vadd.f32 %v1230_v57, %v1170_v50  ;;  %v1233_v3 = vadd.f32 %v1210_v61, %v1129_v62 }
 0xda0   :  { %4805 = vtanh.f32 %v1234_v58  ;;  %v4539_v4 = vmul.f32 -1.442695, %v1233_v3  ;;  %v4540_v44 = vmul.f32 -1.442695, %v1234_v58 }
 0xda2   :  { %4807 = vpow2.f32 %v4539_v4  ;;  %v1131_v4 = vpop.f32.mrf.mxu0 }
 0xda6   :  { %v4806_v63 = vpop.eup %4805 }
 0xda7   :  { %1276 = vrot.lane.b32.xlu0 %v4806_v63, %s5138_s23  ;;  %v1172_v63 = vpop.f32.mrf.mxu1 }
 0xda8   :  { %v4808_v5 = vpop.eup %4807  ;;  %v1173_v60 = vadd.f32 %v1172_v63, %v5856_v12 }
 0xda9   :  { %v1241_v0 = vadd.f32 1.0, %v4808_v5 }
 0xdab   :  { %4809 = vrcp.f32 %v1241_v0  ;;  %v1254_v13 = vand.u32 2147483648, %v1241_v0  ;;  %vm1248_vm0 = vweird.f32 %v1241_v0  ;;  %v1252_v9 = vand.u32 2147483647, %v1241_v0 }
 0xdad   :  { %v1255_v26 = vor.u32 1.1754944e-38, %v1254_v13  ;;  %vm1253_vm3 = vcmp.eq.f32.partialorder %v1252_v9, 8.507059e+37 }
 0xdb1   :  { %v4810_v6 = vpop.eup %4809 }
 0xdb2   :  { %v1244_v8 = vmul.f32 %v4810_v6, %v1241_v0  ;;  %vm1249_vm15 = vweird.f32 %v4810_v6  ;;  %v1132_v0 = vadd.f32 %v1131_v4, %v5862_v52  ;;  %v1175_v4 = vpop.f32.mrf.mxu1 }
 0xdb3   :  { %vm1250_vm2 = vmor %vm1248_vm0, %vm1249_vm15 }
 0xdb4   :  { %v1245_v17 = vsub.f32 1.0, %v1244_v8 }
 0xdb6   :  { %v1246_v19 = vmul.f32 %v4810_v6, %v1245_v17 }
 0xdb8   :  { %v1247_v20 = vadd.f32 %v4810_v6, %v1246_v19 }
 0xdba   :  { %v1251_v1 = vsel %vm1250_vm2, %v4810_v6, %v1247_v20 }
 0xdbb   :  { %v1256_v18 = vsel %vm1253_vm3, %v1255_v26, %v1251_v1 }
 0xdbc   :  { %v1274_v31 = vmul.f32 0.0, %v1256_v18 }
 0xe19   :  { %v1277_v27 = vpop.permute.xlu0 %1276 }
 0xe1a   :  { %v1279_v30 = vmul.f32 %v1277_v27, %v1256_v18 }
 0xe1c   :  { %1281 = vrot.lane.b32.xlu1 %v1279_v30, %s5138_s23 }
 0xe8e   :  { %v1282_v32 = vpop.permute.xlu1 %1281 }
 0xe8f   :  { %v5866_v42 = vadd.f32 %v1282_v32, %v1274_v31 }
 0xe91   :  { %4811 = vtanh.f32 %v5866_v42 }
 0xe92   :  { %4813 = vpow2.f32 %v4540_v44 }
 0xe97   :  { %v4812_v43 = vpop.eup %4811 }
 0xe98   :  { %1287 = vrot.lane.b32.xlu2 %v4812_v43, %s5138_s23  ;;  %v4814_v45 = vpop.eup %4813 }
 0xe99   :  { %v1242_v46 = vadd.f32 1.0, %v4814_v45 }
 0xe9b   :  { %4815 = vrcp.f32 %v1242_v46  ;;  %v1269_v55 = vand.u32 2147483648, %v1242_v46  ;;  %vm1263_vm1 = vweird.f32 %v1242_v46  ;;  %v1267_v56 = vand.u32 2147483647, %v1242_v46 }
 0xe9d   :  { %v1270_v22 = vor.u32 1.1754944e-38, %v1269_v55  ;;  %vm1268_vm6 = vcmp.eq.f32.partialorder %v1267_v56, 8.507059e+37 }
 0xea1   :  { %v4816_v47 = vpop.eup %4815 }
 0xea2   :  { %v1259_v48 = vmul.f32 %v4816_v47, %v1242_v46  ;;  %vm1264_vm4 = vweird.f32 %v4816_v47 }
 0xea3   :  { %vm1265_vm5 = vmor %vm1263_vm1, %vm1264_vm4 }
 0xea4   :  { %v1260_v49 = vsub.f32 1.0, %v1259_v48 }
 0xea6   :  { %v1261_v53 = vmul.f32 %v4816_v47, %v1260_v49 }
 0xea8   :  { %v1262_v54 = vadd.f32 %v4816_v47, %v1261_v53 }
 0xeaa   :  { %v1266_v21 = vsel %vm1265_vm5, %v4816_v47, %v1262_v54 }
 0xeab   :  { %v1271_v50 = vsel %vm1268_vm6, %v1270_v22, %v1266_v21 }
 0xef2   :  { %v1288_v57 = vpop.permute.xlu2 %1287 }
 0xef3   :  { %v5870_v58 = vmul.f32 %v1288_v57, %v1271_v50 }
 0xef5   :  { %4541 = vmatmul.msk.f32.vlgmr.msra.gmra.mxu2 %vm294_vm10, %v5870_v58  ;;  %4542 = vmatmul.msk.f32.vlgmr.msrb.gmra.mxu3 %vm294_vm10, %v5870_v58 }
 0xef6   :  { %1504 = vmatpush.msra.mxu2 %v5683_v2  ;;  %1524 = vmatpush.msrb.mxu3 %v5688_v7 }
 0xef8   :  { %1505 = vmatpush.msra.mxu2 %v5693_v24  ;;  %1525 = vmatpush.msrb.mxu3 %v5700_v10 }
 0xefa   :  { %1506 = vmatpush.msra.mxu2 %v5705_v14  ;;  %1526 = vmatpush.msrb.mxu3 %v5710_v25 }
 0xefc   :  { %1507 = vmatpush.msra.mxu2 %v5730_v33  ;;  %1527 = vmatpush.msrb.mxu3 %v5735_v28 }
 0xefe   :  { %1508 = vmatpush.msra.mxu2 %v5744_v34  ;;  %1528 = vmatpush.msrb.mxu3 %v5749_v35 }
 0xf00   :  { %1509 = vmatpush.msra.mxu2 %v5754_v36  ;;  %1529 = vmatpush.msrb.mxu3 %v5761_v37 }
 0xf02   :  { %1510 = vmatpush.msra.mxu2 %v5766_v38  ;;  %1530 = vmatpush.msrb.mxu3 %v5771_v39 }
 0xf04   :  { %1511 = vmatpush.msra.mxu2 %v5780_v40  ;;  %1531 = vmatpush.msrb.mxu3 %v5785_v41 }
 0xf78   :  { %v1331_v61 = vpop.f32.mrf.mxu3  ;;  %v1311_v5 = vpop.f32.mrf.mxu2 }
 0xf79   :  { %v1335_v62 = vadd.f32 %v1331_v61, %v1173_v60  ;;  %v1334_v6 = vadd.f32 %v1311_v5, %v1132_v0  ;;  %v1176_v5 = vadd.f32 %v1175_v4, %v5856_v12 }
 0xf7b   :  { %4817 = vtanh.f32 %v1335_v62  ;;  %v4543_v8 = vmul.f32 -1.442695, %v1334_v6  ;;  %v4544_v49 = vmul.f32 -1.442695, %v1335_v62 }
 0xf7d   :  { %4819 = vpow2.f32 %v4543_v8  ;;  %v292_v8 = vadd.f32 %v5673_v11, %v5416_v23 }
 0xf81   :  { %v4818_v3 = vpop.eup %4817 }
 0xf82   :  { %1377 = vrot.lane.b32.xlu0 %v4818_v3, %s5138_s23 }
 0xf83   :  { %v4820_v17 = vpop.eup %4819 }
 0xf84   :  { %v1342_v19 = vadd.f32 1.0, %v4820_v17  ;;  %v5930_v17 = vadd.f32 %v5854_v51, %v292_v8 }
 0xf86   :  { %4821 = vrcp.f32 %v1342_v19  ;;  %v1355_v27 = vand.u32 2147483648, %v1342_v19  ;;  %vm1349_vm8 = vweird.f32 %v1342_v19  ;;  %v1353_v18 = vand.u32 2147483647, %v1342_v19 }
 0xf88   :  { %v1356_v31 = vor.u32 1.1754944e-38, %v1355_v27  ;;  %vm1354_vm11 = vcmp.eq.f32.partialorder %v1353_v18, 8.507059e+37 }
 0xf8c   :  { %v4822_v20 = vpop.eup %4821 }
 0xf8d   :  { %v1345_v13 = vmul.f32 %v4822_v20, %v1342_v19  ;;  %vm1350_vm7 = vweird.f32 %v4822_v20 }
 0xf8e   :  { %vm1351_vm9 = vmor %vm1349_vm8, %vm1350_vm7 }
 0xf8f   :  { %v1346_v9 = vsub.f32 1.0, %v1345_v13  ;;  %v1134_v13 = vpop.f32.mrf.mxu0 }
 0xf91   :  { %v1347_v1 = vmul.f32 %v4822_v20, %v1346_v9 }
 0xf93   :  { %v1348_v26 = vadd.f32 %v4822_v20, %v1347_v1  ;;  %v1135_v1 = vadd.f32 %v1134_v13, %v5862_v52 }
 0xf95   :  { %v1352_v30 = vsel %vm1351_vm9, %v4822_v20, %v1348_v26 }
 0xf96   :  { %v1357_v43 = vsel %vm1354_vm11, %v1356_v31, %v1352_v30 }
 0xf97   :  { %v1375_v45 = vmul.f32 %v1357_v43, %v5866_v42 }
 0xff4   :  { %v1378_v32 = vpop.permute.xlu0 %1377 }
 0xff5   :  { %v1380_v44 = vmul.f32 %v1378_v32, %v1357_v43 }
 0xff7   :  { %1382 = vrot.lane.b32.xlu1 %v1380_v44, %s5138_s23 }
0x1069   :  { %v1383_v46 = vpop.permute.xlu1 %1382 }
0x106a   :  { %v5897_v47 = vadd.f32 %v1383_v46, %v1375_v45 }
0x106c   :  { %4823 = vtanh.f32 %v5897_v47 }
0x106d   :  { %4825 = vpow2.f32 %v4544_v49 }
0x1072   :  { %v4824_v48 = vpop.eup %4823 }
0x1073   :  { %1388 = vrot.lane.b32.xlu2 %v4824_v48, %s5138_s23  ;;  %v4826_v53 = vpop.eup %4825 }
0x1074   :  { %v1343_v54 = vadd.f32 1.0, %v4826_v53 }
0x1076   :  { %4827 = vrcp.f32 %v1343_v54  ;;  %v1370_v42 = vand.u32 2147483648, %v1343_v54  ;;  %vm1364_vm13 = vweird.f32 %v1343_v54  ;;  %v1368_v57 = vand.u32 2147483647, %v1343_v54 }
0x1078   :  { %v1371_v60 = vor.u32 1.1754944e-38, %v1370_v42  ;;  %vm1369_vm15 = vcmp.eq.f32.partialorder %v1368_v57, 8.507059e+37 }
0x107c   :  { %v4828_v55 = vpop.eup %4827 }
0x107d   :  { %v1360_v56 = vmul.f32 %v4828_v55, %v1343_v54  ;;  %vm1365_vm12 = vweird.f32 %v4828_v55  ;;  %v251_v54 = vadd.f32 %v5576_v15, %v5420_v29 }
0x107e   :  { %vm1366_vm14 = vmor %vm1364_vm13, %vm1365_vm12 }
0x107f   :  { %v1361_v21 = vsub.f32 1.0, %v1360_v56 }
0x1081   :  { %v1362_v22 = vmul.f32 %v4828_v55, %v1361_v21 }
0x1083   :  { %v1363_v50 = vadd.f32 %v4828_v55, %v1362_v22 }
0x1085   :  { %v1367_v63 = vsel %vm1366_vm14, %v4828_v55, %v1363_v50  ;;  %v1045_v55 = vadd.f32 %v5860_v59, %v251_v54 }
0x1086   :  { %v1372_v61 = vsel %vm1369_vm15, %v1371_v60, %v1367_v63 }
0x1087   :  { %v4521_v56 = vmul.f32 -1.442695, %v1045_v55 }
0x10cd   :  { %v1389_v3 = vpop.permute.xlu2 %1388 }
0x10ce   :  { %v5901_v62 = vmul.f32 %v1389_v3, %v1372_v61 }
0x10d0   :  { %4545 = vmatmul.msk.f32.vlgmr.msrb.gmra.mxu2 %vm294_vm10, %v5901_v62  ;;  %4546 = vmatmul.msk.f32.vlgmr.msra.gmra.mxu3 %vm294_vm10, %v5901_v62 }
0x10d1   :  { %1706 = vmatpush.msrb.mxu2 %v5683_v2  ;;  %1726 = vmatpush.msra.mxu3 %v5688_v7 }
0x10d3   :  { %1707 = vmatpush.msrb.mxu2 %v5693_v24  ;;  %1727 = vmatpush.msra.mxu3 %v5700_v10 }
0x10d5   :  { %1708 = vmatpush.msrb.mxu2 %v5705_v14  ;;  %1728 = vmatpush.msra.mxu3 %v5710_v25 }
0x10d7   :  { %1709 = vmatpush.msrb.mxu2 %v5730_v33  ;;  %1729 = vmatpush.msra.mxu3 %v5735_v28 }
0x10d9   :  { %1710 = vmatpush.msrb.mxu2 %v5744_v34  ;;  %1730 = vmatpush.msra.mxu3 %v5749_v35 }
0x10db   :  { %1711 = vmatpush.msrb.mxu2 %v5754_v36  ;;  %1731 = vmatpush.msra.mxu3 %v5761_v37 }
0x10dd   :  { %1712 = vmatpush.msrb.mxu2 %v5766_v38  ;;  %1732 = vmatpush.msra.mxu3 %v5771_v39 }
0x10df   :  { %1713 = vmatpush.msrb.mxu2 %v5780_v40  ;;  %1733 = vmatpush.msra.mxu3 %v5785_v41 }
0x1153   :  { %v1432_v0 = vpop.f32.mrf.mxu3  ;;  %v1412_v9 = vpop.f32.mrf.mxu2 }
0x1154   :  { %v5924_v6 = vadd.f32 %v1432_v0, %v1176_v5  ;;  %v1435_v26 = vadd.f32 %v1412_v9, %v1135_v1 }
0x1156   :  { %4829 = vtanh.f32 %v5924_v6  ;;  %v4547_v27 = vmul.f32 -1.442695, %v1435_v26 }
0x1157   :  { %4831 = vtanh.f32 %v5930_v17 }
0x1158   :  { %4833 = vpow2.f32 %v4547_v27 }
0x115c   :  { %v4830_v19 = vpop.eup %4829 }
0x115d   :  { %1478 = vrot.lane.b32.xlu0 %v4830_v19, %s5138_s23  ;;  %v4832_v20 = vpop.eup %4831 }
0x115e   :  { %v4834_v18 = vpop.eup %4833 }
0x115f   :  { %v1443_v23 = vadd.f32 1.0, %v4834_v18 }
0x1161   :  { %4835 = vrcp.f32 %v1443_v23  ;;  %v1456_v43 = vand.u32 2147483648, %v1443_v23  ;;  %vm1450_vm2 = vweird.f32 %v1443_v23  ;;  %v1454_v44 = vand.u32 2147483647, %v1443_v23 }
0x1162   :  { %4837 = vpow2.f32 %v4521_v56 }
0x1163   :  { %v1457_v46 = vor.u32 1.1754944e-38, %v1456_v43  ;;  %vm1455_vm4 = vcmp.eq.f32.partialorder %v1454_v44, 8.507059e+37 }
0x1165   :  { %1088 = vrot.lane.b32.xlu0 %v4832_v20, %s5138_s23  ;;  %v4548_v20 = vmul.f32 -1.442695, %v5924_v6 }
0x1167   :  { %v4836_v11 = vpop.eup %4835 }
0x1168   :  { %v1446_v51 = vmul.f32 %v4836_v11, %v1443_v23  ;;  %vm1451_vm0 = vweird.f32 %v4836_v11  ;;  %v4838_v21 = vpop.eup %4837 }
0x1169   :  { %vm1452_vm3 = vmor %vm1450_vm2, %vm1451_vm0  ;;  %v1053_v22 = vadd.f32 1.0, %v4838_v21 }
0x116a   :  { %v1447_v30 = vsub.f32 1.0, %v1446_v51 }
0x116b   :  { %4839 = vrcp.f32 %v1053_v22  ;;  %v1066_v15 = vand.u32 2147483648, %v1053_v22  ;;  %vm1060_vm5 = vweird.f32 %v1053_v22  ;;  %v1064_v59 = vand.u32 2147483647, %v1053_v22 }
0x116c   :  { %v1448_v31 = vmul.f32 %v4836_v11, %v1447_v30 }
0x116d   :  { %v1067_v8 = vor.u32 1.1754944e-38, %v1066_v15  ;;  %vm1065_vm7 = vcmp.eq.f32.partialorder %v1064_v59, 8.507059e+37 }
0x116e   :  { %v1449_v32 = vadd.f32 %v4836_v11, %v1448_v31 }
0x1170   :  { %v1453_v45 = vsel %vm1452_vm3, %v4836_v11, %v1449_v32 }
0x1171   :  { %v1458_v49 = vsel %vm1455_vm4, %v1457_v46, %v1453_v45  ;;  %v4840_v50 = vpop.eup %4839 }
0x1172   :  { %v1056_v42 = vmul.f32 %v4840_v50, %v1053_v22  ;;  %v1476_v57 = vmul.f32 %v1458_v49, %v5897_v47  ;;  %vm1061_vm1 = vweird.f32 %v4840_v50 }
0x1173   :  { %vm1062_vm6 = vmor %vm1060_vm5, %vm1061_vm1 }
0x1174   :  { %v1057_v63 = vsub.f32 1.0, %v1056_v42 }
0x1176   :  { %v1058_v3 = vmul.f32 %v4840_v50, %v1057_v63 }
0x1178   :  { %v1059_v4 = vadd.f32 %v4840_v50, %v1058_v3 }
0x117a   :  { %v1063_v5 = vsel %vm1062_vm6, %v4840_v50, %v1059_v4 }
0x117b   :  { %v1068_v47 = vsel %vm1065_vm7, %v1067_v8, %v1063_v5 }
0x11cf   :  { %v1479_v48 = vpop.permute.xlu0 %1478 }
0x11d0   :  { %v1481_v53 = vmul.f32 %v1479_v48, %v1458_v49 }
0x11d2   :  { %1483 = vrot.lane.b32.xlu1 %v1481_v53, %s5138_s23 }
0x11d7   :  { %v1089_v0 = vpop.permute.xlu0 %1088 }
0x11d8   :  { %v1091_v19 = vmul.f32 %v1089_v0, %v1068_v47 }
0x1244   :  { %v1484_v60 = vpop.permute.xlu1 %1483 }
0x1245   :  { %v5941_v61 = vadd.f32 %v1484_v60, %v1476_v57 }
0x1247   :  { %4841 = vtanh.f32 %v5941_v61 }
0x1248   :  { %4843 = vpow2.f32 %v4548_v20 }
0x124d   :  { %v4842_v29 = vpop.eup %4841 }
0x124e   :  { %1489 = vrot.lane.b32.xlu2 %v4842_v29, %s5138_s23  ;;  %v4844_v13 = vpop.eup %4843 }
0x124f   :  { %v1444_v9 = vadd.f32 1.0, %v4844_v13 }
0x1251   :  { %4845 = vrcp.f32 %v1444_v9  ;;  %v1471_v11 = vand.u32 2147483648, %v1444_v9  ;;  %vm1465_vm9 = vweird.f32 %v1444_v9  ;;  %v1469_v51 = vand.u32 2147483647, %v1444_v9 }
0x1253   :  { %v1472_v31 = vor.u32 1.1754944e-38, %v1471_v11  ;;  %vm1470_vm12 = vcmp.eq.f32.partialorder %v1469_v51, 8.507059e+37 }
0x1256   :  { %1093 = vrot.lane.b32.xlu2 %v1091_v19, %s5138_s23 }
0x1257   :  { %v4846_v1 = vpop.eup %4845 }
0x1258   :  { %v1461_v26 = vmul.f32 %v4846_v1, %v1444_v9  ;;  %vm1466_vm8 = vweird.f32 %v4846_v1 }
0x1259   :  { %vm1467_vm11 = vmor %vm1465_vm9, %vm1466_vm8 }
0x125a   :  { %v1462_v27 = vsub.f32 1.0, %v1461_v26 }
0x125c   :  { %v1463_v18 = vmul.f32 %v4846_v1, %v1462_v27 }
0x125e   :  { %v1464_v23 = vadd.f32 %v4846_v1, %v1463_v18 }
0x1260   :  { %v1468_v30 = vsel %vm1467_vm11, %v4846_v1, %v1464_v23 }
0x1261   :  { %v1473_v32 = vsel %vm1470_vm12, %v1472_v31, %v1468_v30 }
0x12a8   :  { %v1490_v43 = vpop.permute.xlu2 %1489 }
0x12a9   :  { %v5947_v6 = vmul.f32 %v1490_v43, %v1473_v32 }
0x12ab   :  { %4549 = vmatmul.msk.f32.vlgmr.msra.gmra.mxu2 %vm294_vm10, %v5947_v6  ;;  %4550 = vmatmul.msk.f32.vlgmr.msrb.gmra.mxu3 %vm294_vm10, %v5947_v6 }
0x12ac   :  { %1908 = vmatpush.msra.mxu2 %v5683_v2  ;;  %1928 = vmatpush.msrb.mxu3 %v5688_v7  ;;  %v1178_v2 = vpop.f32.mrf.mxu1 }
0x12ad   :  { %v1179_v7 = vadd.f32 %v1178_v2, %v5856_v12 }
0x12ae   :  { %1909 = vmatpush.msra.mxu2 %v5693_v24  ;;  %1929 = vmatpush.msrb.mxu3 %v5700_v10 }
0x12b0   :  { %1910 = vmatpush.msra.mxu2 %v5705_v14  ;;  %1930 = vmatpush.msrb.mxu3 %v5710_v25  ;;  %v1094_v14 = vpop.permute.xlu2 %1093  ;;  %v1086_v25 = vmul.f32 %v1068_v47, %v5723_v16 }
0x12b2   :  { %1911 = vmatpush.msra.mxu2 %v5730_v33  ;;  %1931 = vmatpush.msrb.mxu3 %v5735_v28  ;;  %v5974_v33 = vadd.f32 %v1094_v14, %v1086_v25 }
0x12b4   :  { %1912 = vmatpush.msra.mxu2 %v5744_v34  ;;  %1932 = vmatpush.msrb.mxu3 %v5749_v35  ;;  %v1137_v35 = vpop.f32.mrf.mxu0 }
0x12b6   :  { %1913 = vmatpush.msra.mxu2 %v5754_v36  ;;  %1933 = vmatpush.msrb.mxu3 %v5761_v37  ;;  %v1138_v37 = vadd.f32 %v1137_v35, %v5862_v52 }
0x12b8   :  { %1914 = vmatpush.msra.mxu2 %v5766_v38  ;;  %1934 = vmatpush.msrb.mxu3 %v5771_v39 }
0x12ba   :  { %1915 = vmatpush.msra.mxu2 %v5780_v40  ;;  %1935 = vmatpush.msrb.mxu3 %v5785_v41  ;;  %v4522_v40 = vmul.f32 -1.442695, %v5930_v17 }
0x132e   :  { %v1533_v24 = vpop.f32.mrf.mxu3  ;;  %v1513_v36 = vpop.f32.mrf.mxu2 }
0x132f   :  { %v5970_v10 = vadd.f32 %v1533_v24, %v1179_v7  ;;  %v1536_v38 = vadd.f32 %v1513_v36, %v1138_v37 }
0x1331   :  { %4847 = vtanh.f32 %v5970_v10  ;;  %v4551_v39 = vmul.f32 -1.442695, %v1536_v38  ;;  %v4552_v1 = vmul.f32 -1.442695, %v5970_v10  ;;  %v1181_v10 = vpop.f32.mrf.mxu1  ;;  %v1140_v38 = vpop.f32.mrf.mxu0 }
0x1332   :  { %4849 = vtanh.f32 %v5974_v33 }
0x1333   :  { %4851 = vpow2.f32 %v4551_v39 }
0x1334   :  { %4853 = vpow2.f32 %v4522_v40 }
0x1337   :  { %v4848_v28 = vpop.eup %4847 }
0x1338   :  { %1579 = vrot.lane.b32.xlu1 %v4848_v28, %s5138_s23  ;;  %v4850_v34 = vpop.eup %4849 }
0x1339   :  { %v4852_v16 = vpop.eup %4851  ;;  %v6000_v14 = vpop.f32.mrf.mxu1 }
0x133a   :  { %v1544_v41 = vadd.f32 1.0, %v4852_v16  ;;  %v4854_v44 = vpop.eup %4853  ;;  %v6008_v39 = vpop.f32.mrf.mxu0 }
0x133b   :  { %v1054_v45 = vadd.f32 1.0, %v4854_v44  ;;  %v1141_v44 = vadd.f32 %v1140_v38, %v5862_v52 }
0x133c   :  { %4855 = vrcp.f32 %v1544_v41  ;;  %v1557_v22 = vand.u32 2147483648, %v1544_v41  ;;  %vm1551_vm14 = vweird.f32 %v1544_v41  ;;  %v1555_v50 = vand.u32 2147483647, %v1544_v41 }
0x133d   :  { %4857 = vrcp.f32 %v1054_v45  ;;  %v1081_v29 = vand.u32 2147483648, %v1054_v45  ;;  %vm1075_vm3 = vweird.f32 %v1054_v45  ;;  %v1079_v15 = vand.u32 2147483647, %v1054_v45 }
0x133e   :  { %v1558_v57 = vor.u32 1.1754944e-38, %v1557_v22  ;;  %vm1556_vm0 = vcmp.eq.f32.partialorder %v1555_v50, 8.507059e+37 }
0x133f   :  { %v1082_v5 = vor.u32 1.1754944e-38, %v1081_v29  ;;  %vm1080_vm1 = vcmp.eq.f32.partialorder %v1079_v15, 8.507059e+37 }
0x1340   :  { %1099 = vrot.lane.b32.xlu1 %v4850_v34, %s5138_s23  ;;  %v1182_v34 = vadd.f32 %v1181_v10, %v5856_v12 }
0x1341   :  { %v6002_v25 = vpop.f32.mrf.mxu1 }
0x1342   :  { %v4856_v46 = vpop.eup %4855  ;;  %v6010_v40 = vpop.f32.mrf.mxu0 }
0x1343   :  { %v1547_v48 = vmul.f32 %v4856_v46, %v1544_v41  ;;  %v4858_v53 = vpop.eup %4857  ;;  %vm1552_vm13 = vweird.f32 %v4856_v46 }
0x1344   :  { %v1071_v55 = vmul.f32 %v4858_v53, %v1054_v45  ;;  %vm1553_vm15 = vmor %vm1551_vm14, %vm1552_vm13  ;;  %vm1076_vm2 = vweird.f32 %v4858_v53 }
0x1345   :  { %v1548_v49 = vsub.f32 1.0, %v1547_v48  ;;  %vm1077_vm4 = vmor %vm1075_vm3, %vm1076_vm2 }
0x1346   :  { %v1072_v21 = vsub.f32 1.0, %v1071_v55 }
0x1347   :  { %v1549_v54 = vmul.f32 %v4856_v46, %v1548_v49 }
0x1348   :  { %v1073_v42 = vmul.f32 %v4858_v53, %v1072_v21 }
0x1349   :  { %v1550_v56 = vadd.f32 %v4856_v46, %v1549_v54 }
0x134a   :  { %v1074_v4 = vadd.f32 %v4858_v53, %v1073_v42 }
0x134b   :  { %v1554_v17 = vsel %vm1553_vm15, %v4856_v46, %v1550_v56 }
0x134c   :  { %v1559_v60 = vsel %vm1556_vm0, %v1558_v57, %v1554_v17  ;;  %v1078_v59 = vsel %vm1077_vm4, %v4858_v53, %v1074_v4 }
0x134d   :  { %v1083_v0 = vsel %vm1080_vm1, %v1082_v5, %v1078_v59  ;;  %v1577_v19 = vmul.f32 %v1559_v60, %v5941_v61 }
0x13aa   :  { %v1580_v63 = vpop.permute.xlu1 %1579 }
0x13ab   :  { %v1582_v3 = vmul.f32 %v1580_v63, %v1559_v60 }
0x13ad   :  { %1584 = vrot.lane.b32.xlu0 %v1582_v3, %s5138_s23 }
0x13b2   :  { %v1100_v8 = vpop.permute.xlu1 %1099 }
0x13b3   :  { %v5982_v47 = vmul.f32 %v1100_v8, %v1083_v0 }
0x13b5   :  { %4530 = vmatmul.msk.f32.gmra.mxu0 %vm294_vm10, %v5982_v47  ;;  %4538 = vmatmul.msk.f32.gmra.mxu1 %vm294_vm10, %v5982_v47 }
0x141f   :  { %v1585_v20 = vpop.permute.xlu0 %1584 }
0x1420   :  { %v5989_v13 = vadd.f32 %v1585_v20, %v1577_v19 }
0x1422   :  { %4859 = vtanh.f32 %v5989_v13 }
0x1423   :  { %4861 = vpow2.f32 %v4552_v1 }
0x1428   :  { %v4860_v9 = vpop.eup %4859 }
0x1429   :  { %1590 = vrot.lane.b32.xlu2 %v4860_v9, %s5138_s23  ;;  %v4862_v26 = vpop.eup %4861 }
0x142a   :  { %v1545_v27 = vadd.f32 1.0, %v4862_v26 }
0x142c   :  { %4863 = vrcp.f32 %v1545_v27  ;;  %v1572_v61 = vand.u32 2147483648, %v1545_v27  ;;  %vm1566_vm6 = vweird.f32 %v1545_v27  ;;  %v1570_v31 = vand.u32 2147483647, %v1545_v27 }
0x142e   :  { %v1573_v43 = vor.u32 1.1754944e-38, %v1572_v61  ;;  %vm1571_vm8 = vcmp.eq.f32.partialorder %v1570_v31, 8.507059e+37 }
0x1432   :  { %v4864_v18 = vpop.eup %4863  ;;  %v6004_v28 = vpop.f32.mrf.mxu1 }
0x1433   :  { %v1562_v23 = vmul.f32 %v4864_v18, %v1545_v27  ;;  %vm1567_vm5 = vweird.f32 %v4864_v18  ;;  %v6012_v16 = vpop.f32.mrf.mxu0 }
0x1434   :  { %vm1568_vm7 = vmor %vm1566_vm6, %vm1567_vm5 }
0x1435   :  { %v1563_v11 = vsub.f32 1.0, %v1562_v23 }
0x1437   :  { %v1564_v51 = vmul.f32 %v4864_v18, %v1563_v11 }
0x1439   :  { %v1565_v30 = vadd.f32 %v4864_v18, %v1564_v51 }
0x143b   :  { %v1569_v32 = vsel %vm1568_vm7, %v4864_v18, %v1565_v30  ;;  %v1185_v30 = vadd.f32 %v6000_v14, %v5856_v12 }
0x143c   :  { %v1574_v2 = vsel %vm1571_vm8, %v1573_v43, %v1569_v32 }
0x1483   :  { %v1591_v7 = vpop.permute.xlu2 %1590 }
0x1484   :  { %v5994_v24 = vmul.f32 %v1591_v7, %v1574_v2  ;;  %v1144_v2 = vadd.f32 %v6008_v39, %v5862_v52 }
0x1486   :  { %4553 = vmatmul.msk.f32.vlgmr.msra.gmra.mxu0 %vm294_vm10, %v5994_v24  ;;  %4554 = vmatmul.msk.f32.vlgmr.msrb.gmra.mxu1 %vm294_vm10, %v5994_v24 }
0x1503   :  { %v1634_v35 = vpop.f32.mrf.mxu1  ;;  %v1614_v41 = vpop.f32.mrf.mxu0 }
0x1504   :  { %v1638_v36 = vadd.f32 %v1634_v35, %v1182_v34  ;;  %v1637_v45 = vadd.f32 %v1614_v41, %v1141_v44 }
0x1506   :  { %4865 = vtanh.f32 %v1638_v36  ;;  %v4555_v46 = vmul.f32 -1.442695, %v1637_v45  ;;  %v4556_v59 = vmul.f32 -1.442695, %v1638_v36 }
0x1508   :  { %4867 = vpow2.f32 %v4555_v46 }
0x150c   :  { %v4866_v37 = vpop.eup %4865 }
0x150d   :  { %1680 = vrot.lane.b32.xlu0 %v4866_v37, %s5138_s23 }
0x150e   :  { %v4868_v48 = vpop.eup %4867 }
0x150f   :  { %v1645_v49 = vadd.f32 1.0, %v4868_v48 }
0x1511   :  { %4869 = vrcp.f32 %v1645_v49  ;;  %v1658_v22 = vand.u32 2147483648, %v1645_v49  ;;  %vm1652_vm11 = vweird.f32 %v1645_v49  ;;  %v1656_v50 = vand.u32 2147483647, %v1645_v49 }
0x1513   :  { %v1659_v42 = vor.u32 1.1754944e-38, %v1658_v22  ;;  %vm1657_vm13 = vcmp.eq.f32.partialorder %v1656_v50, 8.507059e+37 }
0x1517   :  { %v4870_v53 = vpop.eup %4869 }
0x1518   :  { %v1648_v54 = vmul.f32 %v4870_v53, %v1645_v49  ;;  %vm1653_vm9 = vweird.f32 %v4870_v53 }
0x1519   :  { %vm1654_vm12 = vmor %vm1652_vm11, %vm1653_vm9  ;;  %vm2034_vm11 = vcmask 392192  }
0x151a   :  { %v1649_v55 = vsub.f32 1.0, %v1648_v54 }
0x151c   :  { %v1650_v56 = vmul.f32 %v4870_v53, %v1649_v55 }
0x151e   :  { %v1651_v21 = vadd.f32 %v4870_v53, %v1650_v56 }
0x1520   :  { %v1655_v17 = vsel %vm1654_vm12, %v4870_v53, %v1651_v21 }
0x1521   :  { %v1660_v63 = vsel %vm1657_vm13, %v1659_v42, %v1655_v17  ;;  %v2029_v42 = vld [vmem:[%s7164_s1 + $0x28] sm:$0xff] }
0x1522   :  { %v1678_v3 = vmul.f32 %v1660_v63, %v5989_v13  ;;  %2048 = vmatpush.msra.mxu0 %v2029_v42 }
0x157f   :  { %v1681_v57 = vpop.permute.xlu0 %1680 }
0x1580   :  { %v1683_v60 = vmul.f32 %v1681_v57, %v1660_v63  ;;  %v2028_v57 = vld [vmem:[%s7164_s1 + $0x20] sm:$0xff]  ;;  %v2027_v63 = vld [vmem:[%s7164_s1 + $0x18] sm:$0xff] }
0x1581   :  { %2049 = vmatpush.msra.mxu0 %v2028_v57 }
0x1582   :  { %1685 = vrot.lane.b32.xlu1 %v1683_v60, %s5138_s23  ;;  %v2026_v60 = vld [vmem:[%s7164_s1 + $0x10] sm:$0xff] }
0x1583   :  { %2050 = vmatpush.msra.mxu0 %v2027_v63  ;;  %v6113_v63 = vld [vmem:[%s7167_s12 + $0x40] sm:$0xff] }
0x1585   :  { %2051 = vmatpush.msra.mxu0 %v2026_v60  ;;  %v6125_v60 = vld [vmem:[%s7167_s12 + $0x30] sm:$0xff] }
0x15f4   :  { %v1686_v4 = vpop.permute.xlu1 %1685 }
0x15f5   :  { %v1688_v29 = vadd.f32 %v1686_v4, %v1678_v3  ;;  %v2025_v3 = vld [vmem:[%s7164_s1 + $0x8] sm:$0xff]  ;;  %v2024_v4 = vld [vmem:[%s7164_s1] sm:$0xff] }
0x15f6   :  { %2052 = vmatpush.msra.mxu0 %v2025_v3  ;;  %v6130_v3 = vld [vmem:[%s7167_s12 + $0x38] sm:$0xff] }
0x15f7   :  { %4871 = vtanh.f32 %v1688_v29 }
0x15f8   :  { %4873 = vpow2.f32 %v4556_v59  ;;  %2053 = vmatpush.msra.mxu0 %v2024_v4  ;;  %v6135_v4 = vld [vmem:[%s7167_s12 + $0x20] sm:$0xff] }
0x15fd   :  { %v4872_v15 = vpop.eup %4871 }
0x15fe   :  { %1691 = vrot.lane.b32.xlu2 %v4872_v15, %s5138_s23  ;;  %v4874_v5 = vpop.eup %4873 }
0x15ff   :  { %v1646_v0 = vadd.f32 1.0, %v4874_v5 }
0x1601   :  { %4875 = vrcp.f32 %v1646_v0  ;;  %v1673_v26 = vand.u32 2147483648, %v1646_v0  ;;  %vm1667_vm15 = vweird.f32 %v1646_v0  ;;  %v1671_v13 = vand.u32 2147483647, %v1646_v0 }
0x1603   :  { %v1674_v18 = vor.u32 1.1754944e-38, %v1673_v26  ;;  %vm1672_vm2 = vcmp.eq.f32.partialorder %v1671_v13, 8.507059e+37 }
0x1607   :  { %v4876_v8 = vpop.eup %4875 }
0x1608   :  { %v1663_v19 = vmul.f32 %v4876_v8, %v1646_v0  ;;  %vm1668_vm14 = vweird.f32 %v4876_v8 }
0x1609   :  { %vm1669_vm0 = vmor %vm1667_vm15, %vm1668_vm14 }
0x160a   :  { %v1664_v20 = vsub.f32 1.0, %v1663_v19 }
0x160c   :  { %v1665_v9 = vmul.f32 %v4876_v8, %v1664_v20 }
0x160e   :  { %v1666_v1 = vadd.f32 %v4876_v8, %v1665_v9 }
0x1610   :  { %v1670_v27 = vsel %vm1669_vm0, %v4876_v8, %v1666_v1  ;;  %vm2101_vm0 = vcmask 1043456  }
0x1611   :  { %v1675_v23 = vsel %vm1672_vm2, %v1674_v18, %v1670_v27  ;;  %v2023_v27 = vld [vmem:[%s7165_s0] sm:$0xff]  ;;  %v1188_v18 = vadd.f32 %v6002_v25, %v5856_v12  ;;  %vm2076_vm2 = vcmask 31744  }
0x1658   :  { %v1692_v11 = vpop.permute.xlu2 %1691 }
0x1659   :  { %v6018_v51 = vmul.f32 %v1692_v11, %v1675_v23 }
0x165b   :  { %4557 = vmatmul.msk.f32.vlgmr.msrb.gmra.mxu2 %vm294_vm10, %v6018_v51  ;;  %4558 = vmatmul.msk.f32.vlgmr.msra.gmra.mxu3 %vm294_vm10, %v6018_v51 }
0x16de   :  { %v1735_v61 = vpop.f32.mrf.mxu3  ;;  %v1715_v43 = vpop.f32.mrf.mxu2 }
0x16df   :  { %v1739_v31 = vadd.f32 %v1735_v61, %v1185_v30  ;;  %v1738_v7 = vadd.f32 %v1715_v43, %v1144_v2 }
0x16e1   :  { %4877 = vtanh.f32 %v1739_v31  ;;  %v4559_v10 = vmul.f32 -1.442695, %v1738_v7  ;;  %v4560_v22 = vmul.f32 -1.442695, %v1739_v31  ;;  %v1147_v31 = vadd.f32 %v6010_v40, %v5862_v52 }
0x16e3   :  { %4879 = vpow2.f32 %v4559_v10 }
0x16e7   :  { %v4878_v32 = vpop.eup %4877 }
0x16e8   :  { %1781 = vrot.lane.b32.xlu0 %v4878_v32, %s5138_s23 }
0x16e9   :  { %v4880_v34 = vpop.eup %4879 }
0x16ea   :  { %v1746_v35 = vadd.f32 1.0, %v4880_v34 }
0x16ec   :  { %4881 = vrcp.f32 %v1746_v35  ;;  %v1759_v44 = vand.u32 2147483648, %v1746_v35  ;;  %vm1753_vm4 = vweird.f32 %v1746_v35  ;;  %v1757_v45 = vand.u32 2147483647, %v1746_v35 }
0x16ee   :  { %v1760_v48 = vor.u32 1.1754944e-38, %v1759_v44  ;;  %vm1758_vm5 = vcmp.eq.f32.partialorder %v1757_v45, 8.507059e+37 }
0x16f2   :  { %v4882_v36 = vpop.eup %4881 }
0x16f3   :  { %v1749_v37 = vmul.f32 %v4882_v36, %v1746_v35  ;;  %vm1754_vm3 = vweird.f32 %v4882_v36 }
0x16f4   :  { %vm1755_vm1 = vmor %vm1753_vm4, %vm1754_vm3 }
0x16f5   :  { %v1750_v38 = vsub.f32 1.0, %v1749_v37 }
0x16f7   :  { %v1751_v14 = vmul.f32 %v4882_v36, %v1750_v38 }
0x16f9   :  { %v1752_v41 = vadd.f32 %v4882_v36, %v1751_v14 }
0x16fb   :  { %v1756_v46 = vsel %vm1755_vm1, %v4882_v36, %v1752_v41 }
0x16fc   :  { %v1761_v49 = vsel %vm1758_vm5, %v1760_v48, %v1756_v46  ;;  %v6070_v46 = vld [vmem:[%s7167_s12 + $0x70] sm:$0xff]  ;;  %v6075_v48 = vld [vmem:[%s7167_s12 + $0x78] sm:$0xff] }
0x16fd   :  { %v1779_v54 = vmul.f32 %v1761_v49, %v1688_v29  ;;  %2199 = vmatpush.msrb.mxu2 %v6070_v46  ;;  %2219 = vmatpush.msra.mxu3 %v6075_v48 }
0x175a   :  { %v1782_v39 = vpop.permute.xlu0 %1781 }
0x175b   :  { %v1784_v53 = vmul.f32 %v1782_v39, %v1761_v49  ;;  %v6080_v39 = vld [vmem:[%s7167_s12 + $0x60] sm:$0xff]  ;;  %v6087_v49 = vld [vmem:[%s7167_s12 + $0x68] sm:$0xff] }
0x175c   :  { %2200 = vmatpush.msrb.mxu2 %v6080_v39  ;;  %2220 = vmatpush.msra.mxu3 %v6087_v49 }
0x175d   :  { %1786 = vrot.lane.b32.xlu1 %v1784_v53, %s5138_s23  ;;  %v6092_v53 = vld [vmem:[%s7167_s12 + $0x50] sm:$0xff] }
0x175e   :  { %2201 = vmatpush.msrb.mxu2 %v6092_v53 }
0x1760   :  { %2202 = vmatpush.msrb.mxu2 %v6113_v63 }
0x1762   :  { %2203 = vmatpush.msrb.mxu2 %v6125_v60 }
0x1764   :  { %2204 = vmatpush.msrb.mxu2 %v6135_v4 }
0x17cf   :  { %v1787_v55 = vpop.permute.xlu1 %1786 }
0x17d0   :  { %v6030_v56 = vadd.f32 %v1787_v55, %v1779_v54  ;;  %v6097_v54 = vld [vmem:[%s7167_s12 + $0x58] sm:$0xff] }
0x17d1   :  { %2221 = vmatpush.msra.mxu3 %v6097_v54 }
0x17d2   :  { %4883 = vtanh.f32 %v6030_v56 }
0x17d3   :  { %4885 = vpow2.f32 %v4560_v22 }
0x17d8   :  { %v4884_v21 = vpop.eup %4883 }
0x17d9   :  { %1792 = vrot.lane.b32.xlu2 %v4884_v21, %s5138_s23  ;;  %v4886_v50 = vpop.eup %4885 }
0x17da   :  { %v1747_v17 = vadd.f32 1.0, %v4886_v50 }
0x17dc   :  { %4887 = vrcp.f32 %v1747_v17  ;;  %v1774_v8 = vand.u32 2147483648, %v1747_v17  ;;  %vm1768_vm7 = vweird.f32 %v1747_v17  ;;  %v1772_v19 = vand.u32 2147483647, %v1747_v17 }
0x17de   :  { %v1775_v9 = vor.u32 1.1754944e-38, %v1774_v8  ;;  %vm1773_vm9 = vcmp.eq.f32.partialorder %v1772_v19, 8.507059e+37  ;;  %v6168_v8 = vld [vmem:[%s7167_s12 + $0x8] sm:$0xff] }
0x17e2   :  { %v4888_v29 = vpop.eup %4887 }
0x17e3   :  { %v1764_v15 = vmul.f32 %v4888_v29, %v1747_v17  ;;  %vm1769_vm6 = vweird.f32 %v4888_v29 }
0x17e4   :  { %vm1770_vm8 = vmor %vm1768_vm7, %vm1769_vm6 }
0x17e5   :  { %v1765_v59 = vsub.f32 1.0, %v1764_v15  ;;  %v116_v15 = vld [vmem:[%s7168_s11] sm:$0xff] }
0x17e6   :  { %2073 = vst [vmem:[#allocation1] ss:$2 sm:$0xff] %v116_v15 }
0x17e7   :  { %v1766_v5 = vmul.f32 %v4888_v29, %v1765_v59  ;;  %v6151_v59 = vld [vmem:[%s7167_s12 + $0x10] sm:$0xff] }
0x17e8   :  { %2205 = vmatpush.msrb.mxu2 %v6151_v59 }
0x17e9   :  { %v1767_v0 = vadd.f32 %v4888_v29, %v1766_v5  ;;  %v6156_v5 = vld [vmem:[%s7167_s12 + $0x18] sm:$0xff] }
0x17eb   :  { %v1771_v20 = vsel %vm1770_vm8, %v4888_v29, %v1767_v0  ;;  %v6143_v29 = vld [vmem:[%s7167_s12 + $0x28] sm:$0xff]  ;;  %v6163_v0 = vld [vmem:[%s7167_s12] sm:$0xff] }
0x17ec   :  { %v1776_v1 = vsel %vm1773_vm9, %v1775_v9, %v1771_v20  ;;  %2206 = vmatpush.msrb.mxu2 %v6163_v0  ;;  %v2059_v20 = vld [vmem:[%s7169_s4] sm:$0xff] }
0x17ed   :  { %v2075_v9 = vld.sshfl [vmem:[#allocation1 + $0x8] sm:$0xff pattern:$0x75316420] }
0x1833   :  { %v1793_v26 = vpop.permute.xlu2 %1792 }
0x1834   :  { %v6052_v13 = vmul.f32 %v1793_v26, %v1776_v1  ;;  %v2074_v1 = vld.sshfl [vmem:[#allocation1] sm:$0xff pattern:$0x75316420] }
0x1835   :  { %4570 = vmatpush.msk.msrb.mxu1 %vm2101_vm0, %v2074_v1 }
0x1836   :  { %4561 = vmatmul.msk.f32.vlgmr.msrb.gmra.mxu0 %vm294_vm10, %v6052_v13  ;;  %4562 = vmatmul.msk.f32.vlgmr.msra.gmra.mxu1 %vm294_vm10, %v6052_v13 }
0x1837   :  { %4579 = vmatpush.msk.msrb.mxu0 %vm2101_vm0, %v2075_v9  ;;  %2502 = vmatpush.msra.mxu1 %v6070_v46 }
0x1839   :  { %2503 = vmatpush.msra.mxu1 %v6080_v39 }
0x183b   :  { %2504 = vmatpush.msra.mxu1 %v6092_v53 }
0x183d   :  { %2505 = vmatpush.msra.mxu1 %v6113_v63 }
0x183e   :  { %4569 = vmatmul.msk.f32.vlgmr.msra.gmra.mxu0 %vm2034_vm11, %v2023_v27  ;;  %4571 = vmatmul.msk.f32.vlgmr.msrb.gmra.mxu1 %vm2076_vm2, %v2059_v20 }
0x183f   :  { %2623 = vmatpush.msra.mxu0 %v6075_v48  ;;  %2506 = vmatpush.msra.mxu1 %v6125_v60 }
0x1841   :  { %2624 = vmatpush.msra.mxu0 %v6087_v49  ;;  %2507 = vmatpush.msra.mxu1 %v6135_v4 }
0x1843   :  { %2625 = vmatpush.msra.mxu0 %v6097_v54  ;;  %2508 = vmatpush.msra.mxu1 %v6151_v59 }
0x1845   :  { %2509 = vmatpush.msra.mxu1 %v6163_v0 }
0x1846   :  { %4580 = vmatmul.msk.f32.vlgmr.msrb.gmra.mxu0 %vm2076_vm2, %v2059_v20 }
0x1847   :  { %2704 = vmatpush.msrb.mxu1 %v6070_v46 }
0x1849   :  { %2705 = vmatpush.msrb.mxu1 %v6080_v39 }
0x184b   :  { %2706 = vmatpush.msrb.mxu1 %v6092_v53 }
0x184d   :  { %2707 = vmatpush.msrb.mxu1 %v6113_v63 }
0x184f   :  { %2708 = vmatpush.msrb.mxu1 %v6125_v60 }
0x1851   :  { %2709 = vmatpush.msrb.mxu1 %v6135_v4 }
0x1853   :  { %2710 = vmatpush.msrb.mxu1 %v6151_v59 }
0x1855   :  { %2711 = vmatpush.msrb.mxu1 %v6163_v0 }
0x18b3   :  { %v1836_v23 = vpop.f32.mrf.mxu1  ;;  %v1816_v61 = vpop.f32.mrf.mxu0 }
0x18b4   :  { %v1840_v11 = vadd.f32 %v1836_v23, %v1188_v18  ;;  %v1839_v32 = vadd.f32 %v1816_v61, %v1147_v31 }
0x18b6   :  { %4889 = vtanh.f32 %v1840_v11  ;;  %v4563_v43 = vmul.f32 -1.442695, %v1839_v32  ;;  %v4564_v17 = vmul.f32 -1.442695, %v1840_v11 }
0x18b8   :  { %4891 = vpow2.f32 %v4563_v43 }
0x18bc   :  { %v4890_v30 = vpop.eup %4889 }
0x18bd   :  { %1882 = vrot.lane.b32.xlu0 %v4890_v30, %s5138_s23 }
0x18be   :  { %v4892_v2 = vpop.eup %4891 }
0x18bf   :  { %v1847_v7 = vadd.f32 1.0, %v4892_v2  ;;  %v4719_v2 = vld [vmem:[%s7166_s2] ss:$0 sm:$0xff] }
0x18c1   :  { %4893 = vrcp.f32 %v1847_v7  ;;  %v1860_v37 = vand.u32 2147483648, %v1847_v7  ;;  %vm1854_vm13 = vweird.f32 %v1847_v7  ;;  %v1858_v38 = vand.u32 2147483647, %v1847_v7 }
0x18c3   :  { %v1861_v41 = vor.u32 1.1754944e-38, %v1860_v37  ;;  %vm1859_vm15 = vcmp.eq.f32.partialorder %v1858_v38, 8.507059e+37 }
0x18c7   :  { %v4894_v10 = vpop.eup %4893 }
0x18c8   :  { %v1850_v34 = vmul.f32 %v4894_v10, %v1847_v7  ;;  %vm1855_vm12 = vweird.f32 %v4894_v10 }
0x18c9   :  { %vm1856_vm14 = vmor %vm1854_vm13, %vm1855_vm12 }
0x18ca   :  { %v1851_v35 = vsub.f32 1.0, %v1850_v34 }
0x18cc   :  { %v1852_v25 = vmul.f32 %v4894_v10, %v1851_v35 }
0x18ce   :  { %v1853_v36 = vadd.f32 %v4894_v10, %v1852_v25 }
0x18d0   :  { %v1857_v14 = vsel %vm1856_vm14, %v4894_v10, %v1853_v36  ;;  %v2055_v10 = vpop.f32.mrf.mxu0 }
0x18d1   :  { %v1862_v44 = vsel %vm1859_vm15, %v1861_v41, %v1857_v14  ;;  %v2056_v34 = vadd.f32 %v4719_v2, %v2055_v10 }
0x18d2   :  { %v1880_v55 = vmul.f32 %v1862_v44, %v6030_v56  ;;  %v6118_v56 = vld [vmem:[%s7167_s12 + $0x48] sm:$0xff] }
0x18d3   :  { %2222 = vmatpush.msra.mxu3 %v6118_v56  ;;  %2626 = vmatpush.msra.mxu0 %v6118_v56  ;;  %v2058_v35 = vadd.f32 %v2056_v34, %v5982_v47  ;;  %v133_v47 = vld [vmem:[%s7170_s13] sm:$0x3] }
0x18d4   :  { %v6264_v36 = vperm.slane %v133_v47, 1 }
0x18d5   :  { %2223 = vmatpush.msra.mxu3 %v6130_v3  ;;  %2627 = vmatpush.msra.mxu0 %v6130_v3 }
0x18d7   :  { %2224 = vmatpush.msra.mxu3 %v6143_v29  ;;  %2628 = vmatpush.msra.mxu0 %v6143_v29 }
0x18d8   :  { %v2164_v37 = vpop.f32.mrf.mxu0 }
0x18d9   :  { %2225 = vmatpush.msra.mxu3 %v6156_v5  ;;  %2629 = vmatpush.msra.mxu0 %v6156_v5  ;;  %v2165_v38 = vadd.f32 %v2164_v37, %v6264_v36  ;;  %v2060_v37 = vld [vmem:[%s7169_s4 + $0x8] sm:$0xff] }
0x18da   :  { %4572 = vmatmul.msk.f32.gmra.mxu1 %vm2076_vm2, %v2060_v37  ;;  %4581 = vmatmul.msk.f32.gmra.mxu0 %vm2076_vm2, %v2060_v37 }
0x18db   :  { %2226 = vmatpush.msra.mxu3 %v6168_v8  ;;  %2630 = vmatpush.msra.mxu0 %v6168_v8 }
0x18dd   :  { %2825 = vmatpush.msrb.mxu0 %v6075_v48 }
0x18df   :  { %2826 = vmatpush.msrb.mxu0 %v6087_v49 }
0x18e1   :  { %2827 = vmatpush.msrb.mxu0 %v6097_v54 }
0x18e3   :  { %2828 = vmatpush.msrb.mxu0 %v6118_v56 }
0x18e5   :  { %2829 = vmatpush.msrb.mxu0 %v6130_v3 }
0x18e7   :  { %2830 = vmatpush.msrb.mxu0 %v6143_v29 }
0x18e9   :  { %2831 = vmatpush.msrb.mxu0 %v6156_v5 }
0x18eb   :  { %2832 = vmatpush.msrb.mxu0 %v6168_v8 }
0x192f   :  { %v1883_v40 = vpop.permute.xlu0 %1882 }
0x1930   :  { %v1885_v45 = vmul.f32 %v1883_v40, %v1862_v44 }
0x1932   :  { %1887 = vrot.lane.b32.xlu1 %v1885_v45, %s5138_s23  ;;  %v6270_v45 = vperm.slane %v133_v47, 0 }
0x19a4   :  { %v1888_v21 = vpop.permute.xlu1 %1887 }
0x19a5   :  { %v6104_v22 = vadd.f32 %v1888_v21, %v1880_v55  ;;  %v2123_v55 = vpop.f32.mrf.mxu1 }
0x19a6   :  { %v2124_v21 = vadd.f32 %v2123_v55, %v6270_v45 }
0x19a7   :  { %4895 = vtanh.f32 %v6104_v22 }
0x19a8   :  { %4897 = vpow2.f32 %v4564_v17 }
0x19ad   :  { %v4896_v50 = vpop.eup %4895 }
0x19ae   :  { %1893 = vrot.lane.b32.xlu2 %v4896_v50, %s5138_s23  ;;  %v4898_v42 = vpop.eup %4897 }
0x19af   :  { %v6108_v57 = vadd.f32 1.0, %v4898_v42 }
0x19b1   :  { %4899 = vrcp.f32 %v6108_v57  ;;  %v1875_v11 = vand.u32 2147483648, %v6108_v57  ;;  %vm1869_vm4 = vweird.f32 %v6108_v57  ;;  %v1873_v30 = vand.u32 2147483647, %v6108_v57 }
0x19b3   :  { %v1876_v31 = vor.u32 1.1754944e-38, %v1875_v11  ;;  %vm1874_vm5 = vcmp.eq.f32.partialorder %v1873_v30, 8.507059e+37 }
0x19b7   :  { %v4900_v19 = vpop.eup %4899 }
0x19b8   :  { %v1865_v26 = vmul.f32 %v4900_v19, %v6108_v57  ;;  %vm1870_vm3 = vweird.f32 %v4900_v19 }
0x19b9   :  { %vm1871_vm1 = vmor %vm1869_vm4, %vm1870_vm3 }
0x19ba   :  { %v1866_v27 = vsub.f32 1.0, %v1865_v26 }
0x19bc   :  { %v1867_v18 = vmul.f32 %v4900_v19, %v1866_v27 }
0x19be   :  { %v1868_v23 = vadd.f32 %v4900_v19, %v1867_v18 }
0x19c0   :  { %v1872_v61 = vsel %vm1871_vm1, %v4900_v19, %v1868_v23 }
0x19c1   :  { %v1877_v32 = vsel %vm1874_vm5, %v1876_v31, %v1872_v61 }
0x1a08   :  { %v1894_v43 = vpop.permute.xlu2 %1893 }
0x1a09   :  { %v6206_v7 = vmul.f32 %v1894_v43, %v1877_v32 }
0x1a0b   :  { %4565 = vmatmul.msk.f32.vlgmr.msra.gmra.mxu2 %vm294_vm10, %v6206_v7  ;;  %4566 = vmatmul.msk.f32.vlgmr.msrb.gmra.mxu3 %vm294_vm10, %v6206_v7 }
0x1a0c   :  { %2300 = vmatpush.msra.mxu2 %v6070_v46  ;;  %2320 = vmatpush.msrb.mxu3 %v6075_v48 }
0x1a0e   :  { %2301 = vmatpush.msra.mxu2 %v6080_v39  ;;  %2321 = vmatpush.msrb.mxu3 %v6087_v49 }
0x1a10   :  { %2302 = vmatpush.msra.mxu2 %v6092_v53  ;;  %2322 = vmatpush.msrb.mxu3 %v6097_v54 }
0x1a12   :  { %2303 = vmatpush.msra.mxu2 %v6113_v63  ;;  %2323 = vmatpush.msrb.mxu3 %v6118_v56 }
0x1a13   :  { %4588 = vmatmul.msk.f32.vlgmr.msrb.gmra.mxu2 %vm294_vm10, %v2058_v35  ;;  %4589 = vmatmul.msk.f32.vlgmr.msra.gmra.mxu3 %vm294_vm10, %v2058_v35 }
0x1a14   :  { %2304 = vmatpush.msra.mxu2 %v6125_v60  ;;  %2324 = vmatpush.msrb.mxu3 %v6130_v3 }
0x1a16   :  { %2305 = vmatpush.msra.mxu2 %v6135_v4  ;;  %2325 = vmatpush.msrb.mxu3 %v6143_v29 }
0x1a18   :  { %2306 = vmatpush.msra.mxu2 %v6151_v59  ;;  %2326 = vmatpush.msrb.mxu3 %v6156_v5 }
0x1a1a   :  { %2307 = vmatpush.msra.mxu2 %v6163_v0  ;;  %2327 = vmatpush.msrb.mxu3 %v6168_v8 }
0x1a1c   :  { %2401 = vmatpush.msrb.mxu2 %v6070_v46  ;;  %2421 = vmatpush.msra.mxu3 %v6075_v48 }
0x1a1e   :  { %2402 = vmatpush.msrb.mxu2 %v6080_v39  ;;  %2422 = vmatpush.msra.mxu3 %v6087_v49 }
0x1a20   :  { %2403 = vmatpush.msrb.mxu2 %v6092_v53  ;;  %2423 = vmatpush.msra.mxu3 %v6097_v54 }
0x1a22   :  { %2404 = vmatpush.msrb.mxu2 %v6113_v63  ;;  %2424 = vmatpush.msra.mxu3 %v6118_v56 }
0x1a24   :  { %2405 = vmatpush.msrb.mxu2 %v6125_v60  ;;  %2425 = vmatpush.msra.mxu3 %v6130_v3 }
0x1a26   :  { %2406 = vmatpush.msrb.mxu2 %v6135_v4  ;;  %2426 = vmatpush.msra.mxu3 %v6143_v29 }
0x1a28   :  { %2407 = vmatpush.msrb.mxu2 %v6151_v59  ;;  %2427 = vmatpush.msra.mxu3 %v6156_v5 }
0x1a2a   :  { %2408 = vmatpush.msrb.mxu2 %v6163_v0  ;;  %2428 = vmatpush.msra.mxu3 %v6168_v8 }
0x1a8e   :  { %v6262_v25 = vpop.f32.mrf.mxu3  ;;  %v6268_v44 = vpop.f32.mrf.mxu2 }
0x1a96   :  { %v2228_v14 = vpop.f32.mrf.mxu3  ;;  %v2208_v50 = vpop.f32.mrf.mxu2 }
0x1a97   :  { %v2232_v41 = vadd.f32 %v2228_v14, %v2165_v38  ;;  %v2231_v17 = vadd.f32 %v2208_v50, %v2124_v21 }
0x1a99   :  { %4901 = vtanh.f32 %v2232_v41  ;;  %v4590_v42 = vmul.f32 -1.442695, %v2231_v17  ;;  %v4591_v34 = vmul.f32 -1.442695, %v2232_v41 }
0x1a9b   :  { %4903 = vpow2.f32 %v4590_v42 }
0x1a9f   :  { %v4902_v40 = vpop.eup %4901 }
0x1aa0   :  { %2274 = vrot.lane.b32.xlu0 %v4902_v40, %s5138_s23 }
0x1aa1   :  { %v4904_v57 = vpop.eup %4903 }
0x1aa2   :  { %v2239_v15 = vadd.f32 1.0, %v4904_v57 }
0x1aa4   :  { %4905 = vrcp.f32 %v2239_v15  ;;  %v2252_v27 = vand.u32 2147483648, %v2239_v15  ;;  %vm2246_vm7 = vweird.f32 %v2239_v15  ;;  %v2250_v18 = vand.u32 2147483647, %v2239_v15 }
0x1aa6   :  { %v2253_v11 = vor.u32 1.1754944e-38, %v2252_v27  ;;  %vm2251_vm9 = vcmp.eq.f32.partialorder %v2250_v18, 8.507059e+37  ;;  %v2126_v27 = vpop.f32.mrf.mxu1 }
0x1aa7   :  { %v2127_v18 = vadd.f32 %v2126_v27, %v6270_v45 }
0x1aaa   :  { %v4906_v19 = vpop.eup %4905 }
0x1aab   :  { %v2242_v20 = vmul.f32 %v4906_v19, %v2239_v15  ;;  %vm2247_vm6 = vweird.f32 %v4906_v19 }
0x1aac   :  { %vm2248_vm8 = vmor %vm2246_vm7, %vm2247_vm6 }
0x1aad   :  { %v2243_v9 = vsub.f32 1.0, %v2242_v20 }
0x1aaf   :  { %v2244_v1 = vmul.f32 %v4906_v19, %v2243_v9 }
0x1ab1   :  { %v2245_v26 = vadd.f32 %v4906_v19, %v2244_v1 }
0x1ab3   :  { %v2249_v23 = vsel %vm2248_vm8, %v4906_v19, %v2245_v26  ;;  %v2167_v19 = vpop.f32.mrf.mxu0 }
0x1ab4   :  { %v2254_v61 = vsel %vm2251_vm9, %v2253_v11, %v2249_v23  ;;  %v2168_v20 = vadd.f32 %v2167_v19, %v6264_v36 }
0x1ab5   :  { %v2272_v32 = vmul.f32 %v2254_v61, %v5974_v33 }
0x1b12   :  { %v2275_v30 = vpop.permute.xlu0 %2274 }
0x1b13   :  { %v2277_v31 = vmul.f32 %v2275_v30, %v2254_v61 }
0x1b15   :  { %2279 = vrot.lane.b32.xlu1 %v2277_v31, %s5138_s23 }
0x1b87   :  { %v2280_v43 = vpop.permute.xlu1 %2279 }
0x1b88   :  { %v6275_v2 = vadd.f32 %v2280_v43, %v2272_v32 }
0x1b8a   :  { %4907 = vtanh.f32 %v6275_v2 }
0x1b8b   :  { %4909 = vpow2.f32 %v4591_v34 }
0x1b90   :  { %v4908_v10 = vpop.eup %4907 }
0x1b91   :  { %2285 = vrot.lane.b32.xlu2 %v4908_v10, %s5138_s23  ;;  %v4910_v35 = vpop.eup %4909 }
0x1b92   :  { %v2240_v47 = vadd.f32 1.0, %v4910_v35 }
0x1b94   :  { %4911 = vrcp.f32 %v2240_v47  ;;  %v2267_v21 = vand.u32 2147483648, %v2240_v47  ;;  %vm2261_vm12 = vweird.f32 %v2240_v47  ;;  %v2265_v41 = vand.u32 2147483647, %v2240_v47 }
0x1b96   :  { %v2268_v17 = vor.u32 1.1754944e-38, %v2267_v21  ;;  %vm2266_vm14 = vcmp.eq.f32.partialorder %v2265_v41, 8.507059e+37 }
0x1b9a   :  { %v4912_v33 = vpop.eup %4911 }
0x1b9b   :  { %v2257_v38 = vmul.f32 %v4912_v33, %v2240_v47  ;;  %vm2262_vm11 = vweird.f32 %v4912_v33 }
0x1b9c   :  { %vm2263_vm13 = vmor %vm2261_vm12, %vm2262_vm11 }
0x1b9d   :  { %v2258_v14 = vsub.f32 1.0, %v2257_v38 }
0x1b9f   :  { %v2259_v40 = vmul.f32 %v4912_v33, %v2258_v14 }
0x1ba1   :  { %v2260_v55 = vadd.f32 %v4912_v33, %v2259_v40 }
0x1ba3   :  { %v2264_v50 = vsel %vm2263_vm13, %v4912_v33, %v2260_v55 }
0x1ba4   :  { %v2269_v42 = vsel %vm2266_vm14, %v2268_v17, %v2264_v50 }
0x1beb   :  { %v2286_v57 = vpop.permute.xlu2 %2285 }
0x1bec   :  { %v6284_v15 = vmul.f32 %v2286_v57, %v2269_v42 }
0x1bee   :  { %4592 = vmatmul.msk.f32.vlgmr.msra.gmra.mxu2 %vm294_vm10, %v6284_v15  ;;  %4593 = vmatmul.msk.f32.vlgmr.msrb.gmra.mxu3 %vm294_vm10, %v6284_v15 }
0x1bef   :  { %2522 = vmatpush.msra.mxu2 %v6075_v48  ;;  %2603 = vmatpush.msrb.mxu3 %v6070_v46 }
0x1bf1   :  { %2523 = vmatpush.msra.mxu2 %v6087_v49  ;;  %2604 = vmatpush.msrb.mxu3 %v6080_v39 }
0x1bf3   :  { %2524 = vmatpush.msra.mxu2 %v6097_v54  ;;  %2605 = vmatpush.msrb.mxu3 %v6092_v53 }
0x1bf5   :  { %2525 = vmatpush.msra.mxu2 %v6118_v56  ;;  %2606 = vmatpush.msrb.mxu3 %v6113_v63 }
0x1bf7   :  { %2526 = vmatpush.msra.mxu2 %v6130_v3  ;;  %2607 = vmatpush.msrb.mxu3 %v6125_v60 }
0x1bf9   :  { %2527 = vmatpush.msra.mxu2 %v6143_v29  ;;  %2608 = vmatpush.msrb.mxu3 %v6135_v4 }
0x1bfb   :  { %2528 = vmatpush.msra.mxu2 %v6156_v5  ;;  %2609 = vmatpush.msrb.mxu3 %v6151_v59 }
0x1bfd   :  { %2529 = vmatpush.msra.mxu2 %v6168_v8  ;;  %2610 = vmatpush.msrb.mxu3 %v6163_v0 }
0x1c71   :  { %v2329_v9 = vpop.f32.mrf.mxu3  ;;  %v2309_v23 = vpop.f32.mrf.mxu2 }
0x1c72   :  { %v2333_v1 = vadd.f32 %v2329_v9, %v2168_v20  ;;  %v2332_v11 = vadd.f32 %v2309_v23, %v2127_v18  ;;  %v2061_v20 = vld [vmem:[%s7169_s4 + $0x10] sm:$0xff] }
0x1c73   :  { %4573 = vmatmul.msk.f32.gmra.mxu1 %vm2076_vm2, %v2061_v20  ;;  %4582 = vmatmul.msk.f32.gmra.mxu0 %vm2076_vm2, %v2061_v20 }
0x1c74   :  { %4913 = vtanh.f32 %v2333_v1  ;;  %v4594_v30 = vmul.f32 -1.442695, %v2332_v11  ;;  %v4595_v42 = vmul.f32 -1.442695, %v2333_v1 }
0x1c76   :  { %4915 = vpow2.f32 %v4594_v30 }
0x1c7a   :  { %v4914_v26 = vpop.eup %4913 }
0x1c7b   :  { %2375 = vrot.lane.b32.xlu0 %v4914_v26, %s5138_s23 }
0x1c7c   :  { %v4916_v61 = vpop.eup %4915 }
0x1c7d   :  { %v2340_v31 = vadd.f32 1.0, %v4916_v61 }
0x1c7f   :  { %4917 = vrcp.f32 %v2340_v31  ;;  %v2353_v47 = vand.u32 2147483648, %v2340_v31  ;;  %vm2347_vm0 = vweird.f32 %v2340_v31  ;;  %v2351_v37 = vand.u32 2147483647, %v2340_v31 }
0x1c81   :  { %v2354_v38 = vor.u32 1.1754944e-38, %v2353_v47  ;;  %vm2352_vm4 = vcmp.eq.f32.partialorder %v2351_v37, 8.507059e+37 }
0x1c85   :  { %v4918_v32 = vpop.eup %4917 }
0x1c86   :  { %v2343_v43 = vmul.f32 %v4918_v32, %v2340_v31  ;;  %vm2348_vm15 = vweird.f32 %v4918_v32 }
0x1c87   :  { %vm2349_vm3 = vmor %vm2347_vm0, %vm2348_vm15 }
0x1c88   :  { %v2344_v10 = vsub.f32 1.0, %v2343_v43 }
0x1c8a   :  { %v2345_v34 = vmul.f32 %v4918_v32, %v2344_v10 }
0x1c8c   :  { %v2346_v35 = vadd.f32 %v4918_v32, %v2345_v34 }
0x1c8e   :  { %v2350_v33 = vsel %vm2349_vm3, %v4918_v32, %v2346_v35 }
0x1c8f   :  { %v2355_v40 = vsel %vm2352_vm4, %v2354_v38, %v2350_v33 }
0x1c90   :  { %v2373_v21 = vmul.f32 %v2355_v40, %v6275_v2 }
0x1ced   :  { %v2376_v14 = vpop.permute.xlu0 %2375 }
0x1cee   :  { %v2378_v55 = vmul.f32 %v2376_v14, %v2355_v40 }
0x1cf0   :  { %2380 = vrot.lane.b32.xlu1 %v2378_v55, %s5138_s23  ;;  %v2170_v43 = vpop.f32.mrf.mxu0  ;;  %v2129_v37 = vpop.f32.mrf.mxu1 }
0x1cf1   :  { %v2171_v10 = vadd.f32 %v2170_v43, %v6264_v36  ;;  %v2130_v33 = vadd.f32 %v2129_v37, %v6270_v45  ;;  %v2065_v43 = vld [vmem:[%s7169_s4 + $0x30] sm:$0xff] }
0x1d62   :  { %v2381_v41 = vpop.permute.xlu1 %2380 }
0x1d63   :  { %v6311_v50 = vadd.f32 %v2381_v41, %v2373_v21 }
0x1d65   :  { %4919 = vtanh.f32 %v6311_v50 }
0x1d66   :  { %4921 = vpow2.f32 %v4595_v42 }
0x1d6b   :  { %v4920_v17 = vpop.eup %4919 }
0x1d6c   :  { %2386 = vrot.lane.b32.xlu2 %v4920_v17, %s5138_s23  ;;  %v4922_v57 = vpop.eup %4921 }
0x1d6d   :  { %v2341_v19 = vadd.f32 1.0, %v4922_v57 }
0x1d6f   :  { %4923 = vrcp.f32 %v2341_v19  ;;  %v2368_v23 = vand.u32 2147483648, %v2341_v19  ;;  %vm2362_vm5 = vweird.f32 %v2341_v19  ;;  %v2366_v1 = vand.u32 2147483647, %v2341_v19 }
0x1d71   :  { %v2369_v30 = vor.u32 1.1754944e-38, %v2368_v23  ;;  %vm2367_vm7 = vcmp.eq.f32.partialorder %v2366_v1, 8.507059e+37  ;;  %v2062_v1 = vld [vmem:[%s7169_s4 + $0x18] sm:$0xff] }
0x1d72   :  { %4574 = vmatmul.msk.f32.gmra.mxu1 %vm2076_vm2, %v2062_v1  ;;  %4583 = vmatmul.msk.f32.gmra.mxu0 %vm2076_vm2, %v2062_v1 }
0x1d75   :  { %v4924_v2 = vpop.eup %4923 }
0x1d76   :  { %v2358_v9 = vmul.f32 %v4924_v2, %v2341_v19  ;;  %vm2363_vm1 = vweird.f32 %v4924_v2 }
0x1d77   :  { %vm2364_vm6 = vmor %vm2362_vm5, %vm2363_vm1 }
0x1d78   :  { %v2359_v26 = vsub.f32 1.0, %v2358_v9 }
0x1d7a   :  { %v2360_v27 = vmul.f32 %v4924_v2, %v2359_v26 }
0x1d7c   :  { %v2361_v18 = vadd.f32 %v4924_v2, %v2360_v27 }
0x1d7e   :  { %v2365_v11 = vsel %vm2364_vm6, %v4924_v2, %v2361_v18 }
0x1d7f   :  { %v2370_v61 = vsel %vm2367_vm7, %v2369_v30, %v2365_v11  ;;  %v2063_v11 = vld [vmem:[%s7169_s4 + $0x20] sm:$0xff]  ;;  %v2064_v30 = vld [vmem:[%s7169_s4 + $0x28] sm:$0xff] }
0x1d80   :  { %4575 = vmatmul.msk.f32.gmra.mxu1 %vm2076_vm2, %v2063_v11  ;;  %4584 = vmatmul.msk.f32.gmra.mxu0 %vm2076_vm2, %v2063_v11 }
0x1d88   :  { %4576 = vmatmul.msk.f32.gmra.mxu1 %vm2076_vm2, %v2064_v30  ;;  %4585 = vmatmul.msk.f32.gmra.mxu0 %vm2076_vm2, %v2064_v30 }
0x1d90   :  { %4577 = vmatmul.msk.f32.gmra.mxu1 %vm2076_vm2, %v2065_v43  ;;  %4586 = vmatmul.msk.f32.gmra.mxu0 %vm2076_vm2, %v2065_v43 }
0x1dc6   :  { %v2387_v31 = vpop.permute.xlu2 %2386 }
0x1dc7   :  { %v6320_v32 = vmul.f32 %v2387_v31, %v2370_v61 }
0x1dc9   :  { %4596 = vmatmul.msk.f32.vlgmr.msrb.gmra.mxu2 %vm294_vm10, %v6320_v32  ;;  %4597 = vmatmul.msk.f32.vlgmr.msra.gmra.mxu3 %vm294_vm10, %v6320_v32 }
0x1dca   :  { %2724 = vmatpush.msrb.mxu2 %v6075_v48  ;;  %2805 = vmatpush.msra.mxu3 %v6070_v46 }
0x1dcc   :  { %2725 = vmatpush.msrb.mxu2 %v6087_v49  ;;  %2806 = vmatpush.msra.mxu3 %v6080_v39 }
0x1dce   :  { %2726 = vmatpush.msrb.mxu2 %v6097_v54  ;;  %2807 = vmatpush.msra.mxu3 %v6092_v53 }
0x1dd0   :  { %2727 = vmatpush.msrb.mxu2 %v6118_v56  ;;  %2808 = vmatpush.msra.mxu3 %v6113_v63 }
0x1dd2   :  { %2728 = vmatpush.msrb.mxu2 %v6130_v3  ;;  %2809 = vmatpush.msra.mxu3 %v6125_v60 }
0x1dd4   :  { %2729 = vmatpush.msrb.mxu2 %v6143_v29  ;;  %2810 = vmatpush.msra.mxu3 %v6135_v4 }
0x1dd6   :  { %2730 = vmatpush.msrb.mxu2 %v6156_v5  ;;  %2811 = vmatpush.msra.mxu3 %v6151_v59 }
0x1dd8   :  { %2731 = vmatpush.msrb.mxu2 %v6168_v8  ;;  %2812 = vmatpush.msra.mxu3 %v6163_v0 }
0x1e4c   :  { %v2430_v34 = vpop.f32.mrf.mxu3  ;;  %v2410_v38 = vpop.f32.mrf.mxu2 }
0x1e4d   :  { %v2434_v35 = vadd.f32 %v2430_v34, %v2171_v10  ;;  %v2433_v14 = vadd.f32 %v2410_v38, %v2130_v33  ;;  %v2066_v34 = vld [vmem:[%s7169_s4 + $0x38] sm:$0xff] }
0x1e4e   :  { %4578 = vmatmul.msk.f32.gmra.mxu1 %vm2076_vm2, %v2066_v34  ;;  %4587 = vmatmul.msk.f32.gmra.mxu0 %vm2076_vm2, %v2066_v34 }
0x1e4f   :  { %4925 = vtanh.f32 %v2434_v35  ;;  %v4598_v40 = vmul.f32 -1.442695, %v2433_v14 }
0x1e51   :  { %4927 = vpow2.f32 %v4598_v40 }
0x1e55   :  { %v4926_v47 = vpop.eup %4925 }
0x1e56   :  { %2476 = vrot.lane.b32.xlu0 %v4926_v47, %s5138_s23 }
0x1e57   :  { %v4928_v55 = vpop.eup %4927 }
0x1e58   :  { %v2441_v21 = vadd.f32 1.0, %v4928_v55 }
0x1e5a   :  { %4929 = vrcp.f32 %v2441_v21  ;;  %v2454_v20 = vand.u32 2147483648, %v2441_v21  ;;  %vm2448_vm9 = vweird.f32 %v2441_v21  ;;  %v2452_v2 = vand.u32 2147483647, %v2441_v21 }
0x1e5c   :  { %v2455_v26 = vor.u32 1.1754944e-38, %v2454_v20  ;;  %vm2453_vm12 = vcmp.eq.f32.partialorder %v2452_v2, 8.507059e+37 }
0x1e60   :  { %v4930_v41 = vpop.eup %4929 }
0x1e61   :  { %v2444_v17 = vmul.f32 %v4930_v41, %v2441_v21  ;;  %vm2449_vm8 = vweird.f32 %v4930_v41 }
0x1e62   :  { %vm2450_vm11 = vmor %vm2448_vm9, %vm2449_vm8 }
0x1e63   :  { %v2445_v42 = vsub.f32 1.0, %v2444_v17 }
0x1e65   :  { %v2446_v57 = vmul.f32 %v4930_v41, %v2445_v42 }
0x1e67   :  { %v2447_v19 = vadd.f32 %v4930_v41, %v2446_v57 }
0x1e69   :  { %v2451_v9 = vsel %vm2450_vm11, %v4930_v41, %v2447_v19 }
0x1e6a   :  { %v2456_v18 = vsel %vm2453_vm12, %v2455_v26, %v2451_v9 }
0x1e6b   :  { %v2474_v61 = vmul.f32 %v2456_v18, %v6311_v50  ;;  %v4599_v50 = vmul.f32 -1.442695, %v2434_v35 }
0x1ec8   :  { %v2477_v27 = vpop.permute.xlu0 %2476 }
0x1ec9   :  { %v2479_v23 = vmul.f32 %v2477_v27, %v2456_v18 }
0x1ecb   :  { %2481 = vrot.lane.b32.xlu1 %v2479_v23, %s5138_s23 }
0x1f3d   :  { %v2482_v31 = vpop.permute.xlu1 %2481 }
0x1f3e   :  { %v6365_v10 = vadd.f32 %v2482_v31, %v2474_v61 }
0x1f40   :  { %4931 = vtanh.f32 %v6365_v10 }
0x1f41   :  { %4933 = vpow2.f32 %v4599_v50 }
0x1f46   :  { %v4932_v47 = vpop.eup %4931 }
0x1f47   :  { %2487 = vrot.lane.b32.xlu2 %v4932_v47, %s5138_s23  ;;  %v4934_v37 = vpop.eup %4933 }
0x1f48   :  { %v2442_v33 = vadd.f32 1.0, %v4934_v37 }
0x1f4a   :  { %4935 = vrcp.f32 %v2442_v33  ;;  %v2469_v41 = vand.u32 2147483648, %v2442_v33  ;;  %vm2463_vm14 = vweird.f32 %v2442_v33  ;;  %v2467_v17 = vand.u32 2147483647, %v2442_v33 }
0x1f4c   :  { %v2470_v57 = vor.u32 1.1754944e-38, %v2469_v41  ;;  %vm2468_vm0 = vcmp.eq.f32.partialorder %v2467_v17, 8.507059e+37 }
0x1f50   :  { %v4936_v38 = vpop.eup %4935 }
0x1f51   :  { %v2459_v14 = vmul.f32 %v4936_v38, %v2442_v33  ;;  %vm2464_vm13 = vweird.f32 %v4936_v38 }
0x1f52   :  { %vm2465_vm15 = vmor %vm2463_vm14, %vm2464_vm13 }
0x1f53   :  { %v2460_v40 = vsub.f32 1.0, %v2459_v14 }
0x1f55   :  { %v2461_v55 = vmul.f32 %v4936_v38, %v2460_v40 }
0x1f57   :  { %v2462_v21 = vadd.f32 %v4936_v38, %v2461_v55 }
0x1f59   :  { %v2466_v42 = vsel %vm2465_vm15, %v4936_v38, %v2462_v21 }
0x1f5a   :  { %v2471_v19 = vsel %vm2468_vm0, %v2470_v57, %v2466_v42 }
0x1fa1   :  { %v2488_v20 = vpop.permute.xlu2 %2487 }
0x1fa2   :  { %v6376_v35 = vmul.f32 %v2488_v20, %v2471_v19 }
0x1fa4   :  { %4600 = vmatmul.msk.f32.vlgmr.msra.gmra.mxu1 %vm294_vm10, %v6376_v35  ;;  %4601 = vmatmul.msk.f32.vlgmr.msra.gmra.mxu2 %vm294_vm10, %v6376_v35 }
0x1fa5   :  { %2906 = vmatpush.msra.mxu1 %v6070_v46  ;;  %2926 = vmatpush.msra.mxu2 %v6075_v48  ;;  %v2173_v46 = vpop.f32.mrf.mxu0 }
0x1fa6   :  { %v2174_v48 = vadd.f32 %v2173_v46, %v6264_v36 }
0x1fa7   :  { %2907 = vmatpush.msra.mxu1 %v6080_v39  ;;  %2927 = vmatpush.msra.mxu2 %v6087_v49 }
0x1fa9   :  { %2908 = vmatpush.msra.mxu1 %v6092_v53  ;;  %2928 = vmatpush.msra.mxu2 %v6097_v54  ;;  %v2132_v54 = vpop.f32.mrf.mxu1 }
0x1fab   :  { %2909 = vmatpush.msra.mxu1 %v6113_v63  ;;  %2929 = vmatpush.msra.mxu2 %v6118_v56 }
0x1fad   :  { %2910 = vmatpush.msra.mxu1 %v6125_v60  ;;  %2930 = vmatpush.msra.mxu2 %v6130_v3 }
0x1faf   :  { %2911 = vmatpush.msra.mxu1 %v6135_v4  ;;  %2931 = vmatpush.msra.mxu2 %v6143_v29  ;;  %v2133_v4 = vadd.f32 %v2132_v54, %v6270_v45 }
0x1fb1   :  { %2912 = vmatpush.msra.mxu1 %v6151_v59  ;;  %2932 = vmatpush.msra.mxu2 %v6156_v5  ;;  %v6400_v63 = vpop.f32.mrf.mxu1 }
0x1fb3   :  { %2913 = vmatpush.msra.mxu1 %v6163_v0  ;;  %2933 = vmatpush.msra.mxu2 %v6168_v8 }
0x1fb9   :  { %v6402_v56 = vpop.f32.mrf.mxu1 }
0x1fc1   :  { %v6404_v60 = vpop.f32.mrf.mxu1 }
0x1fc9   :  { %v6406_v3 = vpop.f32.mrf.mxu1 }
0x2021   :  { %v2511_v29 = vpop.f32.mrf.mxu1 }
0x2022   :  { %v2534_v59 = vadd.f32 %v2511_v29, %v2133_v4 }
0x2024   :  { %v4602_v5 = vmul.f32 -1.442695, %v2534_v59 }
0x2027   :  { %v2531_v39 = vpop.f32.mrf.mxu2 }
0x2028   :  { %v2535_v49 = vadd.f32 %v2531_v39, %v2174_v48  ;;  %v2176_v39 = vpop.f32.mrf.mxu0 }
0x2029   :  { %v2177_v4 = vadd.f32 %v2176_v39, %v6264_v36 }
0x202a   :  { %4937 = vtanh.f32 %v2535_v49  ;;  %v4603_v33 = vmul.f32 -1.442695, %v2535_v49 }
0x202b   :  { %4939 = vpow2.f32 %v4602_v5 }
0x2030   :  { %v4938_v53 = vpop.eup %4937  ;;  %v6418_v49 = vpop.f32.mrf.mxu0 }
0x2031   :  { %2577 = vrot.lane.b32.xlu0 %v4938_v53, %s5138_s23  ;;  %v4940_v0 = vpop.eup %4939 }
0x2032   :  { %v2542_v8 = vadd.f32 1.0, %v4940_v0 }
0x2034   :  { %4941 = vrcp.f32 %v2542_v8  ;;  %v2555_v23 = vand.u32 2147483648, %v2542_v8  ;;  %vm2549_vm3 = vweird.f32 %v2542_v8  ;;  %v2553_v1 = vand.u32 2147483647, %v2542_v8 }
0x2036   :  { %v2556_v30 = vor.u32 1.1754944e-38, %v2555_v23  ;;  %vm2554_vm1 = vcmp.eq.f32.partialorder %v2553_v1, 8.507059e+37 }
0x2038   :  { %v6420_v53 = vpop.f32.mrf.mxu0 }
0x203a   :  { %v4942_v2 = vpop.eup %4941 }
0x203b   :  { %v2545_v9 = vmul.f32 %v4942_v2, %v2542_v8  ;;  %vm2550_vm2 = vweird.f32 %v4942_v2  ;;  %v2136_v8 = vadd.f32 %v6400_v63, %v6270_v45 }
0x203c   :  { %vm2551_vm4 = vmor %vm2549_vm3, %vm2550_vm2 }
0x203d   :  { %v2546_v26 = vsub.f32 1.0, %v2545_v9 }
0x203f   :  { %v2547_v27 = vmul.f32 %v4942_v2, %v2546_v26 }
0x2040   :  { %v6422_v54 = vpop.f32.mrf.mxu0 }
0x2041   :  { %v2548_v18 = vadd.f32 %v4942_v2, %v2547_v27 }
0x2043   :  { %v2552_v11 = vsel %vm2551_vm4, %v4942_v2, %v2548_v18 }
0x2044   :  { %v2557_v31 = vsel %vm2554_vm1, %v2556_v30, %v2552_v11 }
0x2045   :  { %v2575_v34 = vmul.f32 %v2557_v31, %v6365_v10 }
0x20a3   :  { %v2578_v61 = vpop.permute.xlu0 %2577 }
0x20a4   :  { %v2580_v43 = vmul.f32 %v2578_v61, %v2557_v31 }
0x20a6   :  { %2582 = vrot.lane.b32.xlu1 %v2580_v43, %s5138_s23 }
0x2118   :  { %v2583_v47 = vpop.permute.xlu1 %2582 }
0x2119   :  { %v2585_v50 = vadd.f32 %v2583_v47, %v2575_v34 }
0x211b   :  { %4943 = vtanh.f32 %v2585_v50 }
0x211c   :  { %4945 = vpow2.f32 %v4603_v33 }
0x2121   :  { %v4944_v37 = vpop.eup %4943 }
0x2122   :  { %2588 = vrot.lane.b32.xlu2 %v4944_v37, %s5138_s23  ;;  %v4946_v38 = vpop.eup %4945 }
0x2123   :  { %v2543_v14 = vadd.f32 1.0, %v4946_v38 }
0x2125   :  { %4947 = vrcp.f32 %v2543_v14  ;;  %v2570_v42 = vand.u32 2147483648, %v2543_v14  ;;  %vm2564_vm6 = vweird.f32 %v2543_v14  ;;  %v2568_v10 = vand.u32 2147483647, %v2543_v14 }
0x2127   :  { %v2571_v19 = vor.u32 1.1754944e-38, %v2570_v42  ;;  %vm2569_vm8 = vcmp.eq.f32.partialorder %v2568_v10, 8.507059e+37 }
0x212b   :  { %v4948_v40 = vpop.eup %4947 }
0x212c   :  { %v2560_v55 = vmul.f32 %v4948_v40, %v2543_v14  ;;  %vm2565_vm5 = vweird.f32 %v4948_v40 }
0x212d   :  { %vm2566_vm7 = vmor %vm2564_vm6, %vm2565_vm5 }
0x212e   :  { %v2561_v21 = vsub.f32 1.0, %v2560_v55 }
0x2130   :  { %v2562_v41 = vmul.f32 %v4948_v40, %v2561_v21 }
0x2132   :  { %v2563_v17 = vadd.f32 %v4948_v40, %v2562_v41 }
0x2134   :  { %v2567_v57 = vsel %vm2566_vm7, %v4948_v40, %v2563_v17 }
0x2135   :  { %v2572_v20 = vsel %vm2569_vm8, %v2571_v19, %v2567_v57 }
0x217c   :  { %v2589_v46 = vpop.permute.xlu2 %2588 }
0x217d   :  { %v6412_v48 = vmul.f32 %v2589_v46, %v2572_v20 }
0x217f   :  { %4604 = vmatmul.msk.f32.vlgmr.msrb.gmra.mxu3 %vm294_vm10, %v6412_v48  ;;  %4605 = vmatmul.msk.f32.vlgmr.msra.gmra.mxu0 %vm294_vm10, %v6412_v48 }
0x21fc   :  { %v2632_v29 = vpop.f32.mrf.mxu0 }
0x21fd   :  { %v2636_v59 = vadd.f32 %v2632_v29, %v2177_v4 }
0x21ff   :  { %4949 = vtanh.f32 %v2636_v59  ;;  %v4607_v55 = vmul.f32 -1.442695, %v2636_v59 }
0x2202   :  { %v2612_v0 = vpop.f32.mrf.mxu3 }
0x2203   :  { %v2635_v2 = vadd.f32 %v2612_v0, %v2136_v8 }
0x2205   :  { %v4950_v5 = vpop.eup %4949  ;;  %v4606_v9 = vmul.f32 -1.442695, %v2635_v2 }
0x2206   :  { %2678 = vrot.lane.b32.xlu0 %v4950_v5, %s5138_s23  ;;  %v2180_v5 = vadd.f32 %v6418_v49, %v6264_v36 }
0x2207   :  { %4951 = vpow2.f32 %v4606_v9 }
0x220d   :  { %v4952_v26 = vpop.eup %4951 }
0x220e   :  { %v2643_v27 = vadd.f32 1.0, %v4952_v26  ;;  %v2139_v26 = vadd.f32 %v6402_v56, %v6270_v45  ;;  %v1191_v56 = vadd.f32 %v6004_v28, %v5856_v12  ;;  %v149_v12 = vld [vmem:[%s7171_s14 + $0x78] sm:$0xff]  ;;  %v146_v28 = vld [vmem:[%s7171_s14 + $0x60] sm:$0xff] }
0x220f   :  { %3053 = vmatpush.msra.mxu0 %v149_v12 }
0x2210   :  { %4953 = vrcp.f32 %v2643_v27  ;;  %v2656_v61 = vand.u32 2147483648, %v2643_v27  ;;  %vm2650_vm11 = vweird.f32 %v2643_v27  ;;  %v2654_v31 = vand.u32 2147483647, %v2643_v27 }
0x2212   :  { %v2657_v34 = vor.u32 1.1754944e-38, %v2656_v61  ;;  %vm2655_vm13 = vcmp.eq.f32.partialorder %v2654_v31, 8.507059e+37 }
0x2216   :  { %v4954_v18 = vpop.eup %4953 }
0x2217   :  { %v2646_v23 = vmul.f32 %v4954_v18, %v2643_v27  ;;  %vm2651_vm9 = vweird.f32 %v4954_v18 }
0x2218   :  { %vm2652_vm12 = vmor %vm2650_vm11, %vm2651_vm9 }
0x2219   :  { %v2647_v1 = vsub.f32 1.0, %v2646_v23 }
0x221b   :  { %v2648_v11 = vmul.f32 %v4954_v18, %v2647_v1 }
0x221d   :  { %v2649_v30 = vadd.f32 %v4954_v18, %v2648_v11 }
0x221f   :  { %v2653_v43 = vsel %vm2652_vm12, %v4954_v18, %v2649_v30 }
0x2220   :  { %v2658_v47 = vsel %vm2655_vm13, %v2657_v34, %v2653_v43 }
0x2221   :  { %v2676_v33 = vmul.f32 %v2658_v47, %v2585_v50 }
0x2278   :  { %v2679_v63 = vpop.permute.xlu0 %2678 }
0x2279   :  { %v2681_v37 = vmul.f32 %v2679_v63, %v2658_v47 }
0x227b   :  { %2683 = vrot.lane.b32.xlu1 %v2681_v37, %s5138_s23  ;;  %v6447_v37 = vadd.f32 %v6262_v25, %v1191_v56  ;;  %v147_v25 = vld [vmem:[%s7171_s14 + $0x68] sm:$0xff]  ;;  %v1150_v56 = vadd.f32 %v6012_v16, %v5862_v52 }
0x227c   :  { %3054 = vmatpush.msra.mxu0 %v147_v25 }
0x22ed   :  { %v2684_v38 = vpop.permute.xlu1 %2683 }
0x22ee   :  { %v6429_v14 = vadd.f32 %v2684_v38, %v2676_v33 }
0x22f0   :  { %4955 = vtanh.f32 %v6429_v14 }
0x22f1   :  { %4957 = vpow2.f32 %v4607_v55 }
0x22f6   :  { %v4956_v40 = vpop.eup %4955 }
0x22f7   :  { %2689 = vrot.lane.b32.xlu2 %v4956_v40, %s5138_s23  ;;  %v4958_v21 = vpop.eup %4957 }
0x22f8   :  { %v2644_v41 = vadd.f32 1.0, %v4958_v21  ;;  %v148_v21 = vld [vmem:[%s7171_s14 + $0x70] sm:$0xff] }
0x22f9   :  { %4708 = vmatpush.msrb.mxu3 %v148_v21 }
0x22fa   :  { %4959 = vrcp.f32 %v2644_v41  ;;  %v2671_v50 = vand.u32 2147483648, %v2644_v41  ;;  %vm2665_vm15 = vweird.f32 %v2644_v41  ;;  %v2669_v20 = vand.u32 2147483647, %v2644_v41 }
0x22fb   :  { %4709 = vmatpush.msrb.mxu3 %v146_v28 }
0x22fc   :  { %v2672_v39 = vor.u32 1.1754944e-38, %v2671_v50  ;;  %vm2670_vm2 = vcmp.eq.f32.partialorder %v2669_v20, 8.507059e+37 }
0x2300   :  { %v4960_v17 = vpop.eup %4959 }
0x2301   :  { %v2661_v42 = vmul.f32 %v4960_v17, %v2644_v41  ;;  %vm2666_vm14 = vweird.f32 %v4960_v17  ;;  %v144_v41 = vld [vmem:[%s7171_s14 + $0x50] sm:$0xff] }
0x2302   :  { %vm2667_vm0 = vmor %vm2665_vm15, %vm2666_vm14  ;;  %4710 = vmatpush.msrb.mxu3 %v144_v41 }
0x2303   :  { %v2662_v10 = vsub.f32 1.0, %v2661_v42 }
0x2305   :  { %v2663_v57 = vmul.f32 %v4960_v17, %v2662_v10 }
0x2307   :  { %v2664_v19 = vadd.f32 %v4960_v17, %v2663_v57 }
0x2309   :  { %v2668_v46 = vsel %vm2667_vm0, %v4960_v17, %v2664_v19  ;;  %v145_v17 = vld [vmem:[%s7171_s14 + $0x58] sm:$0xff] }
0x230a   :  { %v2673_v4 = vsel %vm2670_vm2, %v2672_v39, %v2668_v46  ;;  %3055 = vmatpush.msra.mxu0 %v145_v17  ;;  %v142_v39 = vld [vmem:[%s7171_s14 + $0x40] sm:$0xff] }
0x230b   :  { %4711 = vmatpush.msrb.mxu3 %v142_v39 }
0x2351   :  { %v2690_v29 = vpop.permute.xlu2 %2689 }
0x2352   :  { %v6433_v59 = vmul.f32 %v2690_v29, %v2673_v4  ;;  %v140_v4 = vld [vmem:[%s7171_s14 + $0x30] sm:$0xff]  ;;  %v141_v29 = vld [vmem:[%s7171_s14 + $0x38] sm:$0xff] }
0x2353   :  { %4712 = vmatpush.msrb.mxu3 %v140_v4 }
0x2354   :  { %4608 = vmatmul.msk.f32.vlgmr.msrb.gmra.mxu1 %vm294_vm10, %v6433_v59  ;;  %4609 = vmatmul.msk.f32.vlgmr.msrb.gmra.mxu2 %vm294_vm10, %v6433_v59 }
0x2355   :  { %3012 = vmatpush.msrb.mxu1 %v148_v21 }
0x2357   :  { %3013 = vmatpush.msrb.mxu1 %v146_v28 }
0x2359   :  { %3014 = vmatpush.msrb.mxu1 %v144_v41 }
0x235b   :  { %3015 = vmatpush.msrb.mxu1 %v142_v39 }
0x235d   :  { %3016 = vmatpush.msrb.mxu1 %v140_v4 }
0x23d1   :  { %v2713_v9 = vpop.f32.mrf.mxu1 }
0x23d2   :  { %v2736_v27 = vadd.f32 %v2713_v9, %v2139_v26  ;;  %v134_v9 = vld [vmem:[%s7171_s14] sm:$0xff]  ;;  %v135_v26 = vld [vmem:[%s7171_s14 + $0x8] sm:$0xff] }
0x23d4   :  { %v4610_v18 = vmul.f32 -1.442695, %v2736_v27 }
0x23d7   :  { %v2733_v0 = vpop.f32.mrf.mxu2 }
0x23d8   :  { %v2737_v8 = vadd.f32 %v2733_v0, %v2180_v5  ;;  %v138_v5 = vld [vmem:[%s7171_s14 + $0x20] sm:$0xff]  ;;  %v139_v0 = vld [vmem:[%s7171_s14 + $0x28] sm:$0xff] }
0x23d9   :  { %4713 = vmatpush.msrb.mxu3 %v138_v5  ;;  %3017 = vmatpush.msrb.mxu1 %v138_v5 }
0x23da   :  { %4961 = vtanh.f32 %v2737_v8  ;;  %v4611_v50 = vmul.f32 -1.442695, %v2737_v8  ;;  %v136_v8 = vld [vmem:[%s7171_s14 + $0x10] sm:$0xff] }
0x23db   :  { %4963 = vpow2.f32 %v4610_v18  ;;  %4714 = vmatpush.msrb.mxu3 %v136_v8  ;;  %3018 = vmatpush.msrb.mxu1 %v136_v8 }
0x23dd   :  { %4715 = vmatpush.msrb.mxu3 %v134_v9  ;;  %3019 = vmatpush.msrb.mxu1 %v134_v9 }
0x23e0   :  { %v4962_v2 = vpop.eup %4961 }
0x23e1   :  { %2779 = vrot.lane.b32.xlu0 %v4962_v2, %s5138_s23  ;;  %v4964_v23 = vpop.eup %4963  ;;  %v137_v2 = vld [vmem:[%s7171_s14 + $0x18] sm:$0xff] }
0x23e2   :  { %v2744_v1 = vadd.f32 1.0, %v4964_v23 }
0x23e4   :  { %4965 = vrcp.f32 %v2744_v1  ;;  %v2757_v43 = vand.u32 2147483648, %v2744_v1  ;;  %vm2751_vm4 = vweird.f32 %v2744_v1  ;;  %v2755_v34 = vand.u32 2147483647, %v2744_v1 }
0x23e5   :  { %4967 = vtanh.f32 %v6447_v37 }
0x23e6   :  { %v2758_v47 = vor.u32 1.1754944e-38, %v2757_v43  ;;  %vm2756_vm5 = vcmp.eq.f32.partialorder %v2755_v34, 8.507059e+37 }
0x23ea   :  { %v4966_v11 = vpop.eup %4965 }
0x23eb   :  { %v2747_v30 = vmul.f32 %v4966_v11, %v2744_v1  ;;  %vm2752_vm3 = vweird.f32 %v4966_v11  ;;  %v4968_v55 = vpop.eup %4967 }
0x23ec   :  { %vm2753_vm1 = vmor %vm2751_vm4, %vm2752_vm3 }
0x23ed   :  { %v2748_v61 = vsub.f32 1.0, %v2747_v30 }
0x23ef   :  { %v2749_v49 = vmul.f32 %v4966_v11, %v2748_v61 }
0x23f1   :  { %v2750_v31 = vadd.f32 %v4966_v11, %v2749_v49 }
0x23f3   :  { %v2754_v63 = vsel %vm2753_vm1, %v4966_v11, %v2750_v31 }
0x23f4   :  { %v2759_v38 = vsel %vm2756_vm5, %v2758_v47, %v2754_v63  ;;  %v1940_v47 = vadd.f32 %v6268_v44, %v1150_v56 }
0x23f5   :  { %v2777_v42 = vmul.f32 %v2759_v38, %v6429_v14  ;;  %v143_v14 = vld [vmem:[%s7171_s14 + $0x48] sm:$0xff] }
0x23f6   :  { %3056 = vmatpush.msra.mxu0 %v143_v14 }
0x23f8   :  { %3057 = vmatpush.msra.mxu0 %v141_v29 }
0x23fa   :  { %3058 = vmatpush.msra.mxu0 %v139_v0 }
0x23fc   :  { %3059 = vmatpush.msra.mxu0 %v137_v2 }
0x23fe   :  { %3060 = vmatpush.msra.mxu0 %v135_v26 }
0x2453   :  { %v2780_v33 = vpop.permute.xlu0 %2779 }
0x2454   :  { %v2782_v40 = vmul.f32 %v2780_v33, %v2759_v38  ;;  %v4567_v33 = vmul.f32 -1.442695, %v1940_v47 }
0x2456   :  { %2784 = vrot.lane.b32.xlu1 %v2782_v40, %s5138_s23 }
0x245e   :  { %1983 = vrot.lane.b32.xlu1 %v4968_v55, %s5138_s23 }
0x24c8   :  { %v2785_v10 = vpop.permute.xlu1 %2784 }
0x24c9   :  { %v6471_v57 = vadd.f32 %v2785_v10, %v2777_v42 }
0x24cb   :  { %4969 = vtanh.f32 %v6471_v57 }
0x24cc   :  { %4971 = vpow2.f32 %v4611_v50 }
0x24d0   :  { %v1984_v10 = vpop.permute.xlu1 %1983 }
0x24d1   :  { %v4970_v19 = vpop.eup %4969 }
0x24d2   :  { %2790 = vrot.lane.b32.xlu2 %v4970_v19, %s5138_s23  ;;  %v4972_v20 = vpop.eup %4971 }
0x24d3   :  { %v2745_v46 = vadd.f32 1.0, %v4972_v20  ;;  %v2142_v20 = vadd.f32 %v6404_v60, %v6270_v45 }
0x24d5   :  { %4973 = vrcp.f32 %v2745_v46  ;;  %v2772_v30 = vand.u32 2147483648, %v2745_v46  ;;  %vm2766_vm7 = vweird.f32 %v2745_v46  ;;  %v2770_v61 = vand.u32 2147483647, %v2745_v46 }
0x24d6   :  { %4975 = vpow2.f32 %v4567_v33 }
0x24d7   :  { %v2773_v31 = vor.u32 1.1754944e-38, %v2772_v30  ;;  %vm2771_vm9 = vcmp.eq.f32.partialorder %v2770_v61, 8.507059e+37 }
0x24db   :  { %v4974_v27 = vpop.eup %4973 }
0x24dc   :  { %v2762_v18 = vmul.f32 %v4974_v27, %v2745_v46  ;;  %vm2767_vm6 = vweird.f32 %v4974_v27  ;;  %v4976_v38 = vpop.eup %4975 }
0x24dd   :  { %vm2768_vm8 = vmor %vm2766_vm7, %vm2767_vm6  ;;  %v1948_v40 = vadd.f32 1.0, %v4976_v38  ;;  %v4568_v38 = vmul.f32 -1.442695, %v6447_v37  ;;  %v6584_v37 = vld [vmem:[%s7172_s15 + $0x28] sm:$0xff] }
0x24de   :  { %v2763_v23 = vsub.f32 1.0, %v2762_v18 }
0x24df   :  { %4977 = vrcp.f32 %v1948_v40  ;;  %v1961_v44 = vand.u32 2147483648, %v1948_v40  ;;  %vm1955_vm12 = vweird.f32 %v1948_v40  ;;  %v1959_v41 = vand.u32 2147483647, %v1948_v40 }
0x24e0   :  { %v2764_v1 = vmul.f32 %v4974_v27, %v2763_v23 }
0x24e1   :  { %v1962_v42 = vor.u32 1.1754944e-38, %v1961_v44  ;;  %vm1960_vm14 = vcmp.eq.f32.partialorder %v1959_v41, 8.507059e+37  ;;  %v6614_v41 = vld [vmem:[%s7172_s15 + $0x70] sm:$0xff] }
0x24e2   :  { %v2765_v11 = vadd.f32 %v4974_v27, %v2764_v1 }
0x24e4   :  { %v2769_v49 = vsel %vm2768_vm8, %v4974_v27, %v2765_v11 }
0x24e5   :  { %v2774_v43 = vsel %vm2771_vm9, %v2773_v31, %v2769_v49  ;;  %v4978_v55 = vpop.eup %4977  ;;  %v6544_v31 = vld [vmem:[%s7172_s15 + $0x78] sm:$0xff] }
0x24e6   :  { %v1951_v21 = vmul.f32 %v4978_v55, %v1948_v40  ;;  %vm1956_vm11 = vweird.f32 %v4978_v55  ;;  %3116 = vmatpush.msrb.mxu2 %v6544_v31 }
0x24e7   :  { %vm1957_vm13 = vmor %vm1955_vm12, %vm1956_vm11 }
0x24e8   :  { %v1952_v12 = vsub.f32 1.0, %v1951_v21  ;;  %v6579_v21 = vld [vmem:[%s7172_s15 + $0x38] sm:$0xff] }
0x24ea   :  { %v1953_v25 = vmul.f32 %v4978_v55, %v1952_v12  ;;  %v6591_v12 = vld [vmem:[%s7172_s15 + $0x18] sm:$0xff] }
0x24ec   :  { %v1954_v52 = vadd.f32 %v4978_v55, %v1953_v25 }
0x24ee   :  { %v1958_v17 = vsel %vm1957_vm13, %v4978_v55, %v1954_v52 }
0x252c   :  { %v2791_v34 = vpop.permute.xlu2 %2790 }
0x252d   :  { %v2793_v63 = vmul.f32 %v2791_v34, %v2774_v43  ;;  %v6549_v43 = vld [vmem:[%s7172_s15 + $0x68] sm:$0xff] }
0x252e   :  { %3117 = vmatpush.msrb.mxu2 %v6549_v43 }
0x252f   :  { %4612 = vmatmul.msk.f32.vlgmr.msra.gmra.mxu3 %vm294_vm10, %v2793_v63  ;;  %4613 = vmatmul.msk.f32.vlgmr.msrb.gmra.mxu0 %vm294_vm10, %v2793_v63 }
0x2530   :  { %3520 = vmatpush.msrb.mxu0 %v6544_v31  ;;  %3500 = vmatpush.msra.mxu3 %v6614_v41 }
0x2532   :  { %3521 = vmatpush.msrb.mxu0 %v6549_v43 }
0x2537   :  { %4623 = vmatmul.msk.f32.vlgmr.msrb.gmra.mxu3 %vm294_vm10, %v6412_v48  ;;  %4628 = vmatmul.msk.f32.vlgmr.msra.gmra.mxu0 %vm294_vm10, %v6284_v15 }
0x253f   :  { %4624 = vmatmul.msk.f32.gmra.mxu3 %vm294_vm10, %v6433_v59  ;;  %4629 = vmatmul.msk.f32.gmra.mxu0 %vm294_vm10, %v6320_v32 }
0x2547   :  { %4625 = vmatmul.msk.f32.gmra.mxu3 %vm294_vm10, %v2793_v63  ;;  %4630 = vmatmul.msk.f32.gmra.mxu0 %vm294_vm10, %v6376_v35 }
0x254f   :  { %4631 = vmatmul.msk.f32.gmra.mxu0 %vm294_vm10, %v6412_v48  ;;  %v2183_v48 = vadd.f32 %v6420_v53, %v6264_v36  ;;  %v1963_v53 = vsel %vm1960_vm14, %v1962_v42, %v1958_v17 }
0x2550   :  { %v1986_v19 = vmul.f32 %v1984_v10, %v1963_v53  ;;  %v1981_v11 = vmul.f32 %v1963_v53, %v6104_v22  ;;  %v6556_v22 = vld [vmem:[%s7172_s15 + $0x58] sm:$0xff]  ;;  %v6622_v10 = vld [vmem:[%s7172_s15 + $0x60] sm:$0xff]  ;;  %v6629_v53 = vld [vmem:[%s7172_s15 + $0x50] sm:$0xff] }
0x2551   :  { %3118 = vmatpush.msrb.mxu2 %v6556_v22  ;;  %3522 = vmatpush.msrb.mxu0 %v6556_v22 }
0x2552   :  { %3501 = vmatpush.msra.mxu3 %v6622_v10 }
0x2554   :  { %3502 = vmatpush.msra.mxu3 %v6629_v53 }
0x2557   :  { %4632 = vmatmul.msk.f32.gmra.mxu0 %vm294_vm10, %v6433_v59 }
0x255f   :  { %4633 = vmatmul.msk.f32.gmra.mxu0 %vm294_vm10, %v2793_v63 }
0x25ac   :  { %v2834_v28 = vpop.f32.mrf.mxu0 }
0x25ad   :  { %v6528_v59 = vadd.f32 %v2834_v28, %v2183_v48 }
0x25af   :  { %4979 = vtanh.f32 %v6528_v59  ;;  %v4615_v33 = vmul.f32 -1.442695, %v6528_v59  ;;  %v6600_v59 = vld [vmem:[%s7172_s15 + $0x8] sm:$0xff] }
0x25b2   :  { %v2814_v50 = vpop.f32.mrf.mxu3 }
0x25b3   :  { %v2837_v46 = vadd.f32 %v2814_v50, %v2142_v20  ;;  %v6636_v20 = vld [vmem:[%s7172_s15 + $0x40] sm:$0xff] }
0x25b4   :  { %3503 = vmatpush.msra.mxu3 %v6636_v20 }
0x25b5   :  { %v4980_v16 = vpop.eup %4979  ;;  %v4614_v39 = vmul.f32 -1.442695, %v2837_v46 }
0x25b6   :  { %2880 = vrot.lane.b32.xlu0 %v4980_v16, %s5138_s23 }
0x25b7   :  { %4981 = vpow2.f32 %v4614_v39 }
0x25bd   :  { %v4982_v14 = vpop.eup %4981 }
0x25be   :  { %1988 = vrot.lane.b32.xlu0 %v1986_v19, %s5138_s23  ;;  %v2845_v4 = vadd.f32 1.0, %v4982_v14  ;;  %v6643_v14 = vld [vmem:[%s7172_s15 + $0x30] sm:$0xff] }
0x25bf   :  { %3504 = vmatpush.msra.mxu3 %v6643_v14 }
0x25c0   :  { %4983 = vrcp.f32 %v2845_v4  ;;  %v2858_v9 = vand.u32 2147483648, %v2845_v4  ;;  %vm2852_vm0 = vweird.f32 %v2845_v4  ;;  %v2856_v26 = vand.u32 2147483647, %v2845_v4 }
0x25c2   :  { %v2859_v18 = vor.u32 1.1754944e-38, %v2858_v9  ;;  %vm2857_vm3 = vcmp.eq.f32.partialorder %v2856_v26, 8.507059e+37 }
0x25c6   :  { %v4984_v29 = vpop.eup %4983 }
0x25c7   :  { %v2848_v5 = vmul.f32 %v4984_v29, %v2845_v4  ;;  %vm2853_vm15 = vweird.f32 %v4984_v29 }
0x25c8   :  { %vm2854_vm2 = vmor %vm2852_vm0, %vm2853_vm15 }
0x25c9   :  { %v2849_v0 = vsub.f32 1.0, %v2848_v5  ;;  %v6649_v5 = vld [vmem:[%s7172_s15 + $0x20] sm:$0xff] }
0x25ca   :  { %3505 = vmatpush.msra.mxu3 %v6649_v5 }
0x25cb   :  { %v2850_v8 = vmul.f32 %v4984_v29, %v2849_v0 }
0x25cd   :  { %v2851_v2 = vadd.f32 %v4984_v29, %v2850_v8  ;;  %v6655_v8 = vld [vmem:[%s7172_s15 + $0x10] sm:$0xff] }
0x25ce   :  { %3506 = vmatpush.msra.mxu3 %v6655_v8 }
0x25cf   :  { %v2855_v27 = vsel %vm2854_vm2, %v4984_v29, %v2851_v2 }
0x25d0   :  { %v2860_v23 = vsel %vm2857_vm3, %v2859_v18, %v2855_v27  ;;  %v6661_v18 = vld [vmem:[%s7172_s15] sm:$0xff] }
0x25d1   :  { %v2878_v34 = vmul.f32 %v2860_v23, %v6471_v57  ;;  %v6572_v57 = vld [vmem:[%s7172_s15 + $0x48] sm:$0xff]  ;;  %3507 = vmatpush.msra.mxu3 %v6661_v18 }
0x25d2   :  { %3119 = vmatpush.msrb.mxu2 %v6572_v57  ;;  %3523 = vmatpush.msrb.mxu0 %v6572_v57 }
0x25d3   :  { %3702 = vmatpush.msrb.mxu3 %v6614_v41 }
0x25d4   :  { %3120 = vmatpush.msrb.mxu2 %v6579_v21  ;;  %3524 = vmatpush.msrb.mxu0 %v6579_v21 }
0x25d5   :  { %3703 = vmatpush.msrb.mxu3 %v6622_v10 }
0x25d6   :  { %3121 = vmatpush.msrb.mxu2 %v6584_v37  ;;  %3525 = vmatpush.msrb.mxu0 %v6584_v37 }
0x25d7   :  { %3704 = vmatpush.msrb.mxu3 %v6629_v53 }
0x25d8   :  { %3122 = vmatpush.msrb.mxu2 %v6591_v12  ;;  %3526 = vmatpush.msrb.mxu0 %v6591_v12 }
0x25d9   :  { %3705 = vmatpush.msrb.mxu3 %v6636_v20 }
0x25da   :  { %3123 = vmatpush.msrb.mxu2 %v6600_v59  ;;  %3527 = vmatpush.msrb.mxu0 %v6600_v59 }
0x25db   :  { %3706 = vmatpush.msrb.mxu3 %v6643_v14 }
0x25dc   :  { %3722 = vmatpush.msra.mxu0 %v6544_v31 }
0x25dd   :  { %3707 = vmatpush.msrb.mxu3 %v6649_v5 }
0x25de   :  { %3723 = vmatpush.msra.mxu0 %v6549_v43 }
0x25df   :  { %3708 = vmatpush.msrb.mxu3 %v6655_v8 }
0x25e0   :  { %3724 = vmatpush.msra.mxu0 %v6556_v22 }
0x25e1   :  { %3709 = vmatpush.msrb.mxu3 %v6661_v18 }
0x25e2   :  { %3725 = vmatpush.msra.mxu0 %v6572_v57 }
0x25e4   :  { %3726 = vmatpush.msra.mxu0 %v6579_v21 }
0x25e6   :  { %3727 = vmatpush.msra.mxu0 %v6584_v37 }
0x25e8   :  { %3728 = vmatpush.msra.mxu0 %v6591_v12 }
0x25ea   :  { %3729 = vmatpush.msra.mxu0 %v6600_v59 }
0x2628   :  { %v2881_v60 = vpop.permute.xlu0 %2880 }
0x2629   :  { %v2883_v1 = vmul.f32 %v2881_v60, %v2860_v23 }
0x262b   :  { %2885 = vrot.lane.b32.xlu2 %v2883_v1, %s5138_s23 }
0x2630   :  { %v1989_v30 = vpop.permute.xlu0 %1988 }
0x2631   :  { %v6537_v61 = vadd.f32 %v1989_v30, %v1981_v11 }
0x2633   :  { %4985 = vtanh.f32 %v6537_v61 }
0x2639   :  { %v4986_v49 = vpop.eup %4985 }
0x263a   :  { %1994 = vrot.lane.b32.xlu2 %v4986_v49, %s5138_s23 }
0x2685   :  { %v2886_v63 = vpop.permute.xlu2 %2885 }
0x2686   :  { %v6563_v56 = vadd.f32 %v2886_v63, %v2878_v34  ;;  %v3062_v63 = vpop.f32.mrf.mxu0 }
0x2688   :  { %4987 = vtanh.f32 %v6563_v56 }
0x2689   :  { %4989 = vpow2.f32 %v4615_v33 }
0x268a   :  { %4991 = vpow2.f32 %v4568_v38 }
0x268e   :  { %v4988_v47 = vpop.eup %4987 }
0x268f   :  { %2891 = vrot.lane.b32.xlu1 %v4988_v47, %s5138_s23  ;;  %v4990_v40 = vpop.eup %4989 }
0x2690   :  { %v2846_v55 = vadd.f32 1.0, %v4990_v40  ;;  %v4992_v48 = vpop.eup %4991 }
0x2691   :  { %v6595_v28 = vadd.f32 1.0, %v4992_v48 }
0x2692   :  { %4993 = vrcp.f32 %v2846_v55  ;;  %v2873_v46 = vand.u32 2147483648, %v2846_v55  ;;  %vm2867_vm1 = vweird.f32 %v2846_v55  ;;  %v2871_v39 = vand.u32 2147483647, %v2846_v55 }
0x2693   :  { %4995 = vrcp.f32 %v6595_v28  ;;  %v1976_v60 = vand.u32 2147483648, %v6595_v28  ;;  %vm1970_vm8 = vweird.f32 %v6595_v28  ;;  %v1974_v23 = vand.u32 2147483647, %v6595_v28 }
0x2694   :  { %v2874_v0 = vor.u32 1.1754944e-38, %v2873_v46  ;;  %vm2872_vm6 = vcmp.eq.f32.partialorder %v2871_v39, 8.507059e+37  ;;  %v1995_v30 = vpop.permute.xlu2 %1994 }
0x2695   :  { %v1977_v11 = vor.u32 1.1754944e-38, %v1976_v60  ;;  %vm1975_vm11 = vcmp.eq.f32.partialorder %v1974_v23, 8.507059e+37 }
0x2698   :  { %v4994_v25 = vpop.eup %4993 }
0x2699   :  { %v2863_v52 = vmul.f32 %v4994_v25, %v2846_v55  ;;  %v4996_v44 = vpop.eup %4995  ;;  %vm2868_vm4 = vweird.f32 %v4994_v25 }
0x269a   :  { %v1966_v17 = vmul.f32 %v4996_v44, %v6595_v28  ;;  %vm2869_vm5 = vmor %vm2867_vm1, %vm2868_vm4  ;;  %vm1971_vm7 = vweird.f32 %v4996_v44 }
0x269b   :  { %v2864_v16 = vsub.f32 1.0, %v2863_v52  ;;  %vm1972_vm9 = vmor %vm1970_vm8, %vm1971_vm7 }
0x269c   :  { %v1967_v19 = vsub.f32 1.0, %v1966_v17 }
0x269d   :  { %v2865_v42 = vmul.f32 %v4994_v25, %v2864_v16 }
0x269e   :  { %v1968_v4 = vmul.f32 %v4996_v44, %v1967_v19 }
0x269f   :  { %v2866_v50 = vadd.f32 %v4994_v25, %v2865_v42 }
0x26a0   :  { %v1969_v26 = vadd.f32 %v4996_v44, %v1968_v4 }
0x26a1   :  { %v2870_v29 = vsel %vm2869_vm5, %v4994_v25, %v2866_v50 }
0x26a2   :  { %v2875_v2 = vsel %vm2872_vm6, %v2874_v0, %v2870_v29  ;;  %v1973_v1 = vsel %vm1972_vm9, %v4996_v44, %v1969_v26 }
0x26a3   :  { %v1978_v49 = vsel %vm1975_vm11, %v1977_v11, %v1973_v1 }
0x26a4   :  { %v6677_v34 = vmul.f32 %v1995_v30, %v1978_v49 }
0x2701   :  { %v2892_v9 = vpop.permute.xlu1 %2891 }
0x2702   :  { %v2894_v27 = vmul.f32 %v2892_v9, %v2875_v2 }
0x2704   :  { %4616 = vmatmul.msk.f32.vlgmr.msra.gmra.mxu1 %vm294_vm10, %v2894_v27  ;;  %4617 = vmatmul.msk.f32.vlgmr.msra.gmra.mxu2 %vm294_vm10, %v2894_v27 }
0x2705   :  { %4626 = vmatmul.msk.f32.gmra.mxu3 %vm294_vm10, %v2894_v27  ;;  %4634 = vmatmul.msk.f32.gmra.mxu0 %vm294_vm10, %v2894_v27 }
0x2706   :  { %3096 = vmatpush.msra.mxu1 %v6614_v41  ;;  %3217 = vmatpush.msra.mxu2 %v6544_v31 }
0x2708   :  { %3097 = vmatpush.msra.mxu1 %v6622_v10  ;;  %3218 = vmatpush.msra.mxu2 %v6549_v43 }
0x270a   :  { %3098 = vmatpush.msra.mxu1 %v6629_v53  ;;  %3219 = vmatpush.msra.mxu2 %v6556_v22 }
0x270c   :  { %4620 = vmatmul.msk.f32.vlgmr.msrb.gmra.mxu1 %vm294_vm10, %v6284_v15  ;;  %4637 = vmatmul.msk.f32.vlgmr.msrb.gmra.mxu2 %vm294_vm10, %v6677_v34  ;;  %v166_v15 = vld [vmem:[%s7173_s16] sm:$0x3]  ;;  %s5139_s16 = smov 96  }
0x270d   :  { %3099 = vmatpush.msra.mxu1 %v6636_v20  ;;  %3220 = vmatpush.msra.mxu2 %v6572_v57  ;;  %v6746_v52 = vperm.slane %v166_v15, 0 }
0x270f   :  { %3100 = vmatpush.msra.mxu1 %v6643_v14  ;;  %3221 = vmatpush.msra.mxu2 %v6579_v21 }
0x2711   :  { %3101 = vmatpush.msra.mxu1 %v6649_v5  ;;  %3222 = vmatpush.msra.mxu2 %v6584_v37 }
0x2713   :  { %3102 = vmatpush.msra.mxu1 %v6655_v8  ;;  %3223 = vmatpush.msra.mxu2 %v6591_v12 }
0x2714   :  { %4621 = vmatmul.msk.f32.gmra.mxu1 %vm294_vm10, %v6320_v32 }
0x2715   :  { %3103 = vmatpush.msra.mxu1 %v6661_v18  ;;  %3224 = vmatpush.msra.mxu2 %v6600_v59 }
0x2717   :  { %3197 = vmatpush.msrb.mxu1 %v6614_v41  ;;  %3318 = vmatpush.msrb.mxu2 %v6544_v31 }
0x2719   :  { %3198 = vmatpush.msrb.mxu1 %v6622_v10  ;;  %3319 = vmatpush.msrb.mxu2 %v6549_v43 }
0x271b   :  { %3199 = vmatpush.msrb.mxu1 %v6629_v53  ;;  %3320 = vmatpush.msrb.mxu2 %v6556_v22 }
0x271c   :  { %4622 = vmatmul.msk.f32.gmra.mxu1 %vm294_vm10, %v6376_v35  ;;  %v6736_v35 = vperm.slane %v166_v15, 1 }
0x271d   :  { %3321 = vmatpush.msrb.mxu2 %v6572_v57  ;;  %3200 = vmatpush.msrb.mxu1 %v6636_v20 }
0x271e   :  { %v3063_v47 = vadd.f32 %v3062_v63, %v6736_v35 }
0x271f   :  { %3322 = vmatpush.msrb.mxu2 %v6579_v21  ;;  %3201 = vmatpush.msrb.mxu1 %v6643_v14 }
0x2721   :  { %3323 = vmatpush.msrb.mxu2 %v6584_v37  ;;  %3202 = vmatpush.msrb.mxu1 %v6649_v5 }
0x2723   :  { %3324 = vmatpush.msrb.mxu2 %v6591_v12  ;;  %3203 = vmatpush.msrb.mxu1 %v6655_v8 }
0x2724   :  { %4636 = vmatmul.msk.f32.vlgmr.msra.gmra.mxu1 %vm294_vm10, %v6677_v34 }
0x2725   :  { %3325 = vmatpush.msrb.mxu2 %v6600_v59  ;;  %3204 = vmatpush.msrb.mxu1 %v6661_v18 }
0x2727   :  { %3298 = vmatpush.msra.mxu1 %v6614_v41 }
0x2729   :  { %3299 = vmatpush.msra.mxu1 %v6622_v10 }
0x272b   :  { %3300 = vmatpush.msra.mxu1 %v6629_v53 }
0x272d   :  { %3301 = vmatpush.msra.mxu1 %v6636_v20 }
0x272f   :  { %3302 = vmatpush.msra.mxu1 %v6643_v14 }
0x2731   :  { %3303 = vmatpush.msra.mxu1 %v6649_v5 }
0x2733   :  { %3304 = vmatpush.msra.mxu1 %v6655_v8 }
0x2735   :  { %3305 = vmatpush.msra.mxu1 %v6661_v18 }
0x2781   :  { %v6740_v55 = vpop.f32.mrf.mxu1 }
0x2787   :  { %v6734_v32 = vpop.f32.mrf.mxu2 }
0x2789   :  { %v3021_v48 = vpop.f32.mrf.mxu1 }
0x278a   :  { %v3022_v44 = vadd.f32 %v3021_v48, %v6746_v52 }
0x278f   :  { %v3125_v33 = vpop.f32.mrf.mxu2 }
0x2790   :  { %v3129_v38 = vadd.f32 %v3125_v33, %v3063_v47 }
0x2791   :  { %v6742_v28 = vpop.f32.mrf.mxu1 }
0x2792   :  { %4997 = vtanh.f32 %v3129_v38  ;;  %v4639_v63 = vmul.f32 -1.442695, %v3129_v38 }
0x2798   :  { %v4998_v40 = vpop.eup %4997 }
0x2799   :  { %3171 = vrot.lane.b32.xlu0 %v4998_v40, %s5138_s23  ;;  %v6744_v25 = vpop.f32.mrf.mxu1 }
0x27a1   :  { %v3105_v16 = vpop.f32.mrf.mxu1 }
0x27a2   :  { %v3128_v17 = vadd.f32 %v3105_v16, %v3022_v44 }
0x27a4   :  { %v4638_v42 = vmul.f32 -1.442695, %v3128_v17 }
0x27a6   :  { %4999 = vpow2.f32 %v4638_v42 }
0x27ac   :  { %v5000_v19 = vpop.eup %4999 }
0x27ad   :  { %v3136_v50 = vadd.f32 1.0, %v5000_v19 }
0x27af   :  { %5001 = vrcp.f32 %v3136_v50  ;;  %v3149_v2 = vand.u32 2147483648, %v3136_v50  ;;  %vm3143_vm13 = vweird.f32 %v3136_v50  ;;  %v3147_v9 = vand.u32 2147483647, %v3136_v50 }
0x27b1   :  { %v3150_v27 = vor.u32 1.1754944e-38, %v3149_v2  ;;  %vm3148_vm15 = vcmp.eq.f32.partialorder %v3147_v9, 8.507059e+37 }
0x27b5   :  { %v5002_v46 = vpop.eup %5001 }
0x27b6   :  { %v3139_v39 = vmul.f32 %v5002_v46, %v3136_v50  ;;  %vm3144_vm12 = vweird.f32 %v5002_v46 }
0x27b7   :  { %vm3145_vm14 = vmor %vm3143_vm13, %vm3144_vm12 }
0x27b8   :  { %v3140_v4 = vsub.f32 1.0, %v3139_v39 }
0x27ba   :  { %v3141_v29 = vmul.f32 %v5002_v46, %v3140_v4  ;;  %v3065_v4 = vpop.f32.mrf.mxu0 }
0x27bc   :  { %v3142_v0 = vadd.f32 %v5002_v46, %v3141_v29  ;;  %v3066_v29 = vadd.f32 %v3065_v4, %v6736_v35 }
0x27be   :  { %v3146_v26 = vsel %vm3145_vm14, %v5002_v46, %v3142_v0 }
0x27bf   :  { %v3151_v23 = vsel %vm3148_vm15, %v3150_v27, %v3146_v26  ;;  %v3025_v27 = vadd.f32 %v6742_v28, %v6746_v52 }
0x27c0   :  { %v3169_v11 = vmul.f32 %v3151_v23, %v6537_v61 }
0x280b   :  { %v3172_v60 = vpop.permute.xlu0 %3171 }
0x280c   :  { %v3174_v1 = vmul.f32 %v3172_v60, %v3151_v23 }
0x280e   :  { %3176 = vrot.lane.b32.xlu1 %v3174_v1, %s5138_s23 }
0x2880   :  { %v3177_v30 = vpop.permute.xlu1 %3176 }
0x2881   :  { %v6751_v49 = vadd.f32 %v3177_v30, %v3169_v11 }
0x2883   :  { %5003 = vtanh.f32 %v6751_v49 }
0x2884   :  { %5005 = vpow2.f32 %v4639_v63 }
0x2889   :  { %v5004_v15 = vpop.eup %5003 }
0x288a   :  { %3182 = vrot.lane.b32.xlu2 %v5004_v15, %s5138_s23  ;;  %v5006_v47 = vpop.eup %5005 }
0x288b   :  { %v3137_v33 = vadd.f32 1.0, %v5006_v47 }
0x288d   :  { %5007 = vrcp.f32 %v3137_v33  ;;  %v3164_v61 = vand.u32 2147483648, %v3137_v33  ;;  %vm3158_vm2 = vweird.f32 %v3137_v33  ;;  %v3162_v42 = vand.u32 2147483647, %v3137_v33 }
0x288f   :  { %v3165_v50 = vor.u32 1.1754944e-38, %v3164_v61  ;;  %vm3163_vm4 = vcmp.eq.f32.partialorder %v3162_v42, 8.507059e+37 }
0x2893   :  { %v5008_v40 = vpop.eup %5007 }
0x2894   :  { %v3154_v48 = vmul.f32 %v5008_v40, %v3137_v33  ;;  %vm3159_vm0 = vweird.f32 %v5008_v40 }
0x2895   :  { %vm3160_vm3 = vmor %vm3158_vm2, %vm3159_vm0 }
0x2896   :  { %v3155_v16 = vsub.f32 1.0, %v3154_v48 }
0x2898   :  { %v3156_v44 = vmul.f32 %v5008_v40, %v3155_v16 }
0x289a   :  { %v3157_v17 = vadd.f32 %v5008_v40, %v3156_v44 }
0x289c   :  { %v3161_v19 = vsel %vm3160_vm3, %v5008_v40, %v3157_v17 }
0x289d   :  { %v3166_v46 = vsel %vm3163_vm4, %v3165_v50, %v3161_v19 }
0x28e4   :  { %v3183_v39 = vpop.permute.xlu2 %3182 }
0x28e5   :  { %v6755_v38 = vmul.f32 %v3183_v39, %v3166_v46 }
0x28e7   :  { %4640 = vmatmul.msk.f32.vlgmr.msrb.gmra.mxu1 %vm294_vm10, %v6755_v38  ;;  %4641 = vmatmul.msk.f32.vlgmr.msra.gmra.mxu2 %vm294_vm10, %v6755_v38 }
0x28e8   :  { %3399 = vmatpush.msrb.mxu1 %v6614_v41  ;;  %3419 = vmatpush.msra.mxu2 %v6544_v31 }
0x28ea   :  { %3400 = vmatpush.msrb.mxu1 %v6622_v10  ;;  %3420 = vmatpush.msra.mxu2 %v6549_v43 }
0x28ec   :  { %3401 = vmatpush.msrb.mxu1 %v6629_v53  ;;  %3421 = vmatpush.msra.mxu2 %v6556_v22 }
0x28ee   :  { %3402 = vmatpush.msrb.mxu1 %v6636_v20  ;;  %3422 = vmatpush.msra.mxu2 %v6572_v57 }
0x28f0   :  { %3403 = vmatpush.msrb.mxu1 %v6643_v14  ;;  %3423 = vmatpush.msra.mxu2 %v6579_v21 }
0x28f2   :  { %3404 = vmatpush.msrb.mxu1 %v6649_v5  ;;  %3424 = vmatpush.msra.mxu2 %v6584_v37 }
0x28f4   :  { %3405 = vmatpush.msrb.mxu1 %v6655_v8  ;;  %3425 = vmatpush.msra.mxu2 %v6591_v12 }
0x28f6   :  { %3406 = vmatpush.msrb.mxu1 %v6661_v18  ;;  %3426 = vmatpush.msra.mxu2 %v6600_v59 }
0x2964   :  { %v3206_v26 = vpop.f32.mrf.mxu1 }
0x2965   :  { %v3229_v60 = vadd.f32 %v3206_v26, %v3025_v27 }
0x2967   :  { %v4642_v23 = vmul.f32 -1.442695, %v3229_v60 }
0x296a   :  { %v3226_v0 = vpop.f32.mrf.mxu2 }
0x296b   :  { %v3230_v2 = vadd.f32 %v3226_v0, %v3066_v29 }
0x296d   :  { %5009 = vtanh.f32 %v3230_v2  ;;  %v4643_v39 = vmul.f32 -1.442695, %v3230_v2 }
0x296e   :  { %5011 = vpow2.f32 %v4642_v23 }
0x2973   :  { %v5010_v9 = vpop.eup %5009 }
0x2974   :  { %3272 = vrot.lane.b32.xlu0 %v5010_v9, %s5138_s23  ;;  %v5012_v1 = vpop.eup %5011 }
0x2975   :  { %v3237_v11 = vadd.f32 1.0, %v5012_v1 }
0x2977   :  { %5013 = vrcp.f32 %v3237_v11  ;;  %v3250_v40 = vand.u32 2147483648, %v3237_v11  ;;  %vm3244_vm5 = vweird.f32 %v3237_v11  ;;  %v3248_v48 = vand.u32 2147483647, %v3237_v11 }
0x2979   :  { %v3251_v44 = vor.u32 1.1754944e-38, %v3250_v40  ;;  %vm3249_vm7 = vcmp.eq.f32.partialorder %v3248_v48, 8.507059e+37  ;;  %v2186_v48 = vadd.f32 %v6422_v54, %v6264_v36 }
0x297d   :  { %v5014_v30 = vpop.eup %5013 }
0x297e   :  { %v3240_v15 = vmul.f32 %v5014_v30, %v3237_v11  ;;  %vm3245_vm1 = vweird.f32 %v5014_v30 }
0x297f   :  { %vm3246_vm6 = vmor %vm3244_vm5, %vm3245_vm1 }
0x2980   :  { %v3241_v63 = vsub.f32 1.0, %v3240_v15 }
0x2982   :  { %v3242_v47 = vmul.f32 %v5014_v30, %v3241_v63  ;;  %v3068_v63 = vpop.f32.mrf.mxu0 }
0x2984   :  { %v3243_v33 = vadd.f32 %v5014_v30, %v3242_v47  ;;  %v3069_v47 = vadd.f32 %v3068_v63, %v6736_v35 }
0x2986   :  { %v3247_v16 = vsel %vm3246_vm6, %v5014_v30, %v3243_v33 }
0x2987   :  { %v3252_v17 = vsel %vm3249_vm7, %v3251_v44, %v3247_v16  ;;  %v6816_v16 = vadd.f32 %v6734_v32, %v2186_v48 }
0x2988   :  { %v3270_v42 = vmul.f32 %v3252_v17, %v6751_v49 }
0x29e6   :  { %v3273_v28 = vpop.permute.xlu0 %3272 }
0x29e7   :  { %v3275_v61 = vmul.f32 %v3273_v28, %v3252_v17 }
0x29e9   :  { %3277 = vrot.lane.b32.xlu1 %v3275_v61, %s5138_s23  ;;  %v3028_v61 = vadd.f32 %v6744_v25, %v6746_v52 }
0x2a5b   :  { %v3278_v19 = vpop.permute.xlu1 %3277 }
0x2a5c   :  { %v6783_v50 = vadd.f32 %v3278_v19, %v3270_v42 }
0x2a5e   :  { %5015 = vtanh.f32 %v6783_v50 }
0x2a5f   :  { %5017 = vpow2.f32 %v4643_v39 }
0x2a64   :  { %v5016_v46 = vpop.eup %5015 }
0x2a65   :  { %3283 = vrot.lane.b32.xlu2 %v5016_v46, %s5138_s23  ;;  %v5018_v4 = vpop.eup %5017 }
0x2a66   :  { %v3238_v29 = vadd.f32 1.0, %v5018_v4 }
0x2a68   :  { %5019 = vrcp.f32 %v3238_v29  ;;  %v3265_v49 = vand.u32 2147483648, %v3238_v29  ;;  %vm3259_vm9 = vweird.f32 %v3238_v29  ;;  %v3263_v23 = vand.u32 2147483647, %v3238_v29 }
0x2a6a   :  { %v3266_v11 = vor.u32 1.1754944e-38, %v3265_v49  ;;  %vm3264_vm12 = vcmp.eq.f32.partialorder %v3263_v23, 8.507059e+37  ;;  %v2145_v23 = vadd.f32 %v6406_v3, %v6270_v45 }
0x2a6e   :  { %v5020_v0 = vpop.eup %5019 }
0x2a6f   :  { %v3255_v9 = vmul.f32 %v5020_v0, %v3238_v29  ;;  %vm3260_vm8 = vweird.f32 %v5020_v0 }
0x2a70   :  { %vm3261_vm11 = vmor %vm3259_vm9, %vm3260_vm8 }
0x2a71   :  { %v3256_v26 = vsub.f32 1.0, %v3255_v9 }
0x2a73   :  { %v3257_v27 = vmul.f32 %v5020_v0, %v3256_v26 }
0x2a75   :  { %v3258_v60 = vadd.f32 %v5020_v0, %v3257_v27 }
0x2a77   :  { %v3262_v1 = vsel %vm3261_vm11, %v5020_v0, %v3258_v60 }
0x2a78   :  { %v3267_v30 = vsel %vm3264_vm12, %v3266_v11, %v3262_v1  ;;  %v2938_v1 = vadd.f32 %v6740_v55, %v2145_v23 }
0x2a7a   :  { %v4618_v11 = vmul.f32 -1.442695, %v2938_v1 }
0x2abf   :  { %v3284_v15 = vpop.permute.xlu2 %3283 }
0x2ac0   :  { %v6787_v2 = vmul.f32 %v3284_v15, %v3267_v30 }
0x2ac2   :  { %4644 = vmatmul.msk.f32.vlgmr.msra.gmra.mxu1 %vm294_vm10, %v6787_v2  ;;  %4645 = vmatmul.msk.f32.vlgmr.msrb.gmra.mxu2 %vm294_vm10, %v6787_v2 }
0x2ac3   :  { %3601 = vmatpush.msra.mxu1 %v6614_v41  ;;  %3621 = vmatpush.msrb.mxu2 %v6544_v31 }
0x2ac5   :  { %3602 = vmatpush.msra.mxu1 %v6622_v10  ;;  %3622 = vmatpush.msrb.mxu2 %v6549_v43 }
0x2ac7   :  { %3603 = vmatpush.msra.mxu1 %v6629_v53  ;;  %3623 = vmatpush.msrb.mxu2 %v6556_v22 }
0x2ac9   :  { %3604 = vmatpush.msra.mxu1 %v6636_v20  ;;  %3624 = vmatpush.msrb.mxu2 %v6572_v57 }
0x2acb   :  { %3605 = vmatpush.msra.mxu1 %v6643_v14  ;;  %3625 = vmatpush.msrb.mxu2 %v6579_v21 }
0x2acd   :  { %3606 = vmatpush.msra.mxu1 %v6649_v5  ;;  %3626 = vmatpush.msrb.mxu2 %v6584_v37 }
0x2acf   :  { %3607 = vmatpush.msra.mxu1 %v6655_v8  ;;  %3627 = vmatpush.msrb.mxu2 %v6591_v12 }
0x2ad1   :  { %3608 = vmatpush.msra.mxu1 %v6661_v18  ;;  %3628 = vmatpush.msrb.mxu2 %v6600_v59 }
0x2b3f   :  { %v3307_v17 = vpop.f32.mrf.mxu1 }
0x2b40   :  { %v3330_v42 = vadd.f32 %v3307_v17, %v3028_v61 }
0x2b42   :  { %v4646_v19 = vmul.f32 -1.442695, %v3330_v42 }
0x2b45   :  { %v3327_v33 = vpop.f32.mrf.mxu2 }
0x2b46   :  { %v6810_v40 = vadd.f32 %v3327_v33, %v3069_v47 }
0x2b48   :  { %5021 = vtanh.f32 %v6810_v40 }
0x2b49   :  { %5023 = vtanh.f32 %v6816_v16 }
0x2b4a   :  { %5025 = vpow2.f32 %v4646_v19 }
0x2b4e   :  { %v5022_v44 = vpop.eup %5021 }
0x2b4f   :  { %3373 = vrot.lane.b32.xlu0 %v5022_v44, %s5138_s23  ;;  %v5024_v28 = vpop.eup %5023 }
0x2b50   :  { %v5026_v46 = vpop.eup %5025 }
0x2b51   :  { %v3338_v36 = vadd.f32 1.0, %v5026_v46 }
0x2b53   :  { %5027 = vrcp.f32 %v3338_v36  ;;  %v3351_v0 = vand.u32 2147483648, %v3338_v36  ;;  %vm3345_vm14 = vweird.f32 %v3338_v36  ;;  %v3349_v9 = vand.u32 2147483647, %v3338_v36 }
0x2b54   :  { %5029 = vpow2.f32 %v4618_v11 }
0x2b55   :  { %v3352_v27 = vor.u32 1.1754944e-38, %v3351_v0  ;;  %vm3350_vm0 = vcmp.eq.f32.partialorder %v3349_v9, 8.507059e+37 }
0x2b57   :  { %2981 = vrot.lane.b32.xlu0 %v5024_v28, %s5138_s23 }
0x2b59   :  { %v5028_v54 = vpop.eup %5027 }
0x2b5a   :  { %v3341_v32 = vmul.f32 %v5028_v54, %v3338_v36  ;;  %vm3346_vm13 = vweird.f32 %v5028_v54  ;;  %v5030_v30 = vpop.eup %5029 }
0x2b5b   :  { %vm3347_vm15 = vmor %vm3345_vm14, %vm3346_vm13  ;;  %v2946_v15 = vadd.f32 1.0, %v5030_v30 }
0x2b5c   :  { %v3342_v39 = vsub.f32 1.0, %v3341_v32 }
0x2b5d   :  { %5031 = vrcp.f32 %v2946_v15  ;;  %v2959_v3 = vand.u32 2147483648, %v2946_v15  ;;  %vm2953_vm3 = vweird.f32 %v2946_v15  ;;  %v2957_v55 = vand.u32 2147483647, %v2946_v15 }
0x2b5e   :  { %v3343_v4 = vmul.f32 %v5028_v54, %v3342_v39 }
0x2b5f   :  { %v2960_v46 = vor.u32 1.1754944e-38, %v2959_v3  ;;  %vm2958_vm1 = vcmp.eq.f32.partialorder %v2957_v55, 8.507059e+37 }
0x2b60   :  { %v3344_v29 = vadd.f32 %v5028_v54, %v3343_v4 }
0x2b62   :  { %v3348_v26 = vsel %vm3347_vm15, %v5028_v54, %v3344_v29  ;;  %v4647_v54 = vmul.f32 -1.442695, %v6810_v40 }
0x2b63   :  { %v3353_v60 = vsel %vm3350_vm0, %v3352_v27, %v3348_v26  ;;  %v5032_v63 = vpop.eup %5031 }
0x2b64   :  { %v2949_v47 = vmul.f32 %v5032_v63, %v2946_v15  ;;  %v3371_v33 = vmul.f32 %v3353_v60, %v6783_v50  ;;  %vm2954_vm2 = vweird.f32 %v5032_v63 }
0x2b65   :  { %vm2955_vm4 = vmor %vm2953_vm3, %vm2954_vm2 }
0x2b66   :  { %v2950_v48 = vsub.f32 1.0, %v2949_v47 }
0x2b68   :  { %v2951_v17 = vmul.f32 %v5032_v63, %v2950_v48 }
0x2b6a   :  { %v2952_v61 = vadd.f32 %v5032_v63, %v2951_v17 }
0x2b6c   :  { %v2956_v42 = vsel %vm2955_vm4, %v5032_v63, %v2952_v61 }
0x2b6d   :  { %v2961_v50 = vsel %vm2958_vm1, %v2960_v46, %v2956_v42 }
0x2bc1   :  { %v3374_v25 = vpop.permute.xlu0 %3373 }
0x2bc2   :  { %v3376_v49 = vmul.f32 %v3374_v25, %v3353_v60 }
0x2bc4   :  { %3378 = vrot.lane.b32.xlu1 %v3376_v49, %s5138_s23 }
0x2bc9   :  { %v2982_v19 = vpop.permute.xlu0 %2981 }
0x2bca   :  { %v2984_v36 = vmul.f32 %v2982_v19, %v2961_v50 }
0x2c36   :  { %v3379_v44 = vpop.permute.xlu1 %3378 }
0x2c37   :  { %v6828_v28 = vadd.f32 %v3379_v44, %v3371_v33 }
0x2c39   :  { %5033 = vtanh.f32 %v6828_v28 }
0x2c3a   :  { %5035 = vpow2.f32 %v4647_v54 }
0x2c3f   :  { %v5034_v45 = vpop.eup %5033 }
0x2c40   :  { %3384 = vrot.lane.b32.xlu2 %v5034_v45, %s5138_s23  ;;  %v5036_v32 = vpop.eup %5035 }
0x2c41   :  { %v3339_v39 = vadd.f32 1.0, %v5036_v32 }
0x2c43   :  { %5037 = vrcp.f32 %v3339_v39  ;;  %v3366_v27 = vand.u32 2147483648, %v3339_v39  ;;  %vm3360_vm6 = vweird.f32 %v3339_v39  ;;  %v3364_v25 = vand.u32 2147483647, %v3339_v39 }
0x2c45   :  { %v3367_v49 = vor.u32 1.1754944e-38, %v3366_v27  ;;  %vm3365_vm8 = vcmp.eq.f32.partialorder %v3364_v25, 8.507059e+37 }
0x2c48   :  { %2986 = vrot.lane.b32.xlu2 %v2984_v36, %s5138_s23 }
0x2c49   :  { %v5038_v4 = vpop.eup %5037 }
0x2c4a   :  { %v3356_v29 = vmul.f32 %v5038_v4, %v3339_v39  ;;  %vm3361_vm5 = vweird.f32 %v5038_v4 }
0x2c4b   :  { %vm3362_vm7 = vmor %vm3360_vm6, %vm3361_vm5 }
0x2c4c   :  { %v3357_v0 = vsub.f32 1.0, %v3356_v29 }
0x2c4e   :  { %v3358_v9 = vmul.f32 %v5038_v4, %v3357_v0 }
0x2c50   :  { %v3359_v26 = vadd.f32 %v5038_v4, %v3358_v9 }
0x2c52   :  { %v3363_v60 = vsel %vm3362_vm7, %v5038_v4, %v3359_v26 }
0x2c53   :  { %v3368_v23 = vsel %vm3365_vm8, %v3367_v49, %v3363_v60 }
0x2c9a   :  { %v3385_v1 = vpop.permute.xlu2 %3384 }
0x2c9b   :  { %v6834_v40 = vmul.f32 %v3385_v1, %v3368_v23 }
0x2c9d   :  { %4648 = vmatmul.msk.f32.vlgmr.msrb.gmra.mxu1 %vm294_vm10, %v6834_v40  ;;  %4649 = vmatmul.msk.f32.vlgmr.msra.gmra.mxu2 %vm294_vm10, %v6834_v40 }
0x2c9e   :  { %3803 = vmatpush.msrb.mxu1 %v6614_v41  ;;  %3823 = vmatpush.msra.mxu2 %v6544_v31  ;;  %v3071_v31 = vpop.f32.mrf.mxu0  ;;  %v2979_v41 = vmul.f32 %v2961_v50, %v6563_v56 }
0x2ca0   :  { %3804 = vmatpush.msrb.mxu1 %v6622_v10  ;;  %3824 = vmatpush.msra.mxu2 %v6549_v43  ;;  %v3072_v43 = vadd.f32 %v3071_v31, %v6736_v35 }
0x2ca2   :  { %3805 = vmatpush.msrb.mxu1 %v6629_v53  ;;  %3825 = vmatpush.msra.mxu2 %v6556_v22 }
0x2ca4   :  { %3806 = vmatpush.msrb.mxu1 %v6636_v20  ;;  %3826 = vmatpush.msra.mxu2 %v6572_v57 }
0x2ca6   :  { %3807 = vmatpush.msrb.mxu1 %v6643_v14  ;;  %3827 = vmatpush.msra.mxu2 %v6579_v21  ;;  %v2987_v21 = vpop.permute.xlu2 %2986 }
0x2ca8   :  { %3808 = vmatpush.msrb.mxu1 %v6649_v5  ;;  %3828 = vmatpush.msra.mxu2 %v6584_v37  ;;  %v2989_v37 = vadd.f32 %v2987_v21, %v2979_v41 }
0x2caa   :  { %3809 = vmatpush.msrb.mxu1 %v6655_v8  ;;  %3829 = vmatpush.msra.mxu2 %v6591_v12  ;;  %v4619_v8 = vmul.f32 -1.442695, %v6816_v16 }
0x2cac   :  { %3810 = vmatpush.msrb.mxu1 %v6661_v18  ;;  %3830 = vmatpush.msra.mxu2 %v6600_v59  ;;  %v3030_v59 = vpop.f32.mrf.mxu3 }
0x2cad   :  { %v3031_v20 = vadd.f32 %v3030_v59, %v6746_v52 }
0x2d1a   :  { %v3408_v53 = vpop.f32.mrf.mxu1 }
0x2d1b   :  { %v3431_v14 = vadd.f32 %v3408_v53, %v3031_v20  ;;  %v3074_v20 = vpop.f32.mrf.mxu0 }
0x2d1d   :  { %v4650_v5 = vmul.f32 -1.442695, %v3431_v14 }
0x2d20   :  { %v3428_v22 = vpop.f32.mrf.mxu2 }
0x2d21   :  { %v6857_v57 = vadd.f32 %v3428_v22, %v3072_v43 }
0x2d23   :  { %5039 = vtanh.f32 %v6857_v57  ;;  %v4651_v49 = vmul.f32 -1.442695, %v6857_v57  ;;  %v6880_v14 = vpop.f32.mrf.mxu0 }
0x2d24   :  { %5041 = vtanh.f32 %v2989_v37 }
0x2d25   :  { %5043 = vpow2.f32 %v4650_v5 }
0x2d26   :  { %5045 = vpow2.f32 %v4619_v8 }
0x2d29   :  { %v5040_v10 = vpop.eup %5039 }
0x2d2a   :  { %3474 = vrot.lane.b32.xlu1 %v5040_v10, %s5138_s23  ;;  %v5042_v12 = vpop.eup %5041 }
0x2d2b   :  { %v5044_v18 = vpop.eup %5043  ;;  %v6882_v5 = vpop.f32.mrf.mxu0 }
0x2d2c   :  { %v3439_v56 = vadd.f32 1.0, %v5044_v18  ;;  %v5046_v11 = vpop.eup %5045  ;;  %v3075_v18 = vadd.f32 %v3074_v20, %v6736_v35 }
0x2d2d   :  { %v2947_v30 = vadd.f32 1.0, %v5046_v11 }
0x2d2e   :  { %5047 = vrcp.f32 %v3439_v56  ;;  %v3452_v45 = vand.u32 2147483648, %v3439_v56  ;;  %vm3446_vm11 = vweird.f32 %v3439_v56  ;;  %v3450_v3 = vand.u32 2147483647, %v3439_v56 }
0x2d2f   :  { %5049 = vrcp.f32 %v2947_v30  ;;  %v2974_v54 = vand.u32 2147483648, %v2947_v30  ;;  %vm2968_vm15 = vweird.f32 %v2947_v30  ;;  %v2972_v32 = vand.u32 2147483647, %v2947_v30 }
0x2d30   :  { %v3453_v42 = vor.u32 1.1754944e-38, %v3452_v45  ;;  %vm3451_vm13 = vcmp.eq.f32.partialorder %v3450_v3, 8.507059e+37 }
0x2d31   :  { %v2975_v4 = vor.u32 1.1754944e-38, %v2974_v54  ;;  %vm2973_vm2 = vcmp.eq.f32.partialorder %v2972_v32, 8.507059e+37 }
0x2d32   :  { %2992 = vrot.lane.b32.xlu1 %v5042_v12, %s5138_s23 }
0x2d34   :  { %v5048_v15 = vpop.eup %5047 }
0x2d35   :  { %v3442_v63 = vmul.f32 %v5048_v15, %v3439_v56  ;;  %v5050_v33 = vpop.eup %5049  ;;  %vm3447_vm9 = vweird.f32 %v5048_v15 }
0x2d36   :  { %v2964_v44 = vmul.f32 %v5050_v33, %v2947_v30  ;;  %vm3448_vm12 = vmor %vm3446_vm11, %vm3447_vm9  ;;  %vm2969_vm14 = vweird.f32 %v5050_v33 }
0x2d37   :  { %v3443_v47 = vsub.f32 1.0, %v3442_v63  ;;  %vm2970_vm0 = vmor %vm2968_vm15, %vm2969_vm14 }
0x2d38   :  { %v2965_v61 = vsub.f32 1.0, %v2964_v44 }
0x2d39   :  { %v3444_v48 = vmul.f32 %v5048_v15, %v3443_v47 }
0x2d3a   :  { %v2966_v55 = vmul.f32 %v5050_v33, %v2965_v61 }
0x2d3b   :  { %v3445_v17 = vadd.f32 %v5048_v15, %v3444_v48 }
0x2d3c   :  { %v2967_v36 = vadd.f32 %v5050_v33, %v2966_v55 }
0x2d3d   :  { %v3449_v16 = vsel %vm3448_vm12, %v5048_v15, %v3445_v17  ;;  %v3033_v15 = vpop.f32.mrf.mxu3 }
0x2d3e   :  { %v3454_v46 = vsel %vm3451_vm13, %v3453_v42, %v3449_v16  ;;  %v2971_v39 = vsel %vm2970_vm0, %v5050_v33, %v2967_v36  ;;  %v3034_v44 = vadd.f32 %v3033_v15, %v6746_v52 }
0x2d3f   :  { %v2976_v29 = vsel %vm2973_vm2, %v2975_v4, %v2971_v39  ;;  %v3472_v26 = vmul.f32 %v3454_v46, %v6828_v28 }
0x2d45   :  { %v6888_v63 = vpop.f32.mrf.mxu3 }
0x2d4d   :  { %v6890_v47 = vpop.f32.mrf.mxu3 }
0x2d9c   :  { %v3475_v19 = vpop.permute.xlu1 %3474 }
0x2d9d   :  { %v3477_v50 = vmul.f32 %v3475_v19, %v3454_v46 }
0x2d9f   :  { %3479 = vrot.lane.b32.xlu0 %v3477_v50, %s5138_s23 }
0x2da4   :  { %v2993_v0 = vpop.permute.xlu1 %2992 }
0x2da5   :  { %v2995_v9 = vmul.f32 %v2993_v0, %v2976_v29 }
0x2da7   :  { %4627 = vmatmul.msk.f32.gmra.mxu3 %vm294_vm10, %v2995_v9  ;;  %4635 = vmatmul.msk.f32.gmra.mxu0 %vm294_vm10, %v2995_v9 }
0x2e11   :  { %v3480_v27 = vpop.permute.xlu0 %3479 }
0x2e12   :  { %v6869_v25 = vadd.f32 %v3480_v27, %v3472_v26 }
0x2e14   :  { %5051 = vtanh.f32 %v6869_v25 }
0x2e15   :  { %5053 = vpow2.f32 %v4651_v49 }
0x2e1a   :  { %v5052_v60 = vpop.eup %5051 }
0x2e1b   :  { %3485 = vrot.lane.b32.xlu2 %v5052_v60, %s5138_s23  ;;  %v5054_v23 = vpop.eup %5053 }
0x2e1c   :  { %v3440_v1 = vadd.f32 1.0, %v5054_v23 }
0x2e1e   :  { %5055 = vrcp.f32 %v3440_v1  ;;  %v3467_v28 = vand.u32 2147483648, %v3440_v1  ;;  %vm3461_vm4 = vweird.f32 %v3440_v1  ;;  %v3465_v37 = vand.u32 2147483647, %v3440_v1 }
0x2e20   :  { %v3468_v12 = vor.u32 1.1754944e-38, %v3467_v28  ;;  %vm3466_vm5 = vcmp.eq.f32.partialorder %v3465_v37, 8.507059e+37 }
0x2e24   :  { %v5056_v31 = vpop.eup %5055  ;;  %v6884_v8 = vpop.f32.mrf.mxu0 }
0x2e25   :  { %v3457_v43 = vmul.f32 %v5056_v31, %v3440_v1  ;;  %vm3462_vm3 = vweird.f32 %v5056_v31 }
0x2e26   :  { %vm3463_vm1 = vmor %vm3461_vm4, %vm3462_vm3 }
0x2e27   :  { %v3458_v22 = vsub.f32 1.0, %v3457_v43 }
0x2e29   :  { %v3459_v21 = vmul.f32 %v5056_v31, %v3458_v22 }
0x2e2a   :  { %v6892_v33 = vpop.f32.mrf.mxu3 }
0x2e2b   :  { %v3460_v41 = vadd.f32 %v5056_v31, %v3459_v21 }
0x2e2d   :  { %v3464_v10 = vsel %vm3463_vm1, %v5056_v31, %v3460_v41 }
0x2e2e   :  { %v3469_v59 = vsel %vm3466_vm5, %v3468_v12, %v3464_v10 }
0x2e75   :  { %v3486_v53 = vpop.permute.xlu2 %3485 }
0x2e76   :  { %v6874_v57 = vmul.f32 %v3486_v53, %v3469_v59  ;;  %v3078_v53 = vadd.f32 %v6880_v14, %v6736_v35 }
0x2e78   :  { %4652 = vmatmul.msk.f32.vlgmr.msra.gmra.mxu3 %vm294_vm10, %v6874_v57  ;;  %4653 = vmatmul.msk.f32.vlgmr.msrb.gmra.mxu0 %vm294_vm10, %v6874_v57 }
0x2ef5   :  { %v3529_v56 = vpop.f32.mrf.mxu0 }
0x2ef6   :  { %v3533_v11 = vadd.f32 %v3529_v56, %v3075_v18 }
0x2ef8   :  { %5057 = vtanh.f32 %v3533_v11  ;;  %v4655_v60 = vmul.f32 -1.442695, %v3533_v11 }
0x2efb   :  { %v3509_v48 = vpop.f32.mrf.mxu3 }
0x2efc   :  { %v3532_v17 = vadd.f32 %v3509_v48, %v3034_v44 }
0x2efe   :  { %v5058_v30 = vpop.eup %5057  ;;  %v4654_v61 = vmul.f32 -1.442695, %v3532_v17 }
0x2eff   :  { %3575 = vrot.lane.b32.xlu0 %v5058_v30, %s5138_s23  ;;  %v3037_v30 = vadd.f32 %v6888_v63, %v6746_v52 }
0x2f00   :  { %5059 = vpow2.f32 %v4654_v61 }
0x2f06   :  { %v5060_v45 = vpop.eup %5059 }
0x2f07   :  { %v3540_v3 = vadd.f32 1.0, %v5060_v45 }
0x2f09   :  { %5061 = vrcp.f32 %v3540_v3  ;;  %v3553_v50 = vand.u32 2147483648, %v3540_v3  ;;  %vm3547_vm7 = vweird.f32 %v3540_v3  ;;  %v3551_v36 = vand.u32 2147483647, %v3540_v3 }
0x2f0b   :  { %v3554_v32 = vor.u32 1.1754944e-38, %v3553_v50  ;;  %vm3552_vm9 = vcmp.eq.f32.partialorder %v3551_v36, 8.507059e+37 }
0x2f0f   :  { %v5062_v16 = vpop.eup %5061 }
0x2f10   :  { %v3543_v55 = vmul.f32 %v5062_v16, %v3540_v3  ;;  %vm3548_vm6 = vweird.f32 %v5062_v16 }
0x2f11   :  { %vm3549_vm8 = vmor %vm3547_vm7, %vm3548_vm6 }
0x2f12   :  { %v3544_v42 = vsub.f32 1.0, %v3543_v55 }
0x2f14   :  { %v3545_v19 = vmul.f32 %v5062_v16, %v3544_v42 }
0x2f16   :  { %v3546_v46 = vadd.f32 %v5062_v16, %v3545_v19 }
0x2f18   :  { %v3550_v54 = vsel %vm3549_vm8, %v5062_v16, %v3546_v46 }
0x2f19   :  { %v3555_v4 = vsel %vm3552_vm9, %v3554_v32, %v3550_v54 }
0x2f1a   :  { %v3573_v0 = vmul.f32 %v3555_v4, %v6869_v25 }
0x2f71   :  { %v3576_v39 = vpop.permute.xlu0 %3575 }
0x2f72   :  { %v3578_v29 = vmul.f32 %v3576_v39, %v3555_v4 }
0x2f74   :  { %3580 = vrot.lane.b32.xlu1 %v3578_v29, %s5138_s23 }
0x2fe6   :  { %v3581_v9 = vpop.permute.xlu1 %3580 }
0x2fe7   :  { %v3583_v26 = vadd.f32 %v3581_v9, %v3573_v0 }
0x2fe9   :  { %5063 = vtanh.f32 %v3583_v26 }
0x2fea   :  { %5065 = vpow2.f32 %v4655_v60 }
0x2fef   :  { %v5064_v27 = vpop.eup %5063 }
0x2ff0   :  { %3586 = vrot.lane.b32.xlu2 %v5064_v27, %s5138_s23  ;;  %v5066_v49 = vpop.eup %5065 }
0x2ff1   :  { %v3541_v23 = vadd.f32 1.0, %v5066_v49 }
0x2ff3   :  { %5067 = vrcp.f32 %v3541_v23  ;;  %v3568_v41 = vand.u32 2147483648, %v3541_v23  ;;  %vm3562_vm12 = vweird.f32 %v3541_v23  ;;  %v3566_v25 = vand.u32 2147483647, %v3541_v23 }
0x2ff5   :  { %v3569_v37 = vor.u32 1.1754944e-38, %v3568_v41  ;;  %vm3567_vm14 = vcmp.eq.f32.partialorder %v3566_v25, 8.507059e+37 }
0x2ff9   :  { %v5068_v1 = vpop.eup %5067 }
0x2ffa   :  { %v3558_v31 = vmul.f32 %v5068_v1, %v3541_v23  ;;  %vm3563_vm11 = vweird.f32 %v5068_v1 }
0x2ffb   :  { %vm3564_vm13 = vmor %vm3562_vm12, %vm3563_vm11  ;;  %vm3893_vm12 = vcmask 261120  }
0x2ffc   :  { %v3559_v43 = vsub.f32 1.0, %v3558_v31 }
0x2ffe   :  { %v3560_v22 = vmul.f32 %v5068_v1, %v3559_v43 }
0x3000   :  { %v3561_v21 = vadd.f32 %v5068_v1, %v3560_v22 }
0x3002   :  { %v3565_v28 = vsel %vm3564_vm13, %v5068_v1, %v3561_v21 }
0x3003   :  { %v3570_v10 = vsel %vm3567_vm14, %v3569_v37, %v3565_v28  ;;  %v3081_v28 = vadd.f32 %v6882_v5, %v6736_v35  ;;  %v3040_v5 = vadd.f32 %v6890_v47, %v6746_v52 }
0x304a   :  { %v3587_v12 = vpop.permute.xlu2 %3586 }
0x304b   :  { %v6898_v59 = vmul.f32 %v3587_v12, %v3570_v10 }
0x304d   :  { %4656 = vmatmul.msk.f32.vlgmr.msra.gmra.mxu1 %vm294_vm10, %v6898_v59  ;;  %4657 = vmatmul.msk.f32.vlgmr.msrb.gmra.mxu2 %vm294_vm10, %v6898_v59 }
0x30ca   :  { %v3610_v11 = vpop.f32.mrf.mxu1 }
0x30cb   :  { %v3633_v15 = vadd.f32 %v3610_v11, %v3037_v30 }
0x30cd   :  { %v4658_v48 = vmul.f32 -1.442695, %v3633_v15 }
0x30d0   :  { %v3630_v20 = vpop.f32.mrf.mxu2 }
0x30d1   :  { %v3634_v18 = vadd.f32 %v3630_v20, %v3078_v53 }
0x30d3   :  { %5069 = vtanh.f32 %v3634_v18  ;;  %v4659_v29 = vmul.f32 -1.442695, %v3634_v18 }
0x30d4   :  { %5071 = vpow2.f32 %v4658_v48 }
0x30d9   :  { %v5070_v56 = vpop.eup %5069 }
0x30da   :  { %3676 = vrot.lane.b32.xlu0 %v5070_v56, %s5138_s23  ;;  %v5072_v44 = vpop.eup %5071 }
0x30db   :  { %v3641_v17 = vadd.f32 1.0, %v5072_v44 }
0x30dd   :  { %5073 = vrcp.f32 %v3641_v17  ;;  %v3654_v55 = vand.u32 2147483648, %v3641_v17  ;;  %vm3648_vm0 = vweird.f32 %v3641_v17  ;;  %v3652_v42 = vand.u32 2147483647, %v3641_v17 }
0x30df   :  { %v3655_v46 = vor.u32 1.1754944e-38, %v3654_v55  ;;  %vm3653_vm3 = vcmp.eq.f32.partialorder %v3652_v42, 8.507059e+37 }
0x30e3   :  { %v5074_v61 = vpop.eup %5073 }
0x30e4   :  { %v3644_v45 = vmul.f32 %v5074_v61, %v3641_v17  ;;  %vm3649_vm15 = vweird.f32 %v5074_v61 }
0x30e5   :  { %vm3650_vm2 = vmor %vm3648_vm0, %vm3649_vm15 }
0x30e6   :  { %v3645_v3 = vsub.f32 1.0, %v3644_v45 }
0x30e8   :  { %v3646_v14 = vmul.f32 %v5074_v61, %v3645_v3 }
0x30ea   :  { %v3647_v16 = vadd.f32 %v5074_v61, %v3646_v14 }
0x30ec   :  { %v3651_v19 = vsel %vm3650_vm2, %v5074_v61, %v3647_v16 }
0x30ed   :  { %v3656_v50 = vsel %vm3653_vm3, %v3655_v46, %v3651_v19 }
0x30ee   :  { %v3674_v54 = vmul.f32 %v3656_v50, %v3583_v26 }
0x314c   :  { %v3677_v63 = vpop.permute.xlu0 %3676 }
0x314d   :  { %v3679_v36 = vmul.f32 %v3677_v63, %v3656_v50 }
0x314f   :  { %3681 = vrot.lane.b32.xlu1 %v3679_v36, %s5138_s23 }
0x31c1   :  { %v3682_v32 = vpop.permute.xlu1 %3681 }
0x31c2   :  { %v6910_v39 = vadd.f32 %v3682_v32, %v3674_v54 }
0x31c4   :  { %5075 = vtanh.f32 %v6910_v39 }
0x31c5   :  { %5077 = vpow2.f32 %v4659_v29  ;;  %v4338_v29 = vld [vmem:[%s7174_s17 + $0x10] sm:$0xff] }
0x31ca   :  { %v5076_v4 = vpop.eup %5075 }
0x31cb   :  { %3687 = vrot.lane.b32.xlu2 %v5076_v4, %s5138_s23  ;;  %v5078_v0 = vpop.eup %5077  ;;  %v4339_v4 = vld [vmem:[%s7174_s17 + $0x18] sm:$0xff] }
0x31cc   :  { %v3642_v9 = vadd.f32 1.0, %v5078_v0  ;;  %4421 = vmatpush.msrb.mxu2 %v4339_v4  ;;  %v4337_v0 = vld [vmem:[%s7174_s17 + $0x8] sm:$0xff] }
0x31ce   :  { %5079 = vrcp.f32 %v3642_v9  ;;  %v3669_v26 = vand.u32 2147483648, %v3642_v9  ;;  %vm3663_vm1 = vweird.f32 %v3642_v9  ;;  %v3667_v31 = vand.u32 2147483647, %v3642_v9  ;;  %4422 = vmatpush.msrb.mxu2 %v4338_v29 }
0x31d0   :  { %v3670_v22 = vor.u32 1.1754944e-38, %v3669_v26  ;;  %vm3668_vm6 = vcmp.eq.f32.partialorder %v3667_v31, 8.507059e+37  ;;  %4423 = vmatpush.msrb.mxu2 %v4337_v0 }
0x31d4   :  { %v5080_v27 = vpop.eup %5079 }
0x31d5   :  { %v3659_v60 = vmul.f32 %v5080_v27, %v3642_v9  ;;  %vm3664_vm4 = vweird.f32 %v5080_v27  ;;  %v4336_v9 = vld [vmem:[%s7174_s17] sm:$0xff] }
0x31d6   :  { %vm3665_vm5 = vmor %vm3663_vm1, %vm3664_vm4  ;;  %4424 = vmatpush.msrb.mxu2 %v4336_v9 }
0x31d7   :  { %v3660_v49 = vsub.f32 1.0, %v3659_v60 }
0x31d9   :  { %v3661_v23 = vmul.f32 %v5080_v27, %v3660_v49 }
0x31db   :  { %v3662_v1 = vadd.f32 %v5080_v27, %v3661_v23 }
0x31dd   :  { %v3666_v43 = vsel %vm3665_vm5, %v5080_v27, %v3662_v1 }
0x31de   :  { %v3671_v21 = vsel %vm3668_vm6, %v3670_v22, %v3666_v43 }
0x3225   :  { %v3688_v41 = vpop.permute.xlu2 %3687 }
0x3226   :  { %v6914_v25 = vmul.f32 %v3688_v41, %v3671_v21 }
0x3228   :  { %4660 = vmatmul.msk.f32.vlgmr.msrb.gmra.mxu3 %vm294_vm10, %v6914_v25  ;;  %4661 = vmatmul.msk.f32.vlgmr.msra.gmra.mxu0 %vm294_vm10, %v6914_v25 }
0x32a5   :  { %v3731_v37 = vpop.f32.mrf.mxu0 }
0x32a6   :  { %v3735_v10 = vadd.f32 %v3731_v37, %v3081_v28 }
0x32a8   :  { %5081 = vtanh.f32 %v3735_v10  ;;  %v4663_v54 = vmul.f32 -1.442695, %v3735_v10 }
0x32ab   :  { %v3711_v53 = vpop.f32.mrf.mxu3 }
0x32ac   :  { %v3734_v20 = vadd.f32 %v3711_v53, %v3040_v5 }
0x32ae   :  { %v5082_v12 = vpop.eup %5081  ;;  %v4662_v18 = vmul.f32 -1.442695, %v3734_v20 }
0x32af   :  { %3777 = vrot.lane.b32.xlu0 %v5082_v12, %s5138_s23 }
0x32b0   :  { %5083 = vpow2.f32 %v4662_v18 }
0x32b6   :  { %v5084_v56 = vpop.eup %5083 }
0x32b7   :  { %2013 = vrot.lane.b32.xlu0 %v6677_v34, %s5139_s16  ;;  %v3742_v11 = vadd.f32 1.0, %v5084_v56 }
0x32b9   :  { %5085 = vrcp.f32 %v3742_v11  ;;  %v3755_v61 = vand.u32 2147483648, %v3742_v11  ;;  %vm3749_vm8 = vweird.f32 %v3742_v11  ;;  %v3753_v45 = vand.u32 2147483647, %v3742_v11 }
0x32bb   :  { %v3756_v14 = vor.u32 1.1754944e-38, %v3755_v61  ;;  %vm3754_vm11 = vcmp.eq.f32.partialorder %v3753_v45, 8.507059e+37 }
0x32bf   :  { %2007 = vrot.lane.b32.xlu0 %v6018_v51, %s5139_s16  ;;  %v5086_v30 = vpop.eup %5085 }
0x32c0   :  { %v3745_v15 = vmul.f32 %v5086_v30, %v3742_v11  ;;  %vm3750_vm7 = vweird.f32 %v5086_v30 }
0x32c1   :  { %vm3751_vm9 = vmor %vm3749_vm8, %vm3750_vm7 }
0x32c2   :  { %v3746_v48 = vsub.f32 1.0, %v3745_v15 }
0x32c4   :  { %v3747_v44 = vmul.f32 %v5086_v30, %v3746_v48 }
0x32c6   :  { %v3748_v17 = vadd.f32 %v5086_v30, %v3747_v44 }
0x32c7   :  { %2001 = vrot.lane.b32.xlu0 %v5901_v62, %s5139_s16 }
0x32c8   :  { %v3752_v3 = vsel %vm3751_vm9, %v5086_v30, %v3748_v17 }
0x32c9   :  { %v3757_v16 = vsel %vm3754_vm11, %v3756_v14, %v3752_v3 }
0x32ca   :  { %v3775_v19 = vmul.f32 %v3757_v16, %v6910_v39 }
0x3321   :  { %v3778_v47 = vpop.permute.xlu0 %3777 }
0x3322   :  { %v3780_v55 = vmul.f32 %v3778_v47, %v3757_v16 }
0x3324   :  { %3782 = vrot.lane.b32.xlu1 %v3780_v55, %s5138_s23 }
0x3329   :  { %v2014_v42 = vpop.permute.xlu0 %2013 }
0x332a   :  { %4668 = vmatpush.xpose.msk.msra.mxu3 %vm3893_vm12, %v2014_v42  ;;  %4295 = vmatpush.msrb.mxu0 %v2014_v42 }
0x332c   :  { %2011 = vrot.lane.b32.xlu1 %v6206_v7, %s5139_s16 }
0x3331   :  { %v2008_v37 = vpop.permute.xlu0 %2007 }
0x3334   :  { %2005 = vrot.lane.b32.xlu1 %v5994_v24, %s5139_s16 }
0x3339   :  { %v2002_v5 = vpop.permute.xlu0 %2001 }
0x333c   :  { %1999 = vrot.lane.b32.xlu1 %v5870_v58, %s5139_s16 }
0x3396   :  { %v3783_v46 = vpop.permute.xlu1 %3782 }
0x3397   :  { %v6940_v63 = vadd.f32 %v3783_v46, %v3775_v19 }
0x3399   :  { %5087 = vtanh.f32 %v6940_v63 }
0x339a   :  { %5089 = vpow2.f32 %v4663_v54 }
0x339e   :  { %v2012_v50 = vpop.permute.xlu1 %2011 }
0x339f   :  { %v5088_v36 = vpop.eup %5087  ;;  %4669 = vmatpush.xpose.msk.msra.mxu3 %vm3893_vm12, %v2012_v50  ;;  %4296 = vmatpush.msrb.mxu0 %v2012_v50 }
0x33a0   :  { %3788 = vrot.lane.b32.xlu2 %v5088_v36, %s5138_s23  ;;  %v5090_v32 = vpop.eup %5089 }
0x33a1   :  { %v3743_v39 = vadd.f32 1.0, %v5090_v32 }
0x33a3   :  { %5091 = vrcp.f32 %v3743_v39  ;;  %v3770_v26 = vand.u32 2147483648, %v3743_v39  ;;  %vm3764_vm14 = vweird.f32 %v3743_v39  ;;  %v3768_v31 = vand.u32 2147483647, %v3743_v39 }
0x33a5   :  { %v3771_v22 = vor.u32 1.1754944e-38, %v3770_v26  ;;  %vm3769_vm0 = vcmp.eq.f32.partialorder %v3768_v31, 8.507059e+37 }
0x33a6   :  { %v2006_v12 = vpop.permute.xlu1 %2005 }
0x33a8   :  { %2009 = vrot.lane.b32.xlu2 %v6052_v13, %s5139_s16 }
0x33a9   :  { %v5092_v27 = vpop.eup %5091 }
0x33aa   :  { %v3760_v60 = vmul.f32 %v5092_v27, %v3743_v39  ;;  %vm3765_vm13 = vweird.f32 %v5092_v27 }
0x33ab   :  { %vm3766_vm15 = vmor %vm3764_vm14, %vm3765_vm13 }
0x33ac   :  { %v3761_v49 = vsub.f32 1.0, %v3760_v60 }
0x33ae   :  { %v3762_v23 = vmul.f32 %v5092_v27, %v3761_v49  ;;  %v2000_v20 = vpop.permute.xlu1 %1999 }
0x33b0   :  { %2003 = vrot.lane.b32.xlu2 %v5947_v6, %s5139_s16  ;;  %v3763_v1 = vadd.f32 %v5092_v27, %v3762_v23 }
0x33b2   :  { %v3767_v43 = vsel %vm3766_vm15, %v5092_v27, %v3763_v1 }
0x33b3   :  { %v3772_v21 = vsel %vm3769_vm0, %v3771_v22, %v3767_v43 }
0x33fa   :  { %v3789_v41 = vpop.permute.xlu2 %3788 }
0x33fb   :  { %v3791_v28 = vmul.f32 %v3789_v41, %v3772_v21 }
0x33fd   :  { %4664 = vmatmul.msk.f32.vlgmr.msrb.gmra.mxu1 %vm294_vm10, %v3791_v28  ;;  %4665 = vmatmul.msk.f32.vlgmr.msra.gmra.mxu2 %vm294_vm10, %v3791_v28 }
0x3402   :  { %v2010_v10 = vpop.permute.xlu2 %2009 }
0x3403   :  { %4670 = vmatpush.xpose.msk.msra.mxu3 %vm3893_vm12, %v2010_v10  ;;  %4297 = vmatpush.msrb.mxu0 %v2010_v10 }
0x3405   :  { %4298 = vmatpush.msrb.mxu0 %v2008_v37  ;;  %4700 = vmatmul.msk.f32.vlgmr.msrb.gmra.mxu2 %vm3893_vm12, %v6755_v38 }
0x3407   :  { %4671 = vmatpush.xpose.msk.msra.mxu3 %vm3893_vm12, %v2008_v37  ;;  %4299 = vmatpush.msrb.mxu0 %v2006_v12 }
0x340a   :  { %v2004_v53 = vpop.permute.xlu2 %2003 }
0x340b   :  { %4672 = vmatpush.xpose.msk.msra.mxu3 %vm3893_vm12, %v2006_v12  ;;  %4300 = vmatpush.msrb.mxu0 %v2004_v53 }
0x340d   :  { %4301 = vmatpush.msrb.mxu0 %v2002_v5  ;;  %4701 = vmatmul.msk.f32.gmra.mxu2 %vm3893_vm12, %v6787_v2 }
0x340f   :  { %4673 = vmatpush.xpose.msk.msra.mxu3 %vm3893_vm12, %v2004_v53  ;;  %4302 = vmatpush.msrb.mxu0 %v2000_v20 }
0x3411   :  { %4303 = vmatpush.msrb.mxu0 %v6677_v34 }
0x3413   :  { %4674 = vmatpush.xpose.msk.msra.mxu3 %vm3893_vm12, %v2002_v5  ;;  %4304 = vmatpush.msrb.mxu0 %v6206_v7 }
0x3415   :  { %4305 = vmatpush.msrb.mxu0 %v6052_v13  ;;  %4702 = vmatmul.msk.f32.gmra.mxu2 %vm3893_vm12, %v6834_v40 }
0x3417   :  { %4675 = vmatpush.xpose.msk.msra.mxu3 %vm3893_vm12, %v2000_v20  ;;  %4306 = vmatpush.msrb.mxu0 %v6018_v51 }
0x3419   :  { %4307 = vmatpush.msrb.mxu0 %v5994_v24 }
0x341b   :  { %4676 = vmatpush.xpose.msk.msra.mxu3 %vm3893_vm12, %v6677_v34  ;;  %4308 = vmatpush.msrb.mxu0 %v5947_v6 }
0x341d   :  { %4309 = vmatpush.msrb.mxu0 %v5901_v62  ;;  %4703 = vmatmul.msk.f32.gmra.mxu2 %vm3893_vm12, %v6874_v57 }
0x341f   :  { %4677 = vmatpush.xpose.msk.msra.mxu3 %vm3893_vm12, %v6206_v7  ;;  %4310 = vmatpush.msrb.mxu0 %v5870_v58  ;;  %v3043_v7 = vadd.f32 %v6892_v33, %v6746_v52 }
0x3423   :  { %4678 = vmatpush.xpose.msk.msra.mxu3 %vm3893_vm12, %v6052_v13 }
0x3425   :  { %4704 = vmatmul.msk.f32.gmra.mxu2 %vm3893_vm12, %v6898_v59 }
0x3427   :  { %4679 = vmatpush.xpose.msk.msra.mxu3 %vm3893_vm12, %v6018_v51  ;;  %v3984_v51 = vlaneseq }
0x342b   :  { %4680 = vmatpush.xpose.msk.msra.mxu3 %vm3893_vm12, %v5994_v24 }
0x342d   :  { %4705 = vmatmul.msk.f32.gmra.mxu2 %vm3893_vm12, %v6914_v25 }
0x342f   :  { %4681 = vmatpush.xpose.msk.msra.mxu3 %vm3893_vm12, %v5947_v6 }
0x3433   :  { %4682 = vmatpush.xpose.msk.msra.mxu3 %vm3893_vm12, %v5901_v62 }
0x3435   :  { %4706 = vmatmul.msk.f32.gmra.mxu2 %vm3893_vm12, %v3791_v28 }
0x3437   :  { %4683 = vmatpush.xpose.msk.msra.mxu3 %vm3893_vm12, %v5870_v58  ;;  %v3084_v58 = vadd.f32 %v6884_v8, %v6736_v35 }
0x343a   :  { %4684 = vmatmul.msk.f32.vlgmr.msra.gmra.mxu3 %vm3893_vm12, %v6755_v38  ;;  %v7027_v38 = vshrl.u32 %v3984_v51, 7 }
0x343c   :  { %v3997_v35 = vand.u32 7, %v7027_v38  ;;  %v3988_v52 = vadd.s32 24, %v7027_v38  ;;  %v3989_v48 = vadd.s32 32, %v7027_v38  ;;  %v3986_v32 = vadd.s32 8, %v7027_v38 }
0x343d   :  { %v3990_v4 = vadd.s32 40, %v7027_v38  ;;  %v3987_v21 = vadd.s32 16, %v7027_v38  ;;  %v3991_v37 = vadd.s32 48, %v7027_v38 }
0x343e   :  { %v4018_v30 = vand.u32 7, %v3988_v52  ;;  %v4025_v45 = vand.u32 7, %v3989_v48  ;;  %v4004_v39 = vand.u32 7, %v3986_v32 }
0x343f   :  { %v4032_v0 = vand.u32 7, %v3990_v4  ;;  %v4011_v41 = vand.u32 7, %v3987_v21  ;;  %v4039_v53 = vand.u32 7, %v3991_v37  ;;  %v4342_v4 = vld [vmem:[%s7174_s17 + $0x30] sm:$0xff] }
0x3442   :  { %4685 = vmatmul.msk.f32.gmra.mxu3 %vm3893_vm12, %v6787_v2  ;;  %v4090_v2 = vand.u32 127, %v3984_v51 }
0x344a   :  { %4686 = vmatmul.msk.f32.gmra.mxu3 %vm3893_vm12, %v6834_v40 }
0x3452   :  { %4687 = vmatmul.msk.f32.gmra.mxu3 %vm3893_vm12, %v6874_v57  ;;  %v7030_v57 = vand.u32 7, %v4090_v2 }
0x3454   :  { %vm4103_vm10 = vcmp.eq.s32.totalorder %v3997_v35, %v7030_v57  ;;  %vm4106_vm2 = vcmp.eq.s32.totalorder %v4018_v30, %v7030_v57  ;;  %vm4107_vm3 = vcmp.eq.s32.totalorder %v4025_v45, %v7030_v57  ;;  %vm4104_vm7 = vcmp.eq.s32.totalorder %v4004_v39, %v7030_v57  ;;  %v4343_v39 = vld [vmem:[%s7174_s17 + $0x38] sm:$0xff] }
0x3455   :  { %vm4108_vm8 = vcmp.eq.s32.totalorder %v4032_v0, %v7030_v57  ;;  %vm4105_vm9 = vcmp.eq.s32.totalorder %v4011_v41, %v7030_v57  ;;  %vm4109_vm11 = vcmp.eq.s32.totalorder %v4039_v53, %v7030_v57  ;;  %4380 = vmatpush.msra.mxu1 %v4343_v39  ;;  %v4341_v0 = vld [vmem:[%s7174_s17 + $0x28] sm:$0xff] }
0x3457   :  { %4381 = vmatpush.msra.mxu1 %v4342_v4 }
0x3459   :  { %4382 = vmatpush.msra.mxu1 %v4341_v0 }
0x345a   :  { %4688 = vmatmul.msk.f32.gmra.mxu3 %vm3893_vm12, %v6898_v59 }
0x3462   :  { %4689 = vmatmul.msk.f32.gmra.mxu3 %vm3893_vm12, %v6914_v25 }
0x346a   :  { %4690 = vmatmul.msk.f32.gmra.mxu3 %vm3893_vm12, %v3791_v28 }
0x347a   :  { %v3812_v13 = vpop.f32.mrf.mxu1 }
0x347b   :  { %v3835_v34 = vadd.f32 %v3812_v13, %v3043_v7 }
0x347d   :  { %v4666_v40 = vmul.f32 -1.442695, %v3835_v34 }
0x3480   :  { %v3832_v62 = vpop.f32.mrf.mxu2 }
0x3481   :  { %v7021_v6 = vadd.f32 %v3832_v62, %v3084_v58 }
0x3483   :  { %5093 = vtanh.f32 %v7021_v6  ;;  %v4667_v34 = vmul.f32 -1.442695, %v7021_v6 }
0x3484   :  { %5095 = vpow2.f32 %v4666_v40 }
0x3489   :  { %v5094_v24 = vpop.eup %5093 }
0x348a   :  { %3878 = vrot.lane.b32.xlu2 %v5094_v24, %s5138_s23  ;;  %v5096_v25 = vpop.eup %5095 }
0x348b   :  { %v3843_v18 = vadd.f32 1.0, %v5096_v25 }
0x348d   :  { %5097 = vrcp.f32 %v3843_v18  ;;  %v3856_v55 = vand.u32 2147483648, %v3843_v18  ;;  %vm3850_vm1 = vweird.f32 %v3843_v18  ;;  %v3854_v42 = vand.u32 2147483647, %v3843_v18 }
0x348f   :  { %v3857_v46 = vor.u32 1.1754944e-38, %v3856_v55  ;;  %vm3855_vm6 = vcmp.eq.f32.partialorder %v3854_v42, 8.507059e+37 }
0x3493   :  { %v5098_v11 = vpop.eup %5097 }
0x3494   :  { %v3846_v15 = vmul.f32 %v5098_v11, %v3843_v18  ;;  %vm3851_vm4 = vweird.f32 %v5098_v11 }
0x3495   :  { %vm3852_vm5 = vmor %vm3850_vm1, %vm3851_vm4 }
0x3496   :  { %v3847_v17 = vsub.f32 1.0, %v3846_v15 }
0x3498   :  { %v3848_v3 = vmul.f32 %v5098_v11, %v3847_v17 }
0x349a   :  { %v3849_v47 = vadd.f32 %v5098_v11, %v3848_v3 }
0x349c   :  { %v3853_v19 = vsel %vm3852_vm5, %v5098_v11, %v3849_v47 }
0x349d   :  { %v3858_v36 = vsel %vm3855_vm6, %v3857_v46, %v3853_v19 }
0x349e   :  { %v3876_v26 = vmul.f32 %v3858_v36, %v6940_v63 }
0x34bd   :  { %v3960_v8 = vpop.f32.mrf.mxu3 }
0x34be   :  { %v4111_v59 = vsel %vm4103_vm10, %v3960_v8, -1e+30 }
0x34bf   :  { %4119 = vmax.xlane.f32.xlu2 %v4111_v59 }
0x34c5   :  { %v3963_v56 = vpop.f32.mrf.mxu3 }
0x34c6   :  { %v4112_v29 = vsel %vm4104_vm7, %v3963_v56, -1e+30 }
0x34cd   :  { %v3966_v33 = vpop.f32.mrf.mxu3 }
0x34ce   :  { %v4113_v12 = vsel %vm4105_vm9, %v3966_v33, -1e+30 }
0x34d5   :  { %v3969_v44 = vpop.f32.mrf.mxu3 }
0x34d6   :  { %v7036_v61 = vsel %vm4106_vm2, %v3969_v44, -1e+30 }
0x34d7   :  { %4125 = vmax.xlane.f32.xlu2 %v7036_v61 }
0x34dd   :  { %v3972_v14 = vpop.f32.mrf.mxu3 }
0x34de   :  { %v4115_v16 = vsel %vm4107_vm3, %v3972_v14, -1e+30 }
0x34df   :  { %4127 = vmax.xlane.f32.xlu2 %v4115_v16 }
0x34e4   :  { %v3879_v50 = vpop.permute.xlu2 %3878 }
0x34e5   :  { %v3881_v54 = vmul.f32 %v3879_v50, %v3858_v36  ;;  %v3975_v9 = vpop.f32.mrf.mxu3 }
0x34e6   :  { %v7045_v27 = vsel %vm4108_vm8, %v3975_v9, -1e+30 }
0x34e7   :  { %3883 = vrot.lane.b32.xlu0 %v3881_v54, %s5138_s23 }
0x34ed   :  { %v3978_v5 = vpop.f32.mrf.mxu3 }
0x34ee   :  { %v7056_v62 = vsel %vm4109_vm11, %v3978_v5, -1e+30 }
0x3511   :  { %4121 = vmax.xlane.f32.xlu0 %v4112_v29 }
0x3519   :  { %4129 = vmax.xlane.f32.xlu0 %v7045_v27 }
0x3532   :  { %v4120_v60 = vpop.xlane.xlu2 %4119 }
0x3533   :  { %v4135_v49 = vsub.f32 %v4111_v59, %v4120_v60 }
0x3535   :  { %v4143_v23 = vmul.f32 1.442695, %v4135_v49 }
0x3537   :  { %5099 = vpow2.f32 %v4143_v23 }
0x353d   :  { %v5100_v1 = vpop.eup %5099 }
0x353e   :  { %4159 = vadd.xlane.f32.xlu2 %v5100_v1 }
0x354a   :  { %v7051_v28 = vpop.xlane.xlu2 %4125 }
0x3552   :  { %v4128_v58 = vpop.xlane.xlu2 %4127 }
0x3553   :  { %v4139_v24 = vsub.f32 %v4115_v16, %v4128_v58 }
0x3555   :  { %v4151_v51 = vmul.f32 1.442695, %v4139_v24  ;;  %v4138_v24 = vsub.f32 %v7036_v61, %v7051_v28 }
0x3559   :  { %v3884_v31 = vpop.permute.xlu0 %3883 }
0x355a   :  { %v3886_v43 = vadd.f32 %v3884_v31, %v3876_v26 }
0x355c   :  { %5101 = vtanh.f32 %v3886_v43 }
0x3562   :  { %v5102_v22 = vpop.eup %5101 }
0x3563   :  { %3889 = vrot.lane.b32.xlu1 %v5102_v22, %s5138_s23 }
0x3584   :  { %v4122_v10 = vpop.xlane.xlu0 %4121 }
0x3585   :  { %v4136_v63 = vsub.f32 %v4112_v29, %v4122_v10 }
0x3587   :  { %v4145_v20 = vmul.f32 1.442695, %v4136_v63  ;;  %v4340_v63 = vld [vmem:[%s7174_s17 + $0x20] sm:$0xff] }
0x3588   :  { %4383 = vmatpush.msra.mxu1 %v4340_v63 }
0x3589   :  { %5103 = vpow2.f32 %v4145_v20  ;;  %v3992_v20 = vadd.s32 56, %v7027_v38 }
0x358a   :  { %5105 = vpow2.f32 %v4151_v51  ;;  %v4149_v51 = vmul.f32 1.442695, %v4138_v24 }
0x358b   :  { %5107 = vpow2.f32 %v4667_v34  ;;  %v4046_v58 = vand.u32 7, %v3992_v20 }
0x358c   :  { %v4130_v54 = vpop.xlane.xlu0 %4129 }
0x358d   :  { %4123 = vmax.xlane.f32.xlu1 %v4113_v12  ;;  %v4140_v29 = vsub.f32 %v7045_v27, %v4130_v54  ;;  %vm4110_vm8 = vcmp.eq.s32.totalorder %v4046_v58, %v7030_v57 }
0x358f   :  { %v7059_v13 = vpop.eup %5103  ;;  %v4153_v60 = vmul.f32 1.442695, %v4140_v29 }
0x3590   :  { %v7062_v7 = vpop.eup %5105 }
0x3591   :  { %v5108_v40 = vpop.eup %5107 }
0x3592   :  { %v3844_v35 = vadd.f32 1.0, %v5108_v40 }
0x3594   :  { %v3871_v14 = vand.u32 2147483648, %v3844_v35  ;;  %vm3865_vm2 = vweird.f32 %v3844_v35  ;;  %v3869_v47 = vand.u32 2147483647, %v3844_v35 }
0x3595   :  { %4131 = vmax.xlane.f32.xlu1 %v7056_v62 }
0x3596   :  { %v3872_v55 = vor.u32 1.1754944e-38, %v3871_v14  ;;  %vm3870_vm4 = vcmp.eq.f32.partialorder %v3869_v47, 8.507059e+37 }
0x359d   :  { %4161 = vadd.xlane.f32.xlu1 %v7059_v13 }
0x35a5   :  { %4167 = vadd.xlane.f32.xlu1 %v7062_v7 }
0x35b1   :  { %v4160_v2 = vpop.xlane.xlu2 %4159 }
0x35b2   :  { %5109 = vrcp.f32 %v4160_v2  ;;  %v4186_v18 = vand.u32 2147483648, %v4160_v2  ;;  %v4184_v52 = vand.u32 2147483647, %v4160_v2  ;;  %vm4180_vm14 = vweird.f32 %v4160_v2 }
0x35b3   :  { %5111 = vrcp.f32 %v3844_v35 }
0x35b4   :  { %v4187_v30 = vor.u32 1.1754944e-38, %v4186_v18  ;;  %vm4185_vm0 = vcmp.eq.f32.partialorder %v4184_v52, 8.507059e+37 }
0x35b8   :  { %v5110_v8 = vpop.eup %5109 }
0x35b9   :  { %v4176_v59 = vmul.f32 %v5110_v8, %v4160_v2  ;;  %vm4181_vm13 = vweird.f32 %v5110_v8  ;;  %v5112_v33 = vpop.eup %5111 }
0x35ba   :  { %vm4182_vm15 = vmor %vm4180_vm14, %vm4181_vm13  ;;  %v3861_v48 = vmul.f32 %v5112_v33, %v3844_v35  ;;  %vm3866_vm10 = vweird.f32 %v5112_v33 }
0x35bb   :  { %v4177_v25 = vsub.f32 1.0, %v4176_v59  ;;  %vm3867_vm3 = vmor %vm3865_vm2, %vm3866_vm10 }
0x35bc   :  { %v3862_v17 = vsub.f32 1.0, %v3861_v48 }
0x35bd   :  { %v4178_v56 = vmul.f32 %v5110_v8, %v4177_v25 }
0x35be   :  { %v3863_v45 = vmul.f32 %v5112_v33, %v3862_v17 }
0x35bf   :  { %v4179_v11 = vadd.f32 %v5110_v8, %v4178_v56 }
0x35c0   :  { %v3864_v3 = vadd.f32 %v5112_v33, %v3863_v45 }
0x35c1   :  { %v4183_v15 = vsel %vm4182_vm15, %v5110_v8, %v4179_v11  ;;  %vm4462_vm15 = vcmask 48128  }
0x35c2   :  { %v4188_v6 = vsel %vm4185_vm0, %v4187_v30, %v4183_v15  ;;  %v3868_v16 = vsel %vm3867_vm3, %v5112_v33, %v3864_v3  ;;  %v7101_v15 = vld [vmem:[%s7175_s18] ss:$0 sm:$0xff] }
0x35c3   :  { %v4287_v44 = vmul.f32 %v5100_v1, %v4188_v6  ;;  %v3873_v42 = vsel %vm3870_vm4, %v3872_v55, %v3868_v16  ;;  %v4426_v6 = vpop.f32.mrf.mxu2 }
0x35c5   :  { %4311 = vmatmul.f32.vlgmr.msrb.gmra.mxu0 %v4287_v44 }
0x35d5   :  { %v3890_v19 = vpop.permute.xlu1 %3889 }
0x35d6   :  { %v3892_v46 = vmul.f32 %v3890_v19, %v3873_v42 }
0x35d8   :  { %4691 = vmatmul.msk.f32.gmra.mxu3 %vm3893_vm12, %v3892_v46  ;;  %4707 = vmatmul.msk.f32.gmra.mxu2 %vm3893_vm12, %v3892_v46 }
0x3600   :  { %v4124_v50 = vpop.xlane.xlu1 %4123 }
0x3601   :  { %v4137_v36 = vsub.f32 %v4113_v12, %v4124_v50 }
0x3603   :  { %v4147_v32 = vmul.f32 1.442695, %v4137_v36 }
0x3605   :  { %5113 = vpow2.f32 %v4147_v32 }
0x3606   :  { %5115 = vpow2.f32 %v4153_v60 }
0x3608   :  { %v4132_v9 = vpop.xlane.xlu1 %4131 }
0x3609   :  { %v4141_v2 = vsub.f32 %v7056_v62, %v4132_v9 }
0x360b   :  { %v5114_v49 = vpop.eup %5113  ;;  %v4155_v40 = vmul.f32 1.442695, %v4141_v2 }
0x360c   :  { %4163 = vadd.xlane.f32.xlu2 %v5114_v49  ;;  %v7078_v1 = vpop.eup %5115 }
0x3610   :  { %v4162_v23 = vpop.xlane.xlu1 %4161 }
0x3611   :  { %5117 = vrcp.f32 %v4162_v23  ;;  %v4200_v43 = vand.u32 2147483648, %v4162_v23  ;;  %v4198_v21 = vand.u32 2147483647, %v4162_v23  ;;  %vm4194_vm5 = vweird.f32 %v4162_v23 }
0x3612   :  { %5119 = vpow2.f32 %v4149_v51 }
0x3613   :  { %v4201_v37 = vor.u32 1.1754944e-38, %v4200_v43  ;;  %vm4199_vm7 = vcmp.eq.f32.partialorder %v4198_v21, 8.507059e+37  ;;  %5121 = vpow2.f32 %v4155_v40 }
0x3614   :  { %4169 = vadd.xlane.f32.xlu2 %v7078_v1 }
0x3617   :  { %v5118_v27 = vpop.eup %5117 }
0x3618   :  { %v4190_v26 = vmul.f32 %v5118_v27, %v4162_v23  ;;  %vm4195_vm1 = vweird.f32 %v5118_v27  ;;  %v7091_v35 = vpop.eup %5119  ;;  %v4168_v45 = vpop.xlane.xlu1 %4167 }
0x3619   :  { %vm4196_vm6 = vmor %vm4194_vm5, %vm4195_vm1  ;;  %v7094_v38 = vpop.eup %5121  ;;  %v4242_v21 = vand.u32 2147483648, %v4168_v45  ;;  %vm4236_vm1 = vweird.f32 %v4168_v45 }
0x361a   :  { %v4191_v31 = vsub.f32 1.0, %v4190_v26 }
0x361c   :  { %v4192_v22 = vmul.f32 %v5118_v27, %v4191_v31 }
0x361e   :  { %v4193_v41 = vadd.f32 %v5118_v27, %v4192_v22 }
0x3620   :  { %v4197_v10 = vsel %vm4196_vm6, %v5118_v27, %v4193_v41 }
0x3621   :  { %v4202_v12 = vsel %vm4199_vm7, %v4201_v37, %v4197_v10  ;;  %v4240_v10 = vand.u32 2147483647, %v4168_v45 }
0x3622   :  { %v4288_v53 = vmul.f32 %v7059_v13, %v4202_v12 }
0x3623   :  { %vm4241_vm6 = vcmp.eq.f32.partialorder %v4240_v10, 8.507059e+37 }
0x3624   :  { %4314 = vmatmul.f32.gmra.mxu0 %v4288_v53 }
0x3642   :  { %v4312_v5 = vpop.f32.mrf.mxu0 }
0x3643   :  { %4692 = vmatmul.msk.f32.vlgmr.msra.gmra.mxu1 %vm3893_vm12, %v4312_v5  ;;  %v4243_v5 = vor.u32 1.1754944e-38, %v4242_v21 }
0x365b   :  { %v3981_v34 = vpop.f32.mrf.mxu3 }
0x365c   :  { %v4118_v13 = vsel %vm4110_vm8, %v3981_v34, -1e+30 }
0x365d   :  { %4133 = vmax.xlane.f32.xlu0 %v4118_v13 }
0x3665   :  { %4165 = vadd.xlane.f32.xlu0 %v7091_v35 }
0x366d   :  { %4171 = vadd.xlane.f32.xlu0 %v7094_v38 }
0x367f   :  { %v4164_v61 = vpop.xlane.xlu2 %4163 }
0x3680   :  { %5123 = vrcp.f32 %v4164_v61  ;;  %v4214_v59 = vand.u32 2147483648, %v4164_v61  ;;  %v4212_v18 = vand.u32 2147483647, %v4164_v61  ;;  %vm4208_vm11 = vweird.f32 %v4164_v61 }
0x3681   :  { %5125 = vrcp.f32 %v4168_v45 }
0x3682   :  { %v4215_v56 = vor.u32 1.1754944e-38, %v4214_v59  ;;  %vm4213_vm14 = vcmp.eq.f32.partialorder %v4212_v18, 8.507059e+37 }
0x3686   :  { %v5124_v57 = vpop.eup %5123 }
0x3687   :  { %v4204_v28 = vmul.f32 %v5124_v57, %v4164_v61  ;;  %vm4209_vm9 = vweird.f32 %v5124_v57  ;;  %v5126_v16 = vpop.eup %5125  ;;  %v4170_v55 = vpop.xlane.xlu2 %4169 }
0x3688   :  { %vm4210_vm13 = vmor %vm4208_vm11, %vm4209_vm9  ;;  %v4232_v46 = vmul.f32 %v5126_v16, %v4168_v45  ;;  %vm4237_vm3 = vweird.f32 %v5126_v16  ;;  %v4256_v51 = vand.u32 2147483648, %v4170_v55  ;;  %vm4250_vm8 = vweird.f32 %v4170_v55 }
0x3689   :  { %v4205_v8 = vsub.f32 1.0, %v4204_v28  ;;  %vm4238_vm5 = vmor %vm4236_vm1, %vm4237_vm3  ;;  %v4254_v34 = vand.u32 2147483647, %v4170_v55 }
0x368a   :  { %v4233_v36 = vsub.f32 1.0, %v4232_v46 }
0x368b   :  { %v4206_v25 = vmul.f32 %v5124_v57, %v4205_v8  ;;  %vm4255_vm11 = vcmp.eq.f32.partialorder %v4254_v34, 8.507059e+37 }
0x368c   :  { %v4234_v29 = vmul.f32 %v5126_v16, %v4233_v36 }
0x368d   :  { %v4207_v62 = vadd.f32 %v5124_v57, %v4206_v25 }
0x368e   :  { %v4235_v43 = vadd.f32 %v5126_v16, %v4234_v29 }
0x368f   :  { %v4211_v52 = vsel %vm4210_vm13, %v5124_v57, %v4207_v62 }
0x3690   :  { %v4216_v33 = vsel %vm4213_vm14, %v4215_v56, %v4211_v52  ;;  %v4239_v63 = vsel %vm4238_vm5, %v5126_v16, %v4235_v43  ;;  %v4429_v52 = vpop.f32.mrf.mxu2 }
0x3691   :  { %v4289_v11 = vmul.f32 %v5114_v49, %v4216_v33  ;;  %v4244_v20 = vsel %vm4241_vm6, %v4243_v5, %v4239_v63 }
0x3693   :  { %4317 = vmatmul.f32.gmra.mxu0 %v4289_v11 }
0x36a1   :  { %v4315_v30 = vpop.f32.mrf.mxu0 }
0x36a2   :  { %4693 = vmatmul.msk.f32.gmra.mxu1 %vm3893_vm12, %v4315_v30 }
0x36c0   :  { %v4385_v48 = vpop.f32.mrf.mxu1 }
0x36c1   :  { %v4427_v44 = vadd.f32 %v4426_v6, %v4385_v48 }
0x36c3   :  { %v4454_v17 = vadd.f32 %v7101_v15, %v4427_v44 }
0x36c5   :  { %4463 = vst.msk [vmem:[%s7176_s19] sm:$0xff] %vm4462_vm15, %v4454_v17 }
0x36d0   :  { %v4134_v3 = vpop.xlane.xlu0 %4133 }
0x36d1   :  { %v4142_v14 = vsub.f32 %v4118_v13, %v4134_v3  ;;  %v4291_v13 = vmul.f32 %v7062_v7, %v4244_v20 }
0x36d3   :  { %v4157_v47 = vmul.f32 1.442695, %v4142_v14 }
0x36d5   :  { %5127 = vpow2.f32 %v4157_v47 }
0x36d8   :  { %v4166_v42 = vpop.xlane.xlu0 %4165 }
0x36d9   :  { %5129 = vrcp.f32 %v4166_v42  ;;  %v4228_v0 = vand.u32 2147483648, %v4166_v42  ;;  %v4226_v49 = vand.u32 2147483647, %v4166_v42  ;;  %vm4222_vm10 = vweird.f32 %v4166_v42 }
0x36da   :  { %5131 = vrcp.f32 %v4170_v55 }
0x36db   :  { %v7108_v19 = vpop.eup %5127  ;;  %v4229_v27 = vor.u32 1.1754944e-38, %v4228_v0  ;;  %vm4227_vm4 = vcmp.eq.f32.partialorder %v4226_v49, 8.507059e+37 }
0x36dc   :  { %4173 = vadd.xlane.f32.xlu1 %v7108_v19 }
0x36df   :  { %v5130_v50 = vpop.eup %5129 }
0x36e0   :  { %v4218_v54 = vmul.f32 %v5130_v50, %v4166_v42  ;;  %v4172_v32 = vpop.xlane.xlu0 %4171  ;;  %v5132_v39 = vpop.eup %5131  ;;  %vm4223_vm0 = vweird.f32 %v5130_v50 }
0x36e1   :  { %5133 = vrcp.f32 %v4172_v32  ;;  %v4246_v9 = vmul.f32 %v5132_v39, %v4170_v55  ;;  %vm4224_vm2 = vmor %vm4222_vm10, %vm4223_vm0  ;;  %vm4251_vm7 = vweird.f32 %v5132_v39  ;;  %v4270_v28 = vand.u32 2147483648, %v4172_v32 }
0x36e2   :  { %v4219_v4 = vsub.f32 1.0, %v4218_v54  ;;  %vm4252_vm9 = vmor %vm4250_vm8, %vm4251_vm7  ;;  %vm4264_vm14 = vweird.f32 %v4172_v32  ;;  %v4268_v8 = vand.u32 2147483647, %v4172_v32  ;;  %v4432_v54 = vpop.f32.mrf.mxu2 }
0x36e3   :  { %v4247_v26 = vsub.f32 1.0, %v4246_v9  ;;  %v4271_v18 = vor.u32 1.1754944e-38, %v4270_v28 }
0x36e4   :  { %v4220_v60 = vmul.f32 %v5130_v50, %v4219_v4  ;;  %vm4269_vm10 = vcmp.eq.f32.partialorder %v4268_v8, 8.507059e+37 }
0x36e5   :  { %v4248_v12 = vmul.f32 %v5132_v39, %v4247_v26 }
0x36e6   :  { %v4221_v23 = vadd.f32 %v5130_v50, %v4220_v60 }
0x36e7   :  { %v5134_v22 = vpop.eup %5133  ;;  %v4249_v58 = vadd.f32 %v5132_v39, %v4248_v12 }
0x36e8   :  { %v4225_v31 = vsel %vm4224_vm2, %v5130_v50, %v4221_v23  ;;  %v4260_v53 = vmul.f32 %v5134_v22, %v4172_v32  ;;  %vm4265_vm13 = vweird.f32 %v5134_v22 }
0x36e9   :  { %v4230_v41 = vsel %vm4227_vm4, %v4229_v27, %v4225_v31  ;;  %v4253_v40 = vsel %vm4252_vm9, %v5132_v39, %v4249_v58  ;;  %vm4266_vm0 = vmor %vm4264_vm14, %vm4265_vm13 }
0x36ea   :  { %v4290_v37 = vmul.f32 %v7091_v35, %v4230_v41  ;;  %v4261_v24 = vsub.f32 1.0, %v4260_v53  ;;  %v4257_v35 = vor.u32 1.1754944e-38, %v4256_v51  ;;  %v4435_v29 = vpop.f32.mrf.mxu2 }
0x36ec   :  { %4320 = vmatmul.f32.gmra.mxu0 %v4290_v37  ;;  %v4262_v2 = vmul.f32 %v5134_v22, %v4261_v24  ;;  %v4258_v61 = vsel %vm4255_vm11, %v4257_v35, %v4253_v40 }
0x36ed   :  { %v4292_v59 = vmul.f32 %v7078_v1, %v4258_v61 }
0x36ee   :  { %v4263_v57 = vadd.f32 %v5134_v22, %v4262_v2 }
0x36f0   :  { %v4267_v25 = vsel %vm4266_vm0, %v5134_v22, %v4263_v57 }
0x36f1   :  { %v4272_v7 = vsel %vm4269_vm10, %v4271_v18, %v4267_v25 }
0x36f2   :  { %v4293_v62 = vmul.f32 %v7094_v38, %v4272_v7  ;;  %v4438_v49 = vpop.f32.mrf.mxu2 }
0x36f4   :  { %4323 = vmatmul.f32.gmra.mxu0 %v4291_v13 }
0x36fa   :  { %v4441_v31 = vpop.f32.mrf.mxu2 }
0x36fc   :  { %4326 = vmatmul.f32.gmra.mxu0 %v4292_v59 }
0x3702   :  { %v4444_v41 = vpop.f32.mrf.mxu2 }
0x3704   :  { %4329 = vmatmul.f32.gmra.mxu0 %v4293_v62 }
0x370a   :  { %v4447_v53 = vpop.f32.mrf.mxu2 }
0x3710   :  { %v4318_v56 = vpop.f32.mrf.mxu0 }
0x3711   :  { %4694 = vmatmul.msk.f32.gmra.mxu1 %vm3893_vm12, %v4318_v56 }
0x371f   :  { %v4388_v33 = vpop.f32.mrf.mxu1 }
0x3720   :  { %v4430_v11 = vadd.f32 %v4429_v52, %v4388_v33 }
0x3722   :  { %v4455_v30 = vadd.f32 %v7101_v15, %v4430_v11 }
0x3724   :  { %4464 = vst.msk [vmem:[%s7176_s19 + $0x8] sm:$0xff] %vm4462_vm15, %v4455_v30 }
0x374f   :  { %v4174_v1 = vpop.xlane.xlu1 %4173 }
0x3750   :  { %5135 = vrcp.f32 %v4174_v1  ;;  %v4284_v38 = vand.u32 2147483648, %v4174_v1  ;;  %v4282_v45 = vand.u32 2147483647, %v4174_v1  ;;  %vm4278_vm3 = vweird.f32 %v4174_v1 }
0x3752   :  { %v4285_v14 = vor.u32 1.1754944e-38, %v4284_v38  ;;  %vm4283_vm1 = vcmp.eq.f32.partialorder %v4282_v45, 8.507059e+37 }
0x3756   :  { %v5136_v6 = vpop.eup %5135 }
0x3757   :  { %v4274_v48 = vmul.f32 %v5136_v6, %v4174_v1  ;;  %vm4279_vm2 = vweird.f32 %v5136_v6 }
0x3758   :  { %vm4280_vm4 = vmor %vm4278_vm3, %vm4279_vm2 }
0x3759   :  { %v4275_v44 = vsub.f32 1.0, %v4274_v48 }
0x375b   :  { %v4276_v17 = vmul.f32 %v5136_v6, %v4275_v44 }
0x375d   :  { %v4277_v3 = vadd.f32 %v5136_v6, %v4276_v17 }
0x375f   :  { %v4281_v47 = vsel %vm4280_vm4, %v5136_v6, %v4277_v3 }
0x3760   :  { %v4286_v16 = vsel %vm4283_vm1, %v4285_v14, %v4281_v47 }
0x3761   :  { %v4294_v55 = vmul.f32 %v7108_v19, %v4286_v16 }
0x3763   :  { %4332 = vmatmul.f32.gmra.mxu0 %v4294_v55 }
0x3769   :  { %v4321_v42 = vpop.f32.mrf.mxu0 }
0x376a   :  { %4695 = vmatmul.msk.f32.gmra.mxu1 %vm3893_vm12, %v4321_v42 }
0x3771   :  { %v4324_v46 = vpop.f32.mrf.mxu0 }
0x3772   :  { %4696 = vmatmul.msk.f32.gmra.mxu1 %vm3893_vm12, %v4324_v46 }
0x3779   :  { %v4327_v50 = vpop.f32.mrf.mxu0 }
0x377a   :  { %4697 = vmatmul.msk.f32.gmra.mxu1 %vm3893_vm12, %v4327_v50 }
0x3781   :  { %v4330_v36 = vpop.f32.mrf.mxu0 }
0x3782   :  { %4698 = vmatmul.msk.f32.gmra.mxu1 %vm3893_vm12, %v4330_v36 }
0x378e   :  { %v4391_v32 = vpop.f32.mrf.mxu1 }
0x378f   :  { %v4433_v39 = vadd.f32 %v4432_v54, %v4391_v32 }
0x3791   :  { %v4456_v4 = vadd.f32 %v7101_v15, %v4433_v39 }
0x3793   :  { %4465 = vst.msk [vmem:[%s7176_s19 + $0x10] sm:$0xff] %vm4462_vm15, %v4456_v4 }
0x37e0   :  { %v4333_v19 = vpop.f32.mrf.mxu0 }
0x37e1   :  { %4699 = vmatmul.msk.f32.gmra.mxu1 %vm3893_vm12, %v4333_v19 }
0x37e7   :  { %v4394_v0 = vpop.f32.mrf.mxu1 }
0x37e8   :  { %v4436_v9 = vadd.f32 %v4435_v29, %v4394_v0 }
0x37ea   :  { %v4457_v60 = vadd.f32 %v7101_v15, %v4436_v9 }
0x37ec   :  { %4466 = vst.msk [vmem:[%s7176_s19 + $0x18] sm:$0xff] %vm4462_vm15, %v4457_v60 }
0x37ef   :  { %v4397_v23 = vpop.f32.mrf.mxu1 }
0x37f0   :  { %v4439_v27 = vadd.f32 %v4438_v49, %v4397_v23 }
0x37f2   :  { %v4458_v26 = vadd.f32 %v7101_v15, %v4439_v27 }
0x37f4   :  { %4467 = vst.msk [vmem:[%s7176_s19 + $0x20] sm:$0xff] %vm4462_vm15, %v4458_v26 }
0x37f7   :  { %v4400_v43 = vpop.f32.mrf.mxu1 }
0x37f8   :  { %v4442_v22 = vadd.f32 %v4441_v31, %v4400_v43 }
0x37fa   :  { %v4459_v21 = vadd.f32 %v7101_v15, %v4442_v22 }
0x37fc   :  { %4468 = vst.msk [vmem:[%s7176_s19 + $0x28] sm:$0xff] %vm4462_vm15, %v4459_v21 }
0x37ff   :  { %v4403_v37 = vpop.f32.mrf.mxu1 }
0x3800   :  { %v4445_v10 = vadd.f32 %v4444_v41, %v4403_v37 }
0x3802   :  { %v4460_v12 = vadd.f32 %v7101_v15, %v4445_v10 }
0x3804   :  { %4469 = vst.msk [vmem:[%s7176_s19 + $0x30] sm:$0xff] %vm4462_vm15, %v4460_v12 }
0x385e   :  { %v4406_v63 = vpop.f32.mrf.mxu1 }
0x385f   :  { %v4448_v5 = vadd.f32 %v4447_v53, %v4406_v63 }
0x3861   :  { %v4461_v20 = vadd.f32 %v7101_v15, %v4448_v5 }
0x3863   :  { %4470 = vst.msk [vmem:[%s7176_s19 + $0x38] sm:$0xff] %vm4462_vm15, %v4461_v20 }

</bundles_post_ra>
